<compile_context>
chip_gen: v5e
topology: v5e:2x2
jax: 0.10.0
libtpu: 0.0.40
codegen_flags: <defaults>
</compile_context>

<pallas_src>
import jax
import jax.numpy as jnp
from jax.experimental import pallas as pl
from jax.experimental.pallas import tpu as pltpu

NUM_LAYERS = 5        # total Linear layers (module default)
HIDDEN = 50           # logical hidden_size (module default)
HP = 56               # hidden size padded to a sublane multiple (8)
IN_SIZE = 1
OUT_SIZE = 1
LN_EPS = 1e-5

_N_HIDDEN = NUM_LAYERS - 1          # number of Linear+LN+activation stages (4)
# packed vector-column layout inside `vecs` (shape (HP, 16)):
#   col 0                      : W0[:, 0]            (first-layer weight, in=1)
#   cols 1 .. 4                : biases b_0..b_3
#   cols 5 .. 8                : gamma_0..gamma_3
#   cols 9 .. 12               : beta_0..beta_3
#   col 13                     : W_last[0, :]        (last-layer weight, out=1)
#   col 14                     : b_last (scalar, replicated down the column)
#   col 15                     : row mask (1.0 for rows < HIDDEN, 0.0 for pad rows)
_COL_W0 = 0
_COL_B0 = 1
_COL_G0 = 1 + _N_HIDDEN
_COL_BETA0 = 1 + 2 * _N_HIDDEN
_COL_WL = 1 + 3 * _N_HIDDEN          # 13
_COL_BL = _COL_WL + 1                # 14
_COL_MASK = _COL_BL + 1              # 15
_VEC_COLS = 16


def _mlp_kernel(x_ref, w_ref, vec_ref, out_ref):
    inv_h = 1.0 / float(HIDDEN)      # NOTE: 1/50, not 1/56 -- pad rows are exact zeros

    x = x_ref[...]                   # (1, tm)   batch on lanes
    vecs = vec_ref[...]              # (HP, 16)

    def col(c):
        return vecs[:, c:c + 1]      # (HP, 1), broadcasts along lanes

    mask = col(_COL_MASK)            # 1.0 for real rows, 0.0 for pad rows

    def relu_ln_relu3(a, stage):
        gamma = col(_COL_G0 + stage)
        beta = col(_COL_BETA0 + stage)
        a = jnp.maximum(a, 0.0)                                   # pad rows stay 0
        # two-pass LayerNorm statistics (biased variance, like torch):
        mean = jnp.sum(a, axis=0, keepdims=True) * inv_h          # pad rows add 0
        centered = a - mean
        # exclude pad rows (= -mean after centering) from the squared sum
        var = jnp.sum(centered * centered * mask, axis=0, keepdims=True) * inv_h
        a = centered * jax.lax.rsqrt(var + LN_EPS) * gamma + beta  # pad: 0*g + 0 = 0
        a = jnp.maximum(a, 0.0)
        return a * a * a

    # ---- layer 0: Linear(1, H) is an outer product -> pure VPU, no MXU pass.
    a = col(_COL_W0) * x + col(_COL_B0)                  # (HP, tm)
    a = relu_ln_relu3(a, 0)

    # ---- hidden layers: Linear(H, H) on the MXU, torch (out, in) weight layout.
    for j in range(NUM_LAYERS - 2):
        w = w_ref[j]                                     # (HP, HP), zero-padded
        a = jnp.dot(w, a, preferred_element_type=jnp.float32) + col(_COL_B0 + 1 + j)
        a = relu_ln_relu3(a, j + 1)

    # ---- last layer: Linear(H, 1) -> VPU multiply + XLU reduce, no M=1 MXU pass.
    wl = col(_COL_WL)                                    # (HP, 1), pad rows zero
    bl = vecs[0:1, _COL_BL:_COL_BL + 1]                  # (1, 1)
    y = jnp.sum(wl * a, axis=0, keepdims=True) + bl      # (1, tm)
    out_ref[...] = y.astype(out_ref.dtype)


def _round_up(x, m):
    return (x + m - 1) // m * m


def _cdiv(a, b):
    return (a + b - 1) // b


def mlp_forward(x, w_stack, vecs, *, tm=4096):
    """x: (N, 1) float32; w_stack: (NUM_LAYERS-2, HP, HP); vecs: (HP, 16)."""
    n = x.shape[0]
    n128 = _round_up(max(n, 1), 128)

    # step-count-driven tile selection: lane padding stays <= 127 samples, and the
    # grid is forced to an even count (>= 2) when there is enough work so both v7x
    # TensorCores get work by default (harmless on single-TC v5e/v6e).
    steps = _cdiv(n128, tm)
    if n128 >= 256:
        steps = max(steps, 2)
        if steps % 2:
            steps += 1
    tm_eff = _round_up(_cdiv(n128, steps), 128)
    n_pad = tm_eff * steps

    # batch-on-lanes: present the input as a (1, n_pad) lane-dense slab.
    x_t = jnp.zeros((1, n_pad), jnp.float32).at[:, :n].set(
        x.reshape(1, n).astype(jnp.float32))

    out_t = pl.pallas_call(
        _mlp_kernel,
        out_shape=jax.ShapeDtypeStruct((1, n_pad), jnp.float32),
        grid_spec=pltpu.PrefetchScalarGridSpec(
            num_scalar_prefetch=0,
            grid=(steps,),
            in_specs=[
                pl.BlockSpec((1, tm_eff), lambda i: (0, i)),
                pl.BlockSpec(w_stack.shape, lambda i: (0, 0, 0)),
                pl.BlockSpec(vecs.shape, lambda i: (0, 0)),
            ],
            out_specs=pl.BlockSpec((1, tm_eff), lambda i: (0, i)),
        ),
        compiler_params=pltpu.CompilerParams(
            dimension_semantics=("parallel",),
        ),
    )(x_t, w_stack, vecs)

    return out_t[:, :n].reshape(n, OUT_SIZE)


def init_params(key):
    """Torch-layout params (unpadded): W_i is (out, in), b_i is (out,)."""
    dims = [IN_SIZE] + [HIDDEN] * (NUM_LAYERS - 1) + [OUT_SIZE]
    n_keys = 2 * NUM_LAYERS + 2 * _N_HIDDEN
    keys = jax.random.split(key, n_keys)
    weights, biases = [], []
    for i in range(NUM_LAYERS):
        fan_in, fan_out = dims[i], dims[i + 1]
        bound = 1.0 / (fan_in ** 0.5)
        w = jax.random.uniform(keys[2 * i], (fan_out, fan_in),
                               minval=-bound, maxval=bound, dtype=jnp.float32)
        b = jax.random.uniform(keys[2 * i + 1], (fan_out,),
                               minval=-bound, maxval=bound, dtype=jnp.float32)
        weights.append(w)
        biases.append(b)
    # torch defaults are gamma=1, beta=0; perturb slightly so the test exercises them.
    gammas, betas = [], []
    for i in range(_N_HIDDEN):
        gk = keys[2 * NUM_LAYERS + 2 * i]
        bk = keys[2 * NUM_LAYERS + 2 * i + 1]
        gammas.append(1.0 + 0.1 * jax.random.normal(gk, (HIDDEN,), jnp.float32))
        betas.append(0.1 * jax.random.normal(bk, (HIDDEN,), jnp.float32))
    return weights, biases, gammas, betas


def pack_params(weights, biases, gammas, betas):
    """Pack 18 small parameter arrays into (NUM_LAYERS-2,HP,HP) + (HP,16), zero-padding
    the feature axis from HIDDEN=50 to HP=56 (pad rows/cols are exact zeros)."""
    vecs = jnp.zeros((HP, _VEC_COLS), jnp.float32)
    vecs = vecs.at[:HIDDEN, _COL_W0].set(weights[0][:, 0])
    for i in range(_N_HIDDEN):
        vecs = vecs.at[:HIDDEN, _COL_B0 + i].set(biases[i])
        vecs = vecs.at[:HIDDEN, _COL_G0 + i].set(gammas[i])
        vecs = vecs.at[:HIDDEN, _COL_BETA0 + i].set(betas[i])
    vecs = vecs.at[:HIDDEN, _COL_WL].set(weights[-1][0, :])
    vecs = vecs.at[:, _COL_BL].set(jnp.full((HP,), biases[-1][0], jnp.float32))
    vecs = vecs.at[:HIDDEN, _COL_MASK].set(1.0)

    w_stack = jnp.zeros((NUM_LAYERS - 2, HP, HP), jnp.float32)
    for j in range(NUM_LAYERS - 2):
        w_stack = w_stack.at[j, :HIDDEN, :HIDDEN].set(weights[1 + j])
    return w_stack, vecs


def reference_forward(x, weights, biases, gammas, betas):
    """Pure-JAX reference in the original (N, features) orientation."""
    a = x
    for i in range(_N_HIDDEN):
        a = a @ weights[i].T + biases[i]
        a = jnp.maximum(a, 0.0)
        mean = jnp.mean(a, axis=-1, keepdims=True)
        var = jnp.mean((a - mean) ** 2, axis=-1, keepdims=True)
        a = (a - mean) * jax.lax.rsqrt(var + LN_EPS) * gammas[i] + betas[i]
        a = jnp.maximum(a, 0.0) ** 3
    return a @ weights[-1].T + biases[-1]


if __name__ == "__main__":
    key = jax.random.PRNGKey(0)
    pkey, xkey = jax.random.split(key)

    weights, biases, gammas, betas = init_params(pkey)
    w_stack, vecs = pack_params(weights, biases, gammas, betas)

    N = 1024
    x = jax.random.normal(xkey, (N, IN_SIZE), dtype=jnp.float32)

    # default tm=4096 -> steps forced to 2 (grid=(2,)): both TCs busy on v7x,
    # single fat-enough steps on v5e/v6e.
    out = mlp_forward(x, w_stack, vecs)
    out = jax.block_until_ready(out)

    ref = reference_forward(x, weights, biases, gammas, betas)
    assert out.shape == (N, OUT_SIZE)
    assert jnp.allclose(out, ref, atol=1e-4, rtol=1e-3), "mismatch vs reference"

    print("KERNEL_OK")
</pallas_src>

<mosaic_0001>
module attributes {stable_mosaic.version = 11 : i64} {
  func.func @_mlp_kernel(%arg0: i32, %arg1: memref<1x512xf32, #tpu.memory_space<vmem>>, %arg2: memref<3x56x56xf32, #tpu.memory_space<vmem>>, %arg3: memref<56x16xf32, #tpu.memory_space<vmem>>, %arg4: memref<1x512xf32, #tpu.memory_space<vmem>>) attributes {dimension_semantics = [#tpu.dimension_semantics<parallel>], iteration_bounds = array<i64: 2>, scalar_prefetch = 0 : i64, scratch_operands = 0 : i64, tpu.core_type = #tpu.core_type<tc>, window_params = [{transform_indices = @transform_0, window_bounds = array<i64: 1, 512>}, {pipeline_mode = #tpu.pipeline_mode<synchronous>, transform_indices = @transform_1, window_bounds = array<i64: 3, 56, 56>}, {pipeline_mode = #tpu.pipeline_mode<synchronous>, transform_indices = @transform_2, window_bounds = array<i64: 56, 16>}, {transform_indices = @transform_3, window_bounds = array<i64: 1, 512>}]} {
    %c0 = arith.constant 0 : index
    %c0_0 = arith.constant 0 : index
    %0 = vector.load %arg1[%c0, %c0_0] : memref<1x512xf32, #tpu.memory_space<vmem>>, vector<1x512xf32>
    %c0_1 = arith.constant 0 : index
    %c0_2 = arith.constant 0 : index
    %1 = vector.load %arg3[%c0_1, %c0_2] : memref<56x16xf32, #tpu.memory_space<vmem>>, vector<56x16xf32>
    %2 = vector.extract_strided_slice %1 {offsets = [0, 15], sizes = [56, 1], strides = [1, 1]} : vector<56x16xf32> to vector<56x1xf32>
    %3 = vector.extract_strided_slice %1 {offsets = [0, 0], sizes = [56, 1], strides = [1, 1]} : vector<56x16xf32> to vector<56x1xf32>
    %4 = vector.broadcast %3 : vector<56x1xf32> to vector<56x512xf32>
    %5 = vector.broadcast %0 : vector<1x512xf32> to vector<56x512xf32>
    %6 = arith.mulf %4, %5 : vector<56x512xf32>
    %7 = vector.extract_strided_slice %1 {offsets = [0, 1], sizes = [56, 1], strides = [1, 1]} : vector<56x16xf32> to vector<56x1xf32>
    %8 = vector.broadcast %7 : vector<56x1xf32> to vector<56x512xf32>
    %9 = arith.addf %6, %8 : vector<56x512xf32>
    %10 = vector.extract_strided_slice %1 {offsets = [0, 5], sizes = [56, 1], strides = [1, 1]} : vector<56x16xf32> to vector<56x1xf32>
    %11 = vector.extract_strided_slice %1 {offsets = [0, 9], sizes = [56, 1], strides = [1, 1]} : vector<56x16xf32> to vector<56x1xf32>
    %cst = arith.constant 0.000000e+00 : f32
    %12 = vector.broadcast %cst : f32 to vector<56x512xf32>
    %13 = arith.maximumf %9, %12 : vector<56x512xf32>
    %cst_3 = arith.constant dense<0.000000e+00> : vector<512xf32>
    %14 = vector.multi_reduction <add>, %13, %cst_3 [0] : vector<56x512xf32> to vector<512xf32>
    %15 = vector.shape_cast %14 : vector<512xf32> to vector<1x512xf32>
    %cst_4 = arith.constant 2.000000e-02 : f32
    %16 = vector.broadcast %cst_4 : f32 to vector<1x512xf32>
    %17 = arith.mulf %15, %16 : vector<1x512xf32>
    %18 = vector.broadcast %17 : vector<1x512xf32> to vector<56x512xf32>
    %19 = arith.subf %13, %18 : vector<56x512xf32>
    %20 = arith.mulf %19, %19 : vector<56x512xf32>
    %21 = vector.broadcast %2 : vector<56x1xf32> to vector<56x512xf32>
    %22 = arith.mulf %20, %21 : vector<56x512xf32>
    %cst_5 = arith.constant dense<0.000000e+00> : vector<512xf32>
    %23 = vector.multi_reduction <add>, %22, %cst_5 [0] : vector<56x512xf32> to vector<512xf32>
    %24 = vector.shape_cast %23 : vector<512xf32> to vector<1x512xf32>
    %cst_6 = arith.constant 2.000000e-02 : f32
    %25 = vector.broadcast %cst_6 : f32 to vector<1x512xf32>
    %26 = arith.mulf %24, %25 : vector<1x512xf32>
    %cst_7 = arith.constant 9.99999974E-6 : f32
    %27 = vector.broadcast %cst_7 : f32 to vector<1x512xf32>
    %28 = arith.addf %26, %27 : vector<1x512xf32>
    %29 = math.rsqrt %28 : vector<1x512xf32>
    %30 = vector.broadcast %29 : vector<1x512xf32> to vector<56x512xf32>
    %31 = arith.mulf %19, %30 : vector<56x512xf32>
    %32 = vector.broadcast %10 : vector<56x1xf32> to vector<56x512xf32>
    %33 = arith.mulf %31, %32 : vector<56x512xf32>
    %34 = vector.broadcast %11 : vector<56x1xf32> to vector<56x512xf32>
    %35 = arith.addf %33, %34 : vector<56x512xf32>
    %cst_8 = arith.constant 0.000000e+00 : f32
    %36 = vector.broadcast %cst_8 : f32 to vector<56x512xf32>
    %37 = arith.maximumf %35, %36 : vector<56x512xf32>
    %38 = arith.mulf %37, %37 : vector<56x512xf32>
    %39 = arith.mulf %38, %37 : vector<56x512xf32>
    %c0_9 = arith.constant 0 : index
    %c0_10 = arith.constant 0 : index
    %c0_11 = arith.constant 0 : index
    %40 = vector.load %arg2[%c0_9, %c0_10, %c0_11] : memref<3x56x56xf32, #tpu.memory_space<vmem>>, vector<1x56x56xf32>
    %41 = vector.shape_cast %40 : vector<1x56x56xf32> to vector<56x56xf32>
    %cst_12 = arith.constant dense<0.000000e+00> : vector<56x512xf32>
    %42 = tpu.matmul %41, %39, %cst_12 {dimension_numbers = #tpu.dot_dimension_numbers<[1], [0], [0], [1], [0, 0, 1, 1], [], []>} : vector<56x56xf32>, vector<56x512xf32>, vector<56x512xf32> -> vector<56x512xf32>
    %43 = vector.extract_strided_slice %1 {offsets = [0, 2], sizes = [56, 1], strides = [1, 1]} : vector<56x16xf32> to vector<56x1xf32>
    %44 = vector.broadcast %43 : vector<56x1xf32> to vector<56x512xf32>
    %45 = arith.addf %42, %44 : vector<56x512xf32>
    %46 = vector.extract_strided_slice %1 {offsets = [0, 6], sizes = [56, 1], strides = [1, 1]} : vector<56x16xf32> to vector<56x1xf32>
    %47 = vector.extract_strided_slice %1 {offsets = [0, 10], sizes = [56, 1], strides = [1, 1]} : vector<56x16xf32> to vector<56x1xf32>
    %cst_13 = arith.constant 0.000000e+00 : f32
    %48 = vector.broadcast %cst_13 : f32 to vector<56x512xf32>
    %49 = arith.maximumf %45, %48 : vector<56x512xf32>
    %cst_14 = arith.constant dense<0.000000e+00> : vector<512xf32>
    %50 = vector.multi_reduction <add>, %49, %cst_14 [0] : vector<56x512xf32> to vector<512xf32>
    %51 = vector.shape_cast %50 : vector<512xf32> to vector<1x512xf32>
    %cst_15 = arith.constant 2.000000e-02 : f32
    %52 = vector.broadcast %cst_15 : f32 to vector<1x512xf32>
    %53 = arith.mulf %51, %52 : vector<1x512xf32>
    %54 = vector.broadcast %53 : vector<1x512xf32> to vector<56x512xf32>
    %55 = arith.subf %49, %54 : vector<56x512xf32>
    %56 = arith.mulf %55, %55 : vector<56x512xf32>
    %57 = vector.broadcast %2 : vector<56x1xf32> to vector<56x512xf32>
    %58 = arith.mulf %56, %57 : vector<56x512xf32>
    %cst_16 = arith.constant dense<0.000000e+00> : vector<512xf32>
    %59 = vector.multi_reduction <add>, %58, %cst_16 [0] : vector<56x512xf32> to vector<512xf32>
    %60 = vector.shape_cast %59 : vector<512xf32> to vector<1x512xf32>
    %cst_17 = arith.constant 2.000000e-02 : f32
    %61 = vector.broadcast %cst_17 : f32 to vector<1x512xf32>
    %62 = arith.mulf %60, %61 : vector<1x512xf32>
    %cst_18 = arith.constant 9.99999974E-6 : f32
    %63 = vector.broadcast %cst_18 : f32 to vector<1x512xf32>
    %64 = arith.addf %62, %63 : vector<1x512xf32>
    %65 = math.rsqrt %64 : vector<1x512xf32>
    %66 = vector.broadcast %65 : vector<1x512xf32> to vector<56x512xf32>
    %67 = arith.mulf %55, %66 : vector<56x512xf32>
    %68 = vector.broadcast %46 : vector<56x1xf32> to vector<56x512xf32>
    %69 = arith.mulf %67, %68 : vector<56x512xf32>
    %70 = vector.broadcast %47 : vector<56x1xf32> to vector<56x512xf32>
    %71 = arith.addf %69, %70 : vector<56x512xf32>
    %cst_19 = arith.constant 0.000000e+00 : f32
    %72 = vector.broadcast %cst_19 : f32 to vector<56x512xf32>
    %73 = arith.maximumf %71, %72 : vector<56x512xf32>
    %74 = arith.mulf %73, %73 : vector<56x512xf32>
    %75 = arith.mulf %74, %73 : vector<56x512xf32>
    %c1 = arith.constant 1 : index
    %c0_20 = arith.constant 0 : index
    %c0_21 = arith.constant 0 : index
    %76 = vector.load %arg2[%c1, %c0_20, %c0_21] : memref<3x56x56xf32, #tpu.memory_space<vmem>>, vector<1x56x56xf32>
    %77 = vector.shape_cast %76 : vector<1x56x56xf32> to vector<56x56xf32>
    %cst_22 = arith.constant dense<0.000000e+00> : vector<56x512xf32>
    %78 = tpu.matmul %77, %75, %cst_22 {dimension_numbers = #tpu.dot_dimension_numbers<[1], [0], [0], [1], [0, 0, 1, 1], [], []>} : vector<56x56xf32>, vector<56x512xf32>, vector<56x512xf32> -> vector<56x512xf32>
    %79 = vector.extract_strided_slice %1 {offsets = [0, 3], sizes = [56, 1], strides = [1, 1]} : vector<56x16xf32> to vector<56x1xf32>
    %80 = vector.broadcast %79 : vector<56x1xf32> to vector<56x512xf32>
    %81 = arith.addf %78, %80 : vector<56x512xf32>
    %82 = vector.extract_strided_slice %1 {offsets = [0, 7], sizes = [56, 1], strides = [1, 1]} : vector<56x16xf32> to vector<56x1xf32>
    %83 = vector.extract_strided_slice %1 {offsets = [0, 11], sizes = [56, 1], strides = [1, 1]} : vector<56x16xf32> to vector<56x1xf32>
    %cst_23 = arith.constant 0.000000e+00 : f32
    %84 = vector.broadcast %cst_23 : f32 to vector<56x512xf32>
    %85 = arith.maximumf %81, %84 : vector<56x512xf32>
    %cst_24 = arith.constant dense<0.000000e+00> : vector<512xf32>
    %86 = vector.multi_reduction <add>, %85, %cst_24 [0] : vector<56x512xf32> to vector<512xf32>
    %87 = vector.shape_cast %86 : vector<512xf32> to vector<1x512xf32>
    %cst_25 = arith.constant 2.000000e-02 : f32
    %88 = vector.broadcast %cst_25 : f32 to vector<1x512xf32>
    %89 = arith.mulf %87, %88 : vector<1x512xf32>
    %90 = vector.broadcast %89 : vector<1x512xf32> to vector<56x512xf32>
    %91 = arith.subf %85, %90 : vector<56x512xf32>
    %92 = arith.mulf %91, %91 : vector<56x512xf32>
    %93 = vector.broadcast %2 : vector<56x1xf32> to vector<56x512xf32>
    %94 = arith.mulf %92, %93 : vector<56x512xf32>
    %cst_26 = arith.constant dense<0.000000e+00> : vector<512xf32>
    %95 = vector.multi_reduction <add>, %94, %cst_26 [0] : vector<56x512xf32> to vector<512xf32>
    %96 = vector.shape_cast %95 : vector<512xf32> to vector<1x512xf32>
    %cst_27 = arith.constant 2.000000e-02 : f32
    %97 = vector.broadcast %cst_27 : f32 to vector<1x512xf32>
    %98 = arith.mulf %96, %97 : vector<1x512xf32>
    %cst_28 = arith.constant 9.99999974E-6 : f32
    %99 = vector.broadcast %cst_28 : f32 to vector<1x512xf32>
    %100 = arith.addf %98, %99 : vector<1x512xf32>
    %101 = math.rsqrt %100 : vector<1x512xf32>
    %102 = vector.broadcast %101 : vector<1x512xf32> to vector<56x512xf32>
    %103 = arith.mulf %91, %102 : vector<56x512xf32>
    %104 = vector.broadcast %82 : vector<56x1xf32> to vector<56x512xf32>
    %105 = arith.mulf %103, %104 : vector<56x512xf32>
    %106 = vector.broadcast %83 : vector<56x1xf32> to vector<56x512xf32>
    %107 = arith.addf %105, %106 : vector<56x512xf32>
    %cst_29 = arith.constant 0.000000e+00 : f32
    %108 = vector.broadcast %cst_29 : f32 to vector<56x512xf32>
    %109 = arith.maximumf %107, %108 : vector<56x512xf32>
    %110 = arith.mulf %109, %109 : vector<56x512xf32>
    %111 = arith.mulf %110, %109 : vector<56x512xf32>
    %c2 = arith.constant 2 : index
    %c0_30 = arith.constant 0 : index
    %c0_31 = arith.constant 0 : index
    %112 = vector.load %arg2[%c2, %c0_30, %c0_31] : memref<3x56x56xf32, #tpu.memory_space<vmem>>, vector<1x56x56xf32>
    %113 = vector.shape_cast %112 : vector<1x56x56xf32> to vector<56x56xf32>
    %cst_32 = arith.constant dense<0.000000e+00> : vector<56x512xf32>
    %114 = tpu.matmul %113, %111, %cst_32 {dimension_numbers = #tpu.dot_dimension_numbers<[1], [0], [0], [1], [0, 0, 1, 1], [], []>} : vector<56x56xf32>, vector<56x512xf32>, vector<56x512xf32> -> vector<56x512xf32>
    %115 = vector.extract_strided_slice %1 {offsets = [0, 4], sizes = [56, 1], strides = [1, 1]} : vector<56x16xf32> to vector<56x1xf32>
    %116 = vector.broadcast %115 : vector<56x1xf32> to vector<56x512xf32>
    %117 = arith.addf %114, %116 : vector<56x512xf32>
    %118 = vector.extract_strided_slice %1 {offsets = [0, 8], sizes = [56, 1], strides = [1, 1]} : vector<56x16xf32> to vector<56x1xf32>
    %119 = vector.extract_strided_slice %1 {offsets = [0, 12], sizes = [56, 1], strides = [1, 1]} : vector<56x16xf32> to vector<56x1xf32>
    %cst_33 = arith.constant 0.000000e+00 : f32
    %120 = vector.broadcast %cst_33 : f32 to vector<56x512xf32>
    %121 = arith.maximumf %117, %120 : vector<56x512xf32>
    %cst_34 = arith.constant dense<0.000000e+00> : vector<512xf32>
    %122 = vector.multi_reduction <add>, %121, %cst_34 [0] : vector<56x512xf32> to vector<512xf32>
    %123 = vector.shape_cast %122 : vector<512xf32> to vector<1x512xf32>
    %cst_35 = arith.constant 2.000000e-02 : f32
    %124 = vector.broadcast %cst_35 : f32 to vector<1x512xf32>
    %125 = arith.mulf %123, %124 : vector<1x512xf32>
    %126 = vector.broadcast %125 : vector<1x512xf32> to vector<56x512xf32>
    %127 = arith.subf %121, %126 : vector<56x512xf32>
    %128 = arith.mulf %127, %127 : vector<56x512xf32>
    %129 = vector.broadcast %2 : vector<56x1xf32> to vector<56x512xf32>
    %130 = arith.mulf %128, %129 : vector<56x512xf32>
    %cst_36 = arith.constant dense<0.000000e+00> : vector<512xf32>
    %131 = vector.multi_reduction <add>, %130, %cst_36 [0] : vector<56x512xf32> to vector<512xf32>
    %132 = vector.shape_cast %131 : vector<512xf32> to vector<1x512xf32>
    %cst_37 = arith.constant 2.000000e-02 : f32
    %133 = vector.broadcast %cst_37 : f32 to vector<1x512xf32>
    %134 = arith.mulf %132, %133 : vector<1x512xf32>
    %cst_38 = arith.constant 9.99999974E-6 : f32
    %135 = vector.broadcast %cst_38 : f32 to vector<1x512xf32>
    %136 = arith.addf %134, %135 : vector<1x512xf32>
    %137 = math.rsqrt %136 : vector<1x512xf32>
    %138 = vector.broadcast %137 : vector<1x512xf32> to vector<56x512xf32>
    %139 = arith.mulf %127, %138 : vector<56x512xf32>
    %140 = vector.broadcast %118 : vector<56x1xf32> to vector<56x512xf32>
    %141 = arith.mulf %139, %140 : vector<56x512xf32>
    %142 = vector.broadcast %119 : vector<56x1xf32> to vector<56x512xf32>
    %143 = arith.addf %141, %142 : vector<56x512xf32>
    %cst_39 = arith.constant 0.000000e+00 : f32
    %144 = vector.broadcast %cst_39 : f32 to vector<56x512xf32>
    %145 = arith.maximumf %143, %144 : vector<56x512xf32>
    %146 = arith.mulf %145, %145 : vector<56x512xf32>
    %147 = arith.mulf %146, %145 : vector<56x512xf32>
    %148 = vector.extract_strided_slice %1 {offsets = [0, 13], sizes = [56, 1], strides = [1, 1]} : vector<56x16xf32> to vector<56x1xf32>
    %149 = vector.extract_strided_slice %1 {offsets = [0, 14], sizes = [1, 1], strides = [1, 1]} : vector<56x16xf32> to vector<1x1xf32>
    %150 = vector.broadcast %148 : vector<56x1xf32> to vector<56x512xf32>
    %151 = arith.mulf %150, %147 : vector<56x512xf32>
    %cst_40 = arith.constant dense<0.000000e+00> : vector<512xf32>
    %152 = vector.multi_reduction <add>, %151, %cst_40 [0] : vector<56x512xf32> to vector<512xf32>
    %153 = vector.shape_cast %152 : vector<512xf32> to vector<1x512xf32>
    %154 = vector.broadcast %149 : vector<1x1xf32> to vector<1x512xf32>
    %155 = arith.addf %153, %154 : vector<1x512xf32>
    %c0_41 = arith.constant 0 : index
    %c0_42 = arith.constant 0 : index
    %156 = vector.load %arg4[%c0_41, %c0_42] : memref<1x512xf32, #tpu.memory_space<vmem>>, vector<1x512xf32>
    tpu.vector_store %arg4[%c0_41, %c0_42], %155 {strides = array<i32>} : memref<1x512xf32, #tpu.memory_space<vmem>>, vector<1x512xf32>,
    return
  }
  func.func @transform_0(%arg0: i32) -> (i32, i32) {
    %c0_i32 = arith.constant 0 : i32
    %c0_i32_0 = arith.constant 0 : i32
    return %c0_i32, %arg0 : i32, i32
  }
  func.func @transform_1(%arg0: i32) -> (i32, i32, i32) {
    %c0_i32 = arith.constant 0 : i32
    %c0_i32_0 = arith.constant 0 : i32
    %c0_i32_1 = arith.constant 0 : i32
    %c0_i32_2 = arith.constant 0 : i32
    return %c0_i32, %c0_i32_0, %c0_i32_1 : i32, i32, i32
  }
  func.func @transform_2(%arg0: i32) -> (i32, i32) {
    %c0_i32 = arith.constant 0 : i32
    %c0_i32_0 = arith.constant 0 : i32
    %c0_i32_1 = arith.constant 0 : i32
    return %c0_i32, %c0_i32_0 : i32, i32
  }
  func.func @transform_3(%arg0: i32) -> (i32, i32) {
    %c0_i32 = arith.constant 0 : i32
    %c0_i32_0 = arith.constant 0 : i32
    return %c0_i32, %arg0 : i32, i32
  }
}

</mosaic_0001>

<bundles_post_ra>
// kernel: tpu_custom_call.1
= control target key start
LH: loop header
LB: loop body
LE: loop exit
PB: predicated region body
PF: predicated region fallthrough
CT: control target
= control target key end

     0   :  { %8 = vsyncpa [#allocation3], 0  ;;  %s5981_s0 = inlined_call_operand.vmem [shape: f32[1,1024], index: 0, kind: input, shape index: {}]   ;;  %s5982_s1 = inlined_call_operand.hbm [shape: f32[3,56,56], index: 1, kind: input, shape index: {}]   ;;  %s5983_s2 = inlined_call_operand.vmem [shape: f32[56,16], index: 2, kind: input, shape index: {}]   ;;  %s5984_s3 = inlined_call_operand.hbm [shape: f32[1,1024], index: 3, kind: output, shape index: {}]  }
   0x1   :  { %9 = vsyncpa [#allocation4], 0 }
   0x2   :  { %11 = vsyncpa [#allocation4 + $0x1], 0  ;;  %s3538_s12 = smov 0   ;;  %s3540_s13 = smov 0  }
   0x3   :  { %s3542_s14 = smov 0   ;;  %s3544_s15 = smov 0  }
   0x4 LB: > { %s3559_s16 = sadd.s32 4294967295, %s3497_s15   ;;  %s3128_s17 = sadd.s32 4294967294, %s3497_s15   ;;  %s3497_s15 = sphi %s3544_s15, %s6201_s15   ;;  %s3493_s14 = sphi %s3542_s14, %s6200_s14   ;;  %s3489_s13 = sphi %s3540_s13, %s6199_s13   ;;  %s3485_s12 = sphi %s3538_s12, %s6198_s12  }
   0x5   : > { %s3563_s18 = sadd.s32 1, %s3497_s15   ;;  %s92_s19 = sadd.s32 1, %s3493_s14 }
   0x6   : > { %s89_s20 = ssub.s32 %s3497_s15, %s3563_s18  ;;  %p102_p0 = scmp.ne.s32.totalorder %s3493_s14, %s3489_s13 }
   0x7   : > { %p90_p1 = scmp.eq.s32.totalorder %s89_s20, 0  ;;  %p103_p2 = scmp.eq.s32.totalorder %s3559_s16, 1 }
   0x8   : > { %p108_p3 = scmp.ne.s32.totalorder %s3489_s13, %s3485_s12  ;;  %p109_p4 = scmp.eq.s32.totalorder %s3128_s17, 1 }
   0x9   : > { %s3574_s21 = scalar_select %p90_p1, %s3493_s14, %s92_s19  }
   0xa   : > { %p3576_p5 = por %p103_p2, %p102_p0  ;;  %p3580_p6 = por %p109_p4, %p108_p3 }
   0xb   : > { %p3129_p7 = scmp.ge.s32.totalorder %s3497_s15, 1  ;;  %p116_p8 = scmp.lt.s32.totalorder %s3497_s15, 3 }
   0xc   : > { %p3238_p9 = scmp.eq.s32.totalorder %s3559_s16, 0  ;;  %s127_s26 = sshll.u32 %s5982_s1, 4  ;;  %s128_s26 = int_to_ptr.hbm [resolvable:$true] %s127_s26 }
   0xd   : > { %p117_p10 = pnand %p3129_p7, %p116_p8  ;;  %s3499_s27 = smov [#allocation2]  }
   0xe   : > { %s129_s28 = sshll.u32 %s3499_s27, 4  ;;  %s3500_s29 = smov 128   ;;  %s130_s28 = int_to_ptr.vmem [resolvable:$true] %s129_s28 }
   0xf   : > { %p3230_p11 = pneg %p117_p10  ;;  %s3501_s30 = smov 8  }
  0x10   : > { %156 = sbr.rel (%p117_p10) target bundleno = 1221 (0x4c5), region = 32 }
  0x11   : > { %p3231_p12 = pnand %p3238_p9, %p3230_p11 }
  0x13   : > { %3233 = dma.hbm_to_vmem [thread:$0]  (!%p3231_p12), %s128_s26, 2688, %s130_s28, [#allocation3], %s3500_s29, %s3500_s29, %s3501_s30  }
  0x15   : > { %3476 = dma.done.wait (%p3238_p9), [#allocation3], 2688  }
  0x16   : > { %3478 = vsyncadd (%p3238_p9), [#allocation3], 4294964608  ;;  %v3502_v0 = vmov 0   ;;  %v3503_v1 = vmov 1   ;;  %v189_v2 = vld [vmem:[%s5983_s2 + $0x10] sm:$0xff]  ;;  %v187_v3 = vld [vmem:[%s5983_s2] sm:$0xff] }
  0x17   : > { %3293 = vset.pattern.permute.xlu1 %v3502_v0  ;;  %3292 = vset.pattern.permute.xlu0 %v3502_v0  ;;  %v188_v4 = vld [vmem:[%s5983_s2 + $0x8] sm:$0xff]  ;;  %v190_v5 = vld [vmem:[%s5983_s2 + $0x18] sm:$0xff]  ;;  %v191_v6 = vld [vmem:[%s5983_s2 + $0x20] sm:$0xff]  ;;  %v3504_v9 = vmov 15   ;;  %v3505_v10 = vmov 5   ;;  %v3506_v11 = vmov 9  }
  0x18   : > { %3295 = vset.pattern.permute.xlu2 %v3503_v1  ;;  %206 = vperm.xlu1 %3293, %v189_v2   ;;  %v192_v7 = vld [vmem:[%s5983_s2 + $0x28] sm:$0xff]  ;;  %v193_v8 = vld [vmem:[%s5983_s2 + $0x30] sm:$0xff]  ;;  %s3618_s27 = sshll.u32 %s3559_s16, 2  ;;  %vm869_vm12 = vcmask 457728   ;;  %s177_s10 = sand.u32 1, %s3489_s13  }
  0x19   : > { %196 = vperm.xlu0 %3292, %v187_v3   ;;  %271 = vperm.xlu2 %3295, %v188_v4   ;;  %p181_p13 = scmp.lt.s32.totalorder %s3618_s27, 7  ;;  %s3134_s11 = sshll.u32 %s177_s10, 2 }
  0x1a   : > { %s3055_s20 = scalar_lea.hbm %s5984_s3, %s3618_s27  ;;  %s179_s24 = scalar_lea.vmem [#allocation5], %s3134_s11 }
  0x1b   : > { %s182_s28 = scalar_select %p181_p13, %s3618_s27, 7 }
  0x1c   : > { %s3057_s25 = sshll.u32 %s179_s24, 4  ;;  %s3059_s26 = sshll.u32 %s3055_s20, 4  ;;  %s3058_s25 = int_to_ptr.vmem [resolvable:$true] %s3057_s25  ;;  %s3060_s26 = int_to_ptr.hbm [resolvable:$true] %s3059_s26 }
  0x1d   : > { %s183_s4 = scalar_lea.vmem %s5981_s0, %s182_s28  ;;  %s3045_s27 = scalar_lea.sflag [#allocation4], %s177_s10 }
  0x1e   : > { %v186_v17 = vld [vmem:[%s183_s4] sm:$0xf]  ;;  %s3445_s28 = sshra.s32 %s3060_s26, 4  ;;  %s3451_s16 = scalar_lea.hbm %s5984_s3, 8  ;;  %s3446_s28 = int_to_ptr.hbm [resolvable:$true] %s3445_s28 }
  0x1f   : > { %v3625_v19 = vperm.slane %v186_v17, 0  ;;  %v3627_v20 = vperm.slane %v186_v17, 1  ;;  %v3629_v21 = vperm.slane %v186_v17, 2  ;;  %v3631_v22 = vperm.slane %v186_v17, 3  ;;  %s3447_s29 = scalar_lea.hbm %s3446_s28, 4  ;;  %p3452_p3 = scmp.lt.s32.totalorder %s3446_s28, %s5984_s3 }
  0x20   : > { %3294 = vset.pattern.permute.xlu1 %v3503_v1  ;;  %p3448_p0 = scmp.ne.s32.totalorder %s3446_s28, %s3447_s29  ;;  %p3453_p4 = scmp.lt.s32.totalorder %s3451_s16, %s3447_s29 }
  0x21   : > { %201 = vperm.xlu0 %3292, %v188_v4   ;;  %267 = vperm.xlu1 %3294, %v187_v3  }
  0x22   : > { %3296 = vset.pattern.permute.xlu2 %v3502_v0  ;;  %p3449_p1 = pnand %p3448_p0, %p3576_p5  ;;  %p3454_p7 = por %p3453_p4, %p3452_p3 }
  0x23   : > { %211 = vperm.xlu2 %3296, %v190_v5  }
  0x24   : > { %p3450_p2 = pneg %p3449_p1 }
  0x26   : > { %p3455_p8 = pnand %p3454_p7, %p3450_p2 }
  0x29   : > { %3297 = vset.pattern.permute.xlu0 %v3503_v1  ;;  %3298 = vset.pattern.permute.xlu1 %v3502_v0 }
  0x2a   : > { %275 = vperm.xlu0 %3297, %v189_v2   ;;  %216 = vperm.xlu1 %3298, %v191_v6  }
  0x2b   : > { %3299 = vset.pattern.permute.xlu2 %v3503_v1 }
  0x2c   : > { %279 = vperm.xlu2 %3299, %v190_v5  }
  0x32   : > { %3300 = vset.pattern.permute.xlu0 %v3502_v0  ;;  %221 = vperm.xlu1 %3298, %v192_v7  }
  0x33   : > { %226 = vperm.xlu0 %3300, %v193_v8  }
  0x34   : > { %283 = vperm.xlu2 %3299, %v191_v6  }
  0x3a   : > { %3301 = vset.pattern.permute.xlu1 %v3503_v1 }
  0x3b   : > { %3304 = vset.pattern.permute.xlu0 %v3504_v9  ;;  %287 = vperm.xlu1 %3301, %v192_v7  }
  0x3c   : > { %291 = vperm.xlu2 %3299, %v193_v8   ;;  %467 = vperm.xlu0 %3304, %v189_v2  }
  0x43   : > { %3302 = vset.pattern.permute.xlu1 %v3504_v9 }
  0x44   : > { %3303 = vset.pattern.permute.xlu2 %v3504_v9  ;;  %459 = vperm.xlu1 %3302, %v187_v3  }
  0x45   : > { %463 = vperm.xlu2 %3303, %v188_v4   ;;  %3305 = vset.pattern.permute.xlu0 %v3505_v10 }
  0x46   : > { %663 = vperm.xlu0 %3305, %v193_v8  }
  0x4c   : > { %471 = vperm.xlu1 %3302, %v190_v5  }
  0x4d   : > { %475 = vperm.xlu2 %3303, %v191_v6  }
  0x4e   : > { %651 = vperm.xlu0 %3305, %v190_v5  }
  0x54   : > { %479 = vperm.xlu1 %3302, %v192_v7  }
  0x55   : > { %483 = vperm.xlu2 %3303, %v193_v8  }
  0x56   : > { %3310 = vset.pattern.permute.xlu0 %v3506_v11 }
  0x57   : > { %707 = vperm.xlu0 %3310, %v190_v5  }
  0x5c   : > { %3306 = vset.pattern.permute.xlu1 %v3505_v10 }
  0x5d   : > { %3307 = vset.pattern.permute.xlu2 %v3506_v11  ;;  %659 = vperm.xlu1 %3306, %v192_v7  }
  0x5e   : > { %719 = vperm.xlu2 %3307, %v193_v8  }
  0x5f   : > { %695 = vperm.xlu0 %3310, %v187_v3  }
  0x65   : > { %655 = vperm.xlu1 %3306, %v191_v6  }
  0x66   : > { %715 = vperm.xlu2 %3307, %v192_v7  }
  0x6d   : > { %3308 = vset.pattern.permute.xlu1 %v3506_v11 }
  0x6e   : > { %3309 = vset.pattern.permute.xlu2 %v3505_v10  ;;  %711 = vperm.xlu1 %3308, %v191_v6  }
  0x6f   : > { %647 = vperm.xlu2 %3309, %v189_v2  }
  0x73   : > { %v272_v12 = vpop.permute.xlu2 %271 }
  0x76   : > { %3311 = vset.pattern.permute.xlu1 %v3505_v10 }
  0x77   : > { %3312 = vset.pattern.permute.xlu2 %v3506_v11  ;;  %643 = vperm.xlu1 %3311, %v188_v4  }
  0x78   : > { %703 = vperm.xlu2 %3312, %v189_v2  }
  0x7d   : > { %v212_v15 = vpop.permute.xlu2 %211 }
  0x7e   : > { %v250_v46 = vmul.f32 %v3625_v19, %v212_v15  ;;  %v251_v47 = vmul.f32 %v3627_v20, %v212_v15  ;;  %v252_v48 = vmul.f32 %v3629_v21, %v212_v15  ;;  %v253_v49 = vmul.f32 %v3631_v22, %v212_v15 }
  0x7f   : > { %639 = vperm.xlu1 %3311, %v187_v3  }
  0x80   : > { %699 = vperm.xlu2 %3312, %v188_v4  }
  0x86   : > { %v280_v27 = vpop.permute.xlu2 %279 }
  0x87   : > { %v3689_v7 = vadd.f32 %v280_v27, %v250_v46  ;;  %v3691_v8 = vadd.f32 %v280_v27, %v251_v47  ;;  %v3693_v9 = vadd.f32 %v280_v27, %v252_v48  ;;  %v3695_v10 = vadd.f32 %v280_v27, %v253_v49 }
  0x8a   : > { %v207_v13 = vpop.permute.xlu1 %206 }
  0x8b   : > { %v197_v14 = vpop.permute.xlu0 %196  ;;  %v246_v32 = vmul.f32 %v3625_v19, %v207_v13  ;;  %v247_v33 = vmul.f32 %v3627_v20, %v207_v13  ;;  %v248_v34 = vmul.f32 %v3629_v21, %v207_v13  ;;  %v249_v35 = vmul.f32 %v3631_v22, %v207_v13 }
  0x8c   : > { %v238_v23 = vmul.f32 %v3625_v19, %v197_v14  ;;  %v239_v24 = vmul.f32 %v3627_v20, %v197_v14  ;;  %v240_v25 = vmul.f32 %v3629_v21, %v197_v14  ;;  %v241_v26 = vmul.f32 %v3631_v22, %v197_v14 }
  0x8e   : > { %v284_v62 = vpop.permute.xlu2 %283 }
  0x93   : > { %v202_v16 = vpop.permute.xlu0 %201  ;;  %v268_v18 = vpop.permute.xlu1 %267 }
  0x94   : > { %v242_v28 = vmul.f32 %v3625_v19, %v202_v16  ;;  %v243_v29 = vmul.f32 %v3627_v20, %v202_v16  ;;  %v244_v30 = vmul.f32 %v3629_v21, %v202_v16  ;;  %v245_v31 = vmul.f32 %v3631_v22, %v202_v16 }
  0x95   : > { %v3645_v36 = vadd.f32 %v268_v18, %v238_v23  ;;  %v3647_v37 = vadd.f32 %v268_v18, %v239_v24  ;;  %v3649_v38 = vadd.f32 %v268_v18, %v240_v25  ;;  %v3651_v39 = vadd.f32 %v268_v18, %v241_v26 }
  0x96   : > { %v3653_v42 = vadd.f32 %v272_v12, %v242_v28  ;;  %v3655_v43 = vadd.f32 %v272_v12, %v243_v29  ;;  %v3657_v44 = vadd.f32 %v272_v12, %v244_v30  ;;  %v3659_v45 = vadd.f32 %v272_v12, %v245_v31 }
  0x97   : > { %v322_v54 = vmax.f32 %v3645_v36, 0.0  ;;  %v323_v55 = vmax.f32 %v3647_v37, 0.0  ;;  %v324_v56 = vmax.f32 %v3649_v38, 0.0  ;;  %v325_v57 = vmax.f32 %v3651_v39, 0.0 }
  0x98   : > { %v326_v58 = vmax.f32 %v3653_v42, 0.0  ;;  %v327_v59 = vmax.f32 %v3655_v43, 0.0  ;;  %v328_v60 = vmax.f32 %v3657_v44, 0.0  ;;  %v329_v61 = vmax.f32 %v3659_v45, 0.0 }
  0x99   : > { %v5998_v29 = vmax.f32 %v3689_v7, 0.0  ;;  %v5996_v30 = vmax.f32 %v3691_v8, 0.0  ;;  %v5985_v31 = vmax.f32 %v3693_v9, 0.0  ;;  %v6095_v45 = vmax.f32 %v3689_v7, 0.0 }
  0x9a   : > { %v350_v12 = vadd.f32 %v326_v58, %v322_v54  ;;  %v362_v13 = vadd.f32 %v327_v59, %v323_v55  ;;  %v374_v14 = vadd.f32 %v328_v60, %v324_v56  ;;  %v386_v15 = vadd.f32 %v329_v61, %v325_v57 }
  0x9c   : > { %v276_v40 = vpop.permute.xlu0 %275  ;;  %v217_v41 = vpop.permute.xlu1 %216 }
  0x9d   : > { %v3665_v50 = vadd.f32 %v276_v40, %v246_v32  ;;  %v3667_v51 = vadd.f32 %v276_v40, %v247_v33  ;;  %v3669_v52 = vadd.f32 %v276_v40, %v248_v34  ;;  %v3671_v53 = vadd.f32 %v276_v40, %v249_v35 }
  0x9e   : > { %v254_v63 = vmul.f32 %v3625_v19, %v217_v41  ;;  %v255_v0 = vmul.f32 %v3627_v20, %v217_v41  ;;  %v256_v1 = vmul.f32 %v3629_v21, %v217_v41  ;;  %v257_v2 = vmul.f32 %v3631_v22, %v217_v41 }
  0x9f   : > { %v6004_v3 = vmax.f32 %v3665_v50, 0.0  ;;  %v6003_v4 = vmax.f32 %v3667_v51, 0.0  ;;  %v6002_v5 = vmax.f32 %v3669_v52, 0.0  ;;  %v6000_v6 = vmax.f32 %v3671_v53, 0.0 }
  0xa0   : > { %v3713_v16 = vadd.f32 %v284_v62, %v254_v63  ;;  %v3715_v17 = vadd.f32 %v284_v62, %v255_v0  ;;  %v3717_v18 = vadd.f32 %v284_v62, %v256_v1  ;;  %v3719_v23 = vadd.f32 %v284_v62, %v257_v2  ;;  %v292_v1 = vpop.permute.xlu2 %291 }
  0xa1   : > { %v351_v25 = vadd.f32 %v350_v12, %v6004_v3  ;;  %v363_v26 = vadd.f32 %v362_v13, %v6003_v4  ;;  %v375_v27 = vadd.f32 %v374_v14, %v6002_v5  ;;  %v387_v28 = vadd.f32 %v386_v15, %v6000_v6 }
  0xa2   : > { %v5994_v32 = vmax.f32 %v3695_v10, 0.0  ;;  %v5992_v41 = vmax.f32 %v3713_v16, 0.0  ;;  %v5990_v46 = vmax.f32 %v3715_v17, 0.0  ;;  %v5987_v47 = vmax.f32 %v3717_v18, 0.0 }
  0xa3   : > { %v5986_v48 = vmax.f32 %v3719_v23, 0.0  ;;  %v352_v49 = vadd.f32 %v351_v25, %v5998_v29  ;;  %v364_v62 = vadd.f32 %v363_v26, %v5996_v30  ;;  %v376_v63 = vadd.f32 %v375_v27, %v5985_v31 }
  0xa4   : > { %v222_v11 = vpop.permute.xlu1 %221  ;;  %v388_v0 = vadd.f32 %v387_v28, %v5994_v32  ;;  %v6091_v42 = vmax.f32 %v3665_v50, 0.0  ;;  %v6092_v39 = vmax.f32 %v3667_v51, 0.0  ;;  %v6093_v43 = vmax.f32 %v3669_v52, 0.0 }
  0xa5   : > { %v227_v24 = vpop.permute.xlu0 %226  ;;  %v258_v2 = vmul.f32 %v3625_v19, %v222_v11  ;;  %v259_v12 = vmul.f32 %v3627_v20, %v222_v11  ;;  %v260_v13 = vmul.f32 %v3629_v21, %v222_v11  ;;  %v261_v14 = vmul.f32 %v3631_v22, %v222_v11 }
  0xa6   : > { %v262_v33 = vmul.f32 %v3625_v19, %v227_v24  ;;  %v263_v34 = vmul.f32 %v3627_v20, %v227_v24  ;;  %v264_v35 = vmul.f32 %v3629_v21, %v227_v24  ;;  %v265_v40 = vmul.f32 %v3631_v22, %v227_v24 }
  0xa7   : > { %v353_v21 = vadd.f32 %v352_v49, %v5992_v41  ;;  %v365_v22 = vadd.f32 %v364_v62, %v5990_v46  ;;  %v377_v11 = vadd.f32 %v376_v63, %v5987_v47  ;;  %v6094_v44 = vmax.f32 %v3671_v53, 0.0 }
  0xa8   : > { %v3753_v15 = vadd.f32 %v292_v1, %v262_v33  ;;  %v3755_v24 = vadd.f32 %v292_v1, %v263_v34  ;;  %v3757_v25 = vadd.f32 %v292_v1, %v264_v35  ;;  %v3759_v26 = vadd.f32 %v292_v1, %v265_v40 }
  0xa9   : > { %v389_v33 = vadd.f32 %v388_v0, %v5986_v48  ;;  %v6096_v50 = vmax.f32 %v3691_v8, 0.0  ;;  %v6097_v51 = vmax.f32 %v3693_v9, 0.0  ;;  %v6098_v52 = vmax.f32 %v3695_v10, 0.0 }
  0xaa   : > { %v5997_v49 = vmax.f32 %v3755_v24, 0.0  ;;  %v5999_v62 = vmax.f32 %v3757_v25, 0.0  ;;  %v6100_v53 = vmax.f32 %v3713_v16, 0.0  ;;  %v6101_v7 = vmax.f32 %v3715_v17, 0.0 }
  0xab   : > { %v6102_v8 = vmax.f32 %v3717_v18, 0.0  ;;  %v6103_v9 = vmax.f32 %v3719_v23, 0.0 }
  0xad   : > { %v288_v27 = vpop.permute.xlu1 %287 }
  0xae   : > { %v3761_v31 = vadd.f32 %v288_v27, %v258_v2  ;;  %v3763_v28 = vadd.f32 %v288_v27, %v259_v12  ;;  %v3765_v19 = vadd.f32 %v288_v27, %v260_v13  ;;  %v3767_v20 = vadd.f32 %v288_v27, %v261_v14 }
  0xaf   : > { %v5995_v2 = vmax.f32 %v3753_v15, 0.0  ;;  %v6001_v12 = vmax.f32 %v3759_v26, 0.0 }
  0xb0   : > { %v5988_v34 = vmax.f32 %v3761_v31, 0.0  ;;  %v5989_v35 = vmax.f32 %v3763_v28, 0.0  ;;  %v5991_v40 = vmax.f32 %v3765_v19, 0.0  ;;  %v5993_v1 = vmax.f32 %v3767_v20, 0.0 }
  0xb1   : > { %v6104_v10 = vmax.f32 %v3761_v31, 0.0  ;;  %v6105_v16 = vmax.f32 %v3763_v28, 0.0  ;;  %v6106_v17 = vmax.f32 %v3765_v19, 0.0  ;;  %v6107_v18 = vmax.f32 %v3767_v20, 0.0 }
  0xb2   : > { %v354_v63 = vadd.f32 %v353_v21, %v5988_v34  ;;  %v366_v0 = vadd.f32 %v365_v22, %v5989_v35  ;;  %v378_v13 = vadd.f32 %v377_v11, %v5991_v40  ;;  %v390_v14 = vadd.f32 %v389_v33, %v5993_v1 }
  0xb4   : > { %v355_v27 = vadd.f32 %v354_v63, %v5995_v2  ;;  %v367_v48 = vadd.f32 %v366_v0, %v5997_v49  ;;  %v379_v47 = vadd.f32 %v378_v13, %v5999_v62  ;;  %v391_v21 = vadd.f32 %v390_v14, %v6001_v12 }
  0xb6   : > { %v356_v34 = vrot.slane %v355_v27, 4  ;;  %v368_v22 = vrot.slane %v367_v48, 4  ;;  %v380_v35 = vrot.slane %v379_v47, 4  ;;  %v392_v46 = vrot.slane %v391_v21, 4 }
  0xb8   : > { %v357_v11 = vadd.f32 %v356_v34, %v355_v27  ;;  %v369_v40 = vadd.f32 %v368_v22, %v367_v48  ;;  %v381_v41 = vadd.f32 %v380_v35, %v379_v47  ;;  %v393_v33 = vadd.f32 %v392_v46, %v391_v21  ;;  %v3801_v35 = vpop.permute.xlu1 %459 }
  0xb9   : > { %6085 = vst [vmem:[#allocation8_spill] sm:$0xff] %v3801_v35 }
  0xba   : > { %v358_v1 = vrot.slane %v357_v11, 2  ;;  %v370_v32 = vrot.slane %v369_v40, 2  ;;  %v382_v63 = vrot.slane %v381_v41, 2  ;;  %v394_v2 = vrot.slane %v393_v33, 2 }
  0xbc   : > { %v359_v30 = vadd.f32 %v358_v1, %v357_v11  ;;  %v371_v0 = vadd.f32 %v370_v32, %v369_v40  ;;  %v383_v49 = vadd.f32 %v382_v63, %v381_v41  ;;  %v395_v29 = vadd.f32 %v394_v2, %v393_v33 }
  0xbe   : > { %v360_v13 = vrot.slane %v359_v30, 1  ;;  %v372_v62 = vrot.slane %v371_v0, 1  ;;  %v384_v6 = vrot.slane %v383_v49, 1  ;;  %v396_v14 = vrot.slane %v395_v29, 1 }
  0xc0   : > { %v361_v12 = vadd.f32 %v360_v13, %v359_v30  ;;  %v373_v5 = vadd.f32 %v372_v62, %v371_v0  ;;  %v385_v4 = vadd.f32 %v384_v6, %v383_v49  ;;  %v397_v3 = vadd.f32 %v396_v14, %v395_v29 }
  0xc2   : > { %v398_v34 = vmul.f32 0.02, %v361_v12  ;;  %v399_v48 = vmul.f32 0.02, %v373_v5  ;;  %v400_v47 = vmul.f32 0.02, %v385_v4  ;;  %v3867_v4 = vpop.permute.xlu2 %463 }
  0xc3   : > { %v401_v46 = vmul.f32 0.02, %v397_v3  ;;  %6099 = vst [vmem:[#allocation14_spill] sm:$0xff] %v3867_v4 }
  0xc4   : > { %v3805_v1 = vsub.f32 %v322_v54, %v398_v34  ;;  %v3809_v32 = vsub.f32 %v323_v55, %v399_v48  ;;  %v3813_v30 = vsub.f32 %v324_v56, %v400_v47  ;;  %v3817_v6 = vsub.f32 %v326_v58, %v398_v34 }
  0xc5   : > { %v3821_v3 = vsub.f32 %v325_v57, %v401_v46  ;;  %v3825_v36 = vsub.f32 %v327_v59, %v399_v48  ;;  %v3829_v37 = vsub.f32 %v328_v60, %v400_v47  ;;  %v3833_v38 = vsub.f32 %v329_v61, %v401_v46 }
  0xc6   : > { %6086 = vst [vmem:[#allocation9_spill] sm:$0xff] %v3805_v1  ;;  %v3837_v54 = vsub.f32 %v6091_v42, %v398_v34  ;;  %v3841_v55 = vsub.f32 %v6092_v39, %v399_v48  ;;  %v3845_v56 = vsub.f32 %v6093_v43, %v400_v47  ;;  %v3849_v57 = vsub.f32 %v6094_v44, %v401_v46  ;;  %v3933_v43 = vpop.permute.xlu1 %471 }
  0xc7   : > { %6087 = vst [vmem:[#allocation10_spill] sm:$0xff] %v3809_v32  ;;  %v3853_v58 = vsub.f32 %v6095_v45, %v398_v34  ;;  %v3857_v59 = vsub.f32 %v6096_v50, %v399_v48  ;;  %v3861_v60 = vsub.f32 %v6097_v51, %v400_v47  ;;  %v3865_v61 = vsub.f32 %v6098_v52, %v401_v46 }
  0xc8   : > { %6088 = vst [vmem:[#allocation11_spill] sm:$0xff] %v3813_v30  ;;  %v3871_v5 = vsub.f32 %v6100_v53, %v398_v34  ;;  %v3875_v29 = vsub.f32 %v6101_v7, %v399_v48  ;;  %v3879_v41 = vsub.f32 %v6102_v8, %v400_v47  ;;  %v3883_v40 = vsub.f32 %v6103_v9, %v401_v46 }
  0xc9   : > { %6089 = vst [vmem:[#allocation12_spill] sm:$0xff] %v3821_v3  ;;  %v3887_v2 = vsub.f32 %v6104_v10, %v398_v34  ;;  %v3891_v49 = vsub.f32 %v6105_v16, %v399_v48  ;;  %v3895_v62 = vsub.f32 %v6106_v17, %v400_v47  ;;  %v3899_v12 = vsub.f32 %v6107_v18, %v401_v46 }
  0xca   : > { %6090 = vst [vmem:[#allocation13_spill] sm:$0xff] %v3833_v38  ;;  %v430_v23 = vmul.f32 %v3805_v1, %v3805_v1  ;;  %v431_v31 = vmul.f32 %v3809_v32, %v3809_v32  ;;  %v432_v27 = vmul.f32 %v3813_v30, %v3813_v30  ;;  %v433_v28 = vmul.f32 %v3821_v3, %v3821_v3 }
  0xcb   : > { %v434_v19 = vmul.f32 %v3817_v6, %v3817_v6  ;;  %v435_v20 = vmul.f32 %v3825_v36, %v3825_v36  ;;  %v436_v21 = vmul.f32 %v3829_v37, %v3829_v37  ;;  %v437_v22 = vmul.f32 %v3833_v38, %v3833_v38  ;;  %6108 = vst [vmem:[#allocation15_spill] sm:$0xff] %v3933_v43 }
  0xcc   : > { %v438_v11 = vmul.f32 %v3837_v54, %v3837_v54  ;;  %v439_v33 = vmul.f32 %v3841_v55, %v3841_v55  ;;  %v440_v63 = vmul.f32 %v3845_v56, %v3845_v56  ;;  %v441_v0 = vmul.f32 %v3849_v57, %v3849_v57 }
  0xcd   : > { %v442_v13 = vmul.f32 %v3853_v58, %v3853_v58  ;;  %v443_v14 = vmul.f32 %v3857_v59, %v3857_v59  ;;  %v444_v42 = vmul.f32 %v3861_v60, %v3861_v60  ;;  %v445_v39 = vmul.f32 %v3865_v61, %v3865_v61 }
  0xce   : > { %v450_v44 = vmul.f32 %v3887_v2, %v3887_v2  ;;  %v451_v45 = vmul.f32 %v3891_v49, %v3891_v49  ;;  %v452_v50 = vmul.f32 %v3895_v62, %v3895_v62  ;;  %v453_v51 = vmul.f32 %v3899_v12, %v3899_v12  ;;  %v3995_v1 = vpop.permute.xlu1 %479 }
  0xcf   : > { %v6109_v52 = vmax.f32 %v3753_v15, 0.0  ;;  %v6111_v7 = vmax.f32 %v3755_v24, 0.0  ;;  %v6113_v9 = vmax.f32 %v3757_v25, 0.0  ;;  %v6115_v16 = vmax.f32 %v3759_v26, 0.0  ;;  %v3965_v24 = vpop.permute.xlu0 %467  ;;  %6119 = vst [vmem:[#allocation22_spill] sm:$0xff] %v3995_v1 }
  0xd0   : > { %v486_v18 = vmul.f32 %v3801_v35, %v430_v23  ;;  %v487_v3 = vmul.f32 %v3801_v35, %v431_v31  ;;  %v488_v15 = vmul.f32 %v3801_v35, %v432_v27  ;;  %6118 = vst [vmem:[#allocation21_spill] sm:$0xff] %v3965_v24  ;;  %v490_v25 = vmul.f32 %v3867_v4, %v434_v19 }
  0xd1   : > { %v3945_v53 = vsub.f32 %v6109_v52, %v398_v34  ;;  %v3949_v8 = vsub.f32 %v6111_v7, %v399_v48  ;;  %v3953_v10 = vsub.f32 %v6113_v9, %v400_v47  ;;  %v3957_v17 = vsub.f32 %v6115_v16, %v401_v46  ;;  %v3963_v52 = vpop.permute.xlu2 %475 }
  0xd2   : > { %v489_v34 = vmul.f32 %v3801_v35, %v433_v28  ;;  %6117 = vst [vmem:[#allocation20_spill] sm:$0xff] %v3963_v52  ;;  %v491_v48 = vmul.f32 %v3867_v4, %v435_v20  ;;  %v492_v26 = vmul.f32 %v3867_v4, %v436_v21  ;;  %v493_v47 = vmul.f32 %v3867_v4, %v437_v22 }
  0xd3   : > { %6110 = vst [vmem:[#allocation16_spill] sm:$0xff] %v3945_v53  ;;  %v446_v46 = vmul.f32 %v3871_v5, %v3871_v5  ;;  %v447_v23 = vmul.f32 %v3875_v29, %v3875_v29  ;;  %v448_v31 = vmul.f32 %v3879_v41, %v3879_v41  ;;  %v449_v27 = vmul.f32 %v3883_v40, %v3883_v40 }
  0xd4   : > { %6112 = vst [vmem:[#allocation17_spill] sm:$0xff] %v3949_v8  ;;  %v454_v28 = vmul.f32 %v3945_v53, %v3945_v53  ;;  %v455_v19 = vmul.f32 %v3949_v8, %v3949_v8  ;;  %v456_v20 = vmul.f32 %v3953_v10, %v3953_v10  ;;  %v457_v21 = vmul.f32 %v3957_v17, %v3957_v17 }
  0xd5   : > { %6114 = vst [vmem:[#allocation18_spill] sm:$0xff] %v3953_v10  ;;  %v494_v22 = vmul.f32 %v3965_v24, %v438_v11  ;;  %v495_v7 = vmul.f32 %v3965_v24, %v439_v33  ;;  %v496_v9 = vmul.f32 %v3965_v24, %v440_v63  ;;  %v497_v16 = vmul.f32 %v3965_v24, %v441_v0 }
  0xd6   : > { %6116 = vst [vmem:[#allocation19_spill] sm:$0xff] %v3957_v17  ;;  %v514_v4 = vadd.f32 %v490_v25, %v486_v18  ;;  %v526_v35 = vadd.f32 %v491_v48, %v487_v3  ;;  %v538_v53 = vadd.f32 %v492_v26, %v488_v15  ;;  %v550_v30 = vadd.f32 %v493_v47, %v489_v34 }
  0xd7   : > { %v498_v8 = vmul.f32 %v3933_v43, %v442_v13  ;;  %v499_v32 = vmul.f32 %v3933_v43, %v443_v14  ;;  %v500_v10 = vmul.f32 %v3933_v43, %v444_v42  ;;  %v501_v17 = vmul.f32 %v3933_v43, %v445_v39 }
  0xd8   : > { %v515_v11 = vadd.f32 %v514_v4, %v494_v22  ;;  %v527_v33 = vadd.f32 %v526_v35, %v495_v7  ;;  %v539_v38 = vadd.f32 %v538_v53, %v496_v9  ;;  %v551_v63 = vadd.f32 %v550_v30, %v497_v16 }
  0xd9   : > { %v502_v0 = vmul.f32 %v3963_v52, %v446_v46  ;;  %v503_v3 = vmul.f32 %v3963_v52, %v447_v23  ;;  %v504_v18 = vmul.f32 %v3963_v52, %v448_v31  ;;  %v505_v13 = vmul.f32 %v3963_v52, %v449_v27  ;;  %v4005_v4 = vpop.permute.xlu2 %483 }
  0xda   : > { %v516_v15 = vadd.f32 %v515_v11, %v498_v8  ;;  %v528_v14 = vadd.f32 %v527_v33, %v499_v32  ;;  %v540_v34 = vadd.f32 %v539_v38, %v500_v10  ;;  %v552_v42 = vadd.f32 %v551_v63, %v501_v17  ;;  %6120 = vst [vmem:[#allocation23_spill] sm:$0xff] %v4005_v4  ;;  %v4011_v33 = vpop.permute.xlu1 %659 }
  0xdb   : > { %v506_v39 = vmul.f32 %v3995_v1, %v450_v44  ;;  %v507_v25 = vmul.f32 %v3995_v1, %v451_v45  ;;  %v508_v35 = vmul.f32 %v3995_v1, %v452_v50  ;;  %v509_v30 = vmul.f32 %v3995_v1, %v453_v51 }
  0xdc   : > { %v517_v53 = vadd.f32 %v516_v15, %v502_v0  ;;  %v529_v48 = vadd.f32 %v528_v14, %v503_v3  ;;  %v541_v26 = vadd.f32 %v540_v34, %v504_v18  ;;  %v553_v47 = vadd.f32 %v552_v42, %v505_v13 }
  0xdd   : > { %v510_v46 = vmul.f32 %v4005_v4, %v454_v28  ;;  %v511_v32 = vmul.f32 %v4005_v4, %v455_v19  ;;  %v512_v38 = vmul.f32 %v4005_v4, %v456_v20  ;;  %v513_v44 = vmul.f32 %v4005_v4, %v457_v21 }
  0xde   : > { %v518_v8 = vadd.f32 %v517_v53, %v506_v39  ;;  %v530_v45 = vadd.f32 %v529_v48, %v507_v25  ;;  %v542_v10 = vadd.f32 %v541_v26, %v508_v35  ;;  %v554_v50 = vadd.f32 %v553_v47, %v509_v30 }
  0xe0   : > { %v519_v17 = vadd.f32 %v518_v8, %v510_v46  ;;  %v531_v51 = vadd.f32 %v530_v45, %v511_v32  ;;  %v543_v23 = vadd.f32 %v542_v10, %v512_v38  ;;  %v555_v31 = vadd.f32 %v554_v50, %v513_v44 }
  0xe1   : > { %v4015_v10 = vpop.permute.xlu2 %719 }
  0xe2   : > { %v520_v27 = vrot.slane %v519_v17, 4  ;;  %v532_v22 = vrot.slane %v531_v51, 4  ;;  %v544_v7 = vrot.slane %v543_v23, 4  ;;  %v556_v9 = vrot.slane %v555_v31, 4  ;;  %v4013_v32 = vpop.permute.xlu1 %655 }
  0xe4   : > { %v521_v16 = vadd.f32 %v520_v27, %v519_v17  ;;  %v533_v28 = vadd.f32 %v532_v22, %v531_v51  ;;  %v545_v11 = vadd.f32 %v544_v7, %v543_v23  ;;  %v557_v19 = vadd.f32 %v556_v9, %v555_v31 }
  0xe6   : > { %v522_v20 = vrot.slane %v521_v16, 2  ;;  %v534_v21 = vrot.slane %v533_v28, 2  ;;  %v546_v63 = vrot.slane %v545_v11, 2  ;;  %v558_v0 = vrot.slane %v557_v19, 2 }
  0xe8   : > { %v523_v3 = vadd.f32 %v522_v20, %v521_v16  ;;  %v535_v18 = vadd.f32 %v534_v21, %v533_v28  ;;  %v547_v13 = vadd.f32 %v546_v63, %v545_v11  ;;  %v559_v15 = vadd.f32 %v558_v0, %v557_v19 }
  0xea   : > { %v524_v14 = vrot.slane %v523_v3, 1  ;;  %v536_v34 = vrot.slane %v535_v18, 1  ;;  %v548_v42 = vrot.slane %v547_v13, 1  ;;  %v560_v39 = vrot.slane %v559_v15, 1  ;;  %v4017_v23 = vpop.permute.xlu1 %711 }
  0xec   : > { %v525_v25 = vadd.f32 %v524_v14, %v523_v3  ;;  %v537_v35 = vadd.f32 %v536_v34, %v535_v18  ;;  %v549_v30 = vadd.f32 %v548_v42, %v547_v13  ;;  %v561_v53 = vadd.f32 %v560_v39, %v559_v15  ;;  %v4019_v3 = vpop.permute.xlu2 %715  ;;  %v4021_v34 = vpop.permute.xlu0 %663 }
  0xee   : > { %v562_v48 = vmul.f32 0.02, %v525_v25  ;;  %v563_v26 = vmul.f32 0.02, %v537_v35  ;;  %v564_v47 = vmul.f32 0.02, %v549_v30 }
  0xef   : > { %v565_v46 = vmul.f32 0.02, %v561_v53 }
  0xf0   : > { %v566_v38 = vadd.f32 1e-05, %v562_v48  ;;  %v567_v44 = vadd.f32 1e-05, %v563_v26  ;;  %v568_v8 = vadd.f32 1e-05, %v564_v47 }
  0xf1   : > { %v569_v45 = vadd.f32 1e-05, %v565_v46 }
  0xf2   : > { %3348 = vrsqrt.f32 %v566_v38  ;;  %vm576_vm2 = vweird.f32 %v566_v38  ;;  %vm586_vm5 = vweird.f32 %v567_v44  ;;  %vm596_vm8 = vweird.f32 %v568_v8  ;;  %v644_v30 = vpop.permute.xlu1 %643 }
  0xf3   : > { %3350 = vrsqrt.f32 %v567_v44  ;;  %vm606_vm9 = vweird.f32 %v569_v45 }
  0xf4   : > { %3352 = vrsqrt.f32 %v568_v8 }
  0xf5   : > { %3354 = vrsqrt.f32 %v569_v45 }
  0xf8   : > { %v3349_v50 = vpop.eup %3348 }
  0xf9   : > { %v3351_v17 = vpop.eup %3350  ;;  %v571_v51 = vmul.f32 %v3349_v50, %v566_v38  ;;  %vm577_vm0 = vweird.f32 %v3349_v50 }
  0xfa   : > { %v3353_v31 = vpop.eup %3352  ;;  %v581_v27 = vmul.f32 %v3351_v17, %v567_v44  ;;  %vm587_vm1 = vweird.f32 %v3351_v17  ;;  %vm578_vm4 = vmor %vm576_vm2, %vm577_vm0 }
  0xfb   : > { %v3355_v22 = vpop.eup %3354  ;;  %v572_v7 = vmul.f32 %v3349_v50, %v571_v51  ;;  %v591_v9 = vmul.f32 %v3353_v31, %v568_v8  ;;  %vm597_vm3 = vweird.f32 %v3353_v31  ;;  %vm588_vm7 = vmor %vm586_vm5, %vm587_vm1 }
  0xfc   : > { %v582_v16 = vmul.f32 %v3351_v17, %v581_v27  ;;  %v601_v28 = vmul.f32 %v3355_v22, %v569_v45  ;;  %vm607_vm6 = vweird.f32 %v3355_v22  ;;  %vm598_vm10 = vmor %vm596_vm8, %vm597_vm3 }
  0xfd   : > { %v573_v11 = vmul.f32 0.5, %v572_v7  ;;  %v592_v19 = vmul.f32 %v3353_v31, %v591_v9  ;;  %vm608_vm11 = vmor %vm606_vm9, %vm607_vm6 }
  0xfe   : > { %v583_v20 = vmul.f32 0.5, %v582_v16  ;;  %v602_v21 = vmul.f32 %v3355_v22, %v601_v28 }
  0xff   : > { %v574_v63 = vsub.f32 1.5, %v573_v11  ;;  %v593_v0 = vmul.f32 0.5, %v592_v19 }
 0x100   : > { %v584_v18 = vsub.f32 1.5, %v583_v20  ;;  %v603_v13 = vmul.f32 0.5, %v602_v21 }
 0x101   : > { %v575_v15 = vmul.f32 %v3349_v50, %v574_v63  ;;  %v594_v14 = vsub.f32 1.5, %v593_v0 }
 0x102   : > { %v585_v42 = vmul.f32 %v3351_v17, %v584_v18  ;;  %v604_v39 = vsub.f32 1.5, %v603_v13  ;;  %v6121_v18 = vld [vmem:[#allocation13_spill] sm:$0xff] }
 0x103   : > { %v579_v25 = vsel %vm578_vm4, %v3349_v50, %v575_v15  ;;  %v595_v35 = vmul.f32 %v3353_v31, %v594_v14  ;;  %v640_v15 = vpop.permute.xlu1 %639  ;;  %v6122_v14 = vld [vmem:[#allocation9_spill] sm:$0xff] }
 0x104   : > { %v589_v53 = vsel %vm588_vm7, %v3351_v17, %v585_v42  ;;  %v605_v48 = vmul.f32 %v3355_v22, %v604_v39  ;;  %v630_v26 = vmul.f32 %v579_v25, %v3887_v2  ;;  %v626_v47 = vmul.f32 %v579_v25, %v3871_v5  ;;  %v6123_v39 = vld [vmem:[#allocation10_spill] sm:$0xff] }
 0x105   : > { %v599_v46 = vsel %vm598_vm10, %v3353_v31, %v595_v35  ;;  %v631_v38 = vmul.f32 %v589_v53, %v3891_v49  ;;  %v627_v44 = vmul.f32 %v589_v53, %v3875_v29  ;;  %v618_v50 = vmul.f32 %v579_v25, %v3837_v54 }
 0x106   : > { %v609_v51 = vsel %vm608_vm11, %v3355_v22, %v605_v48  ;;  %v632_v8 = vmul.f32 %v599_v46, %v3895_v62  ;;  %v686_v45 = vmul.f32 %v4011_v33, %v630_v26  ;;  %v628_v17 = vmul.f32 %v599_v46, %v3879_v41  ;;  %v648_v22 = vpop.permute.xlu2 %647  ;;  %v6124_v48 = vld [vmem:[#allocation11_spill] sm:$0xff] }
 0x107   : > { %v633_v27 = vmul.f32 %v609_v51, %v3899_v12  ;;  %v687_v2 = vmul.f32 %v4011_v33, %v631_v38  ;;  %v629_v5 = vmul.f32 %v609_v51, %v3883_v40  ;;  %v4035_v31 = vmul.f32 %v4013_v32, %v626_v47  ;;  %v6125_v47 = vld [vmem:[#allocation12_spill] sm:$0xff] }
 0x108   : > { %v688_v29 = vmul.f32 %v4011_v33, %v632_v8  ;;  %v4039_v54 = vmul.f32 %v4013_v32, %v627_v44  ;;  %v4042_v49 = vmul.f32 %v4013_v32, %v628_v17  ;;  %v619_v62 = vmul.f32 %v589_v53, %v3841_v55  ;;  %v6127_v17 = vld [vmem:[#allocation17_spill] sm:$0xff] }
 0x109   : > { %v689_v41 = vmul.f32 %v4011_v33, %v633_v27  ;;  %v4047_v12 = vmul.f32 %v4013_v32, %v629_v5  ;;  %v620_v40 = vmul.f32 %v599_v46, %v3845_v56  ;;  %v621_v7 = vmul.f32 %v609_v51, %v3849_v57  ;;  %v652_v33 = vpop.permute.xlu0 %651 }
 0x10a   : > { %v4051_v9 = vmul.f32 %v648_v22, %v618_v50  ;;  %v4053_v16 = vmul.f32 %v648_v22, %v619_v62  ;;  %v622_v28 = vmul.f32 %v579_v25, %v3853_v58  ;;  %v623_v11 = vmul.f32 %v589_v53, %v3857_v59  ;;  %v6126_v50 = vld [vmem:[#allocation16_spill] sm:$0xff] }
 0x10b   : > { %v4057_v19 = vmul.f32 %v648_v22, %v620_v40  ;;  %v4059_v55 = vmul.f32 %v648_v22, %v621_v7  ;;  %v624_v32 = vmul.f32 %v599_v46, %v3861_v60  ;;  %v625_v20 = vmul.f32 %v609_v51, %v3865_v61  ;;  %v6128_v22 = vld [vmem:[#allocation18_spill] sm:$0xff] }
 0x10c   : > { %v4063_v56 = vmul.f32 %v652_v33, %v622_v28  ;;  %v4065_v57 = vmul.f32 %v652_v33, %v623_v11  ;;  %v614_v21 = vmul.f32 %v579_v25, %v3817_v6  ;;  %v615_v63 = vmul.f32 %v589_v53, %v3825_v36 }
 0x10d   : > { %v4069_v58 = vmul.f32 %v652_v33, %v624_v32  ;;  %v4071_v59 = vmul.f32 %v652_v33, %v625_v20  ;;  %v616_v0 = vmul.f32 %v599_v46, %v3829_v37  ;;  %v617_v13 = vmul.f32 %v609_v51, %v6121_v18 }
 0x10e   : > { %v4075_v60 = vmul.f32 %v644_v30, %v614_v21  ;;  %v4077_v61 = vmul.f32 %v644_v30, %v615_v63  ;;  %v610_v42 = vmul.f32 %v579_v25, %v6122_v14  ;;  %v611_v35 = vmul.f32 %v589_v53, %v6123_v39  ;;  %v4111_v39 = vpop.permute.xlu2 %703 }
 0x10f   : > { %v4081_v6 = vmul.f32 %v644_v30, %v616_v0  ;;  %v4083_v36 = vmul.f32 %v644_v30, %v617_v13  ;;  %v612_v26 = vmul.f32 %v599_v46, %v6124_v48  ;;  %v613_v38 = vmul.f32 %v609_v51, %v6125_v47  ;;  %v6129_v30 = vld [vmem:[#allocation19_spill] sm:$0xff] }
 0x110   : > { %v4087_v37 = vmul.f32 %v640_v15, %v610_v42  ;;  %v4089_v44 = vmul.f32 %v640_v15, %v611_v35  ;;  %v634_v8 = vmul.f32 %v579_v25, %v6126_v50  ;;  %v635_v27 = vmul.f32 %v589_v53, %v6127_v17 }
 0x111   : > { %v4093_v5 = vmul.f32 %v640_v15, %v612_v26  ;;  %v4095_v62 = vmul.f32 %v640_v15, %v613_v38  ;;  %v636_v40 = vmul.f32 %v599_v46, %v6128_v22  ;;  %v637_v7 = vmul.f32 %v609_v51, %v6129_v30 }
 0x112   : > { %v690_v28 = vmul.f32 %v4021_v34, %v634_v8  ;;  %v691_v11 = vmul.f32 %v4021_v34, %v635_v27  ;;  %v742_v33 = vadd.f32 %v4019_v3, %v686_v45  ;;  %v743_v32 = vadd.f32 %v4019_v3, %v687_v2 }
 0x113   : > { %v692_v25 = vmul.f32 %v4021_v34, %v636_v40  ;;  %v693_v53 = vmul.f32 %v4021_v34, %v637_v7  ;;  %v744_v20 = vadd.f32 %v4019_v3, %v688_v29  ;;  %v745_v21 = vadd.f32 %v4019_v3, %v689_v41  ;;  %v708_v7 = vpop.permute.xlu0 %707 }
 0x114   : > { %v746_v46 = vadd.f32 %v4015_v10, %v690_v28  ;;  %v747_v51 = vadd.f32 %v4015_v10, %v691_v11  ;;  %v770_v63 = vmax.f32 %v742_v33, 0.0  ;;  %v771_v0 = vmax.f32 %v743_v32, 0.0 }
 0x115   : > { %v748_v18 = vadd.f32 %v4015_v10, %v692_v25  ;;  %v749_v45 = vadd.f32 %v4015_v10, %v693_v53  ;;  %v772_v13 = vmax.f32 %v744_v20, 0.0  ;;  %v773_v2 = vmax.f32 %v745_v21, 0.0 }
 0x116   : > { %v774_v15 = vmax.f32 %v746_v46, 0.0  ;;  %v775_v14 = vmax.f32 %v747_v51, 0.0  ;;  %v798_v42 = vmul.f32 %v770_v63, %v770_v63  ;;  %v799_v34 = vmul.f32 %v771_v0, %v771_v0 }
 0x117   : > { %v776_v29 = vmax.f32 %v748_v18, 0.0  ;;  %v777_v3 = vmax.f32 %v749_v45, 0.0  ;;  %v800_v41 = vmul.f32 %v772_v13, %v772_v13  ;;  %v801_v35 = vmul.f32 %v773_v2, %v773_v2 }
 0x118   : > { %v802_v48 = vmul.f32 %v774_v15, %v774_v15  ;;  %v803_v26 = vmul.f32 %v775_v14, %v775_v14  ;;  %v826_v47 = vmul.f32 %v798_v42, %v770_v63  ;;  %v827_v38 = vmul.f32 %v799_v34, %v771_v0 }
 0x119   : > { %v804_v50 = vmul.f32 %v776_v29, %v776_v29  ;;  %v805_v8 = vmul.f32 %v777_v3, %v777_v3  ;;  %v828_v17 = vmul.f32 %v800_v41, %v772_v13  ;;  %v829_v10 = vmul.f32 %v801_v35, %v773_v2 }
 0x11a   : > { %v830_v27 = vmul.f32 %v802_v48, %v774_v15  ;;  %v831_v22 = vmul.f32 %v803_v26, %v775_v14  ;;  %v738_v40 = vadd.f32 %v4017_v23, %v4035_v31  ;;  %v739_v30 = vadd.f32 %v4017_v23, %v4039_v54  ;;  %v700_v14 = vpop.permute.xlu2 %699 }
 0x11b   : > { %v832_v28 = vmul.f32 %v804_v50, %v776_v29  ;;  %v833_v11 = vmul.f32 %v805_v8, %v777_v3  ;;  %v740_v33 = vadd.f32 %v4017_v23, %v4042_v49  ;;  %v741_v32 = vadd.f32 %v4017_v23, %v4047_v12 }
 0x11c   : > { %900 = vmatpush.msra.mxu0 %v830_v27  ;;  %938 = vmatpush.msra.mxu1 %v831_v22  ;;  %v766_v25 = vmax.f32 %v738_v40, 0.0  ;;  %v767_v53 = vmax.f32 %v739_v30, 0.0  ;;  %v734_v20 = vadd.f32 %v708_v7, %v4063_v56  ;;  %v735_v31 = vadd.f32 %v708_v7, %v4065_v57 }
 0x11d   : > { %976 = vmatpush.msra.mxu2 %v832_v28  ;;  %1014 = vmatpush.msra.mxu3 %v833_v11  ;;  %v768_v54 = vmax.f32 %v740_v33, 0.0  ;;  %v769_v21 = vmax.f32 %v741_v32, 0.0  ;;  %v736_v46 = vadd.f32 %v708_v7, %v4069_v58  ;;  %v737_v51 = vadd.f32 %v708_v7, %v4071_v59 }
 0x11e   : > { %901 = vmatpush.msra.mxu0 %v826_v47  ;;  %939 = vmatpush.msra.mxu1 %v827_v38  ;;  %v794_v49 = vmul.f32 %v766_v25, %v766_v25  ;;  %v795_v23 = vmul.f32 %v767_v53, %v767_v53  ;;  %v762_v12 = vmax.f32 %v734_v20, 0.0  ;;  %v763_v63 = vmax.f32 %v735_v31, 0.0 }
 0x11f   : > { %977 = vmatpush.msra.mxu2 %v828_v17  ;;  %1015 = vmatpush.msra.mxu3 %v829_v10  ;;  %v796_v0 = vmul.f32 %v768_v54, %v768_v54  ;;  %v797_v56 = vmul.f32 %v769_v21, %v769_v21  ;;  %v764_v18 = vmax.f32 %v736_v46, 0.0  ;;  %v765_v57 = vmax.f32 %v737_v51, 0.0 }
 0x120   : > { %v822_v45 = vmul.f32 %v794_v49, %v766_v25  ;;  %v823_v13 = vmul.f32 %v795_v23, %v767_v53  ;;  %v790_v2 = vmul.f32 %v762_v12, %v762_v12  ;;  %v791_v15 = vmul.f32 %v763_v63, %v763_v63 }
 0x121   : > { %v824_v58 = vmul.f32 %v796_v0, %v768_v54  ;;  %v825_v42 = vmul.f32 %v797_v56, %v769_v21  ;;  %v792_v59 = vmul.f32 %v764_v18, %v764_v18  ;;  %v793_v34 = vmul.f32 %v765_v57, %v765_v57  ;;  %v4152_v54 = vld [vmem:[%s5983_s2 + $0x8] sm:$0xff] }
 0x122   : > { %902 = vmatpush.msra.mxu0 %v822_v45  ;;  %940 = vmatpush.msra.mxu1 %v823_v13  ;;  %v818_v29 = vmul.f32 %v790_v2, %v762_v12  ;;  %v819_v3 = vmul.f32 %v791_v15, %v763_v63  ;;  %v730_v41 = vadd.f32 %v4111_v39, %v4051_v9  ;;  %v3507_v7 = vmov 2  }
 0x123   : > { %978 = vmatpush.msra.mxu2 %v824_v58  ;;  %1016 = vmatpush.msra.mxu3 %v825_v42  ;;  %v820_v35 = vmul.f32 %v792_v59, %v764_v18  ;;  %v821_v48 = vmul.f32 %v793_v34, %v765_v57  ;;  %v731_v26 = vadd.f32 %v4111_v39, %v4053_v16  ;;  %v3384_v59 = vld [vmem:[%s5983_s2 + $0x20] sm:$0xff] }
 0x124   : > { %903 = vmatpush.msra.mxu0 %v818_v29  ;;  %941 = vmatpush.msra.mxu1 %v819_v3  ;;  %v758_v47 = vmax.f32 %v730_v41, 0.0  ;;  %v732_v38 = vadd.f32 %v4111_v39, %v4057_v19  ;;  %v733_v50 = vadd.f32 %v4111_v39, %v4059_v55  ;;  %v726_v8 = vadd.f32 %v700_v14, %v4075_v60  ;;  %v696_v19 = vpop.permute.xlu0 %695  ;;  %v3385_v3 = vld [vmem:[%s5983_s2 + $0x28] sm:$0xff] }
 0x125   : > { %979 = vmatpush.msra.mxu2 %v820_v35  ;;  %1017 = vmatpush.msra.mxu3 %v821_v48  ;;  %v759_v9 = vmax.f32 %v731_v26, 0.0  ;;  %v727_v17 = vadd.f32 %v700_v14, %v4077_v61  ;;  %v728_v10 = vadd.f32 %v700_v14, %v4081_v6  ;;  %v729_v16 = vadd.f32 %v700_v14, %v4083_v36  ;;  %v4140_v61 = vld [vmem:[%s5983_s2] sm:$0xff]  ;;  %v4146_v6 = vld [vmem:[%s5983_s2 + $0x10] sm:$0xff]  ;;  %v835_v41 = vld [vmem:[#allocation2 + $0x8] sm:$0xff] }
 0x126   : > { %v786_v27 = vmul.f32 %v758_v47, %v758_v47  ;;  %v760_v22 = vmax.f32 %v732_v38, 0.0  ;;  %v761_v40 = vmax.f32 %v733_v50, 0.0  ;;  %v754_v30 = vmax.f32 %v726_v8, 0.0  ;;  %3313 = vset.pattern.permute.xlu1 %v3507_v7  ;;  %3315 = vset.pattern.permute.xlu0 %v3507_v7  ;;  %v3386_v35 = vld [vmem:[%s5983_s2 + $0x30] sm:$0xff]  ;;  %v838_v50 = vld [vmem:[#allocation2 + $0x20] sm:$0xff]  ;;  %v839_v8 = vld [vmem:[#allocation2 + $0x28] sm:$0xff] }
 0x127   : > { %v787_v55 = vmul.f32 %v759_v9, %v759_v9  ;;  %v755_v39 = vmax.f32 %v727_v17, 0.0  ;;  %v756_v60 = vmax.f32 %v728_v10, 0.0  ;;  %v757_v28 = vmax.f32 %v729_v16, 0.0  ;;  %842 = vperm.xlu1 %3313, %v4140_v61   ;;  %850 = vperm.xlu0 %3315, %v4146_v6   ;;  %v836_v48 = vld [vmem:[#allocation2 + $0x10] sm:$0xff] }
 0x128   : > { %v814_v36 = vmul.f32 %v786_v27, %v758_v47  ;;  %v788_v11 = vmul.f32 %v760_v22, %v760_v22  ;;  %v789_v33 = vmul.f32 %v761_v40, %v761_v40  ;;  %v782_v32 = vmul.f32 %v754_v30, %v754_v30  ;;  %3314 = vset.pattern.permute.xlu2 %v3507_v7  ;;  %v837_v47 = vld [vmem:[#allocation2 + $0x18] sm:$0xff] }
 0x129   : > { %v815_v25 = vmul.f32 %v787_v55, %v759_v9  ;;  %v783_v53 = vmul.f32 %v755_v39, %v755_v39  ;;  %v784_v20 = vmul.f32 %v756_v60, %v756_v60  ;;  %v785_v31 = vmul.f32 %v757_v28, %v757_v28  ;;  %846 = vperm.xlu2 %3314, %v4152_v54   ;;  %v840_v9 = vld [vmem:[#allocation2 + $0x30] sm:$0xff] }
 0x12a   : > { %904 = vmatpush.msra.mxu0 %v814_v36  ;;  %v816_v21 = vmul.f32 %v788_v11, %v760_v22  ;;  %v817_v46 = vmul.f32 %v789_v33, %v761_v40  ;;  %v722_v51 = vadd.f32 %v696_v19, %v4087_v37  ;;  %v810_v49 = vmul.f32 %v782_v32, %v754_v30 }
 0x12b   : > { %942 = vmatpush.msra.mxu1 %v815_v25  ;;  %v811_v23 = vmul.f32 %v783_v53, %v755_v39  ;;  %v812_v12 = vmul.f32 %v784_v20, %v756_v60  ;;  %v723_v63 = vadd.f32 %v696_v19, %v4089_v44  ;;  %v813_v0 = vmul.f32 %v785_v31, %v757_v28  ;;  %v3383_v44 = vld [vmem:[%s5983_s2 + $0x18] sm:$0xff] }
 0x12c   : > { %980 = vmatpush.msra.mxu2 %v816_v21  ;;  %1018 = vmatpush.msra.mxu3 %v817_v46  ;;  %v750_v56 = vmax.f32 %v722_v51, 0.0  ;;  %v724_v18 = vadd.f32 %v696_v19, %v4093_v5  ;;  %v725_v57 = vadd.f32 %v696_v19, %v4095_v62  ;;  %v834_v5 = vld [vmem:[#allocation2] sm:$0xff]  ;;  %v3508_v26 = vmov 6  }
 0x12d   : > { %905 = vmatpush.msra.mxu0 %v810_v49  ;;  %943 = vmatpush.msra.mxu1 %v811_v23  ;;  %v751_v45 = vmax.f32 %v723_v63, 0.0  ;;  %v3509_v38 = vmov 10  }
 0x12e   : > { %981 = vmatpush.msra.mxu2 %v812_v12  ;;  %1019 = vmatpush.msra.mxu3 %v813_v0  ;;  %v778_v37 = vmul.f32 %v750_v56, %v750_v56  ;;  %v752_v13 = vmax.f32 %v724_v18, 0.0  ;;  %v753_v2 = vmax.f32 %v725_v57, 0.0 }
 0x12f   : > { %v779_v15 = vmul.f32 %v751_v45, %v751_v45  ;;  %854 = vperm.xlu1 %3313, %v3383_v44   ;;  %3316 = vset.pattern.permute.xlu0 %v3508_v26 }
 0x130   : > { %v806_v14 = vmul.f32 %v778_v37, %v750_v56  ;;  %v780_v58 = vmul.f32 %v752_v13, %v752_v13  ;;  %v781_v42 = vmul.f32 %v753_v2, %v753_v2  ;;  %1356 = vperm.xlu0 %3316, %v3386_v35  }
 0x131   : > { %v807_v62 = vmul.f32 %v779_v15, %v751_v45  ;;  %858 = vperm.xlu2 %3314, %v3384_v59  }
 0x132   : > { %906 = vmatpush.msra.mxu0 %v806_v14  ;;  %v808_v34 = vmul.f32 %v780_v58, %v752_v13  ;;  %v809_v29 = vmul.f32 %v781_v42, %v753_v2 }
 0x133   : > { %944 = vmatpush.msra.mxu1 %v807_v62  ;;  %3136 = vmatmul.msk.f32.vlgmr.msra.gmra.mxu0 %vm869_vm12, %v834_v5 }
 0x134   : > { %982 = vmatpush.msra.mxu2 %v808_v34  ;;  %1020 = vmatpush.msra.mxu3 %v809_v29 }
 0x135   : > { %3143 = vmatmul.msk.f32.vlgmr.msra.gmra.mxu1 %vm869_vm12, %v834_v5  ;;  %3150 = vmatmul.msk.f32.vlgmr.msra.gmra.mxu2 %vm869_vm12, %v834_v5 }
 0x136   : > { %3157 = vmatmul.msk.f32.vlgmr.msra.gmra.mxu3 %vm869_vm12, %v834_v5 }
 0x137   : > { %862 = vperm.xlu1 %3313, %v3385_v3  }
 0x138   : > { %1344 = vperm.xlu0 %3316, %v3383_v44  }
 0x139   : > { %866 = vperm.xlu2 %3314, %v3386_v35  }
 0x13b   : > { %3137 = vmatmul.msk.f32.gmra.mxu0 %vm869_vm12, %v835_v41 }
 0x13d   : > { %3144 = vmatmul.msk.f32.gmra.mxu1 %vm869_vm12, %v835_v41  ;;  %3151 = vmatmul.msk.f32.gmra.mxu2 %vm869_vm12, %v835_v41 }
 0x13e   : > { %3158 = vmatmul.msk.f32.gmra.mxu3 %vm869_vm12, %v835_v41 }
 0x13f   : > { %3317 = vset.pattern.permute.xlu1 %v3508_v26 }
 0x140   : > { %1352 = vperm.xlu1 %3317, %v3385_v3   ;;  %3321 = vset.pattern.permute.xlu0 %v3509_v38 }
 0x141   : > { %3318 = vset.pattern.permute.xlu2 %v3509_v38  ;;  %1400 = vperm.xlu0 %3321, %v3383_v44  }
 0x142   : > { %1412 = vperm.xlu2 %3318, %v3386_v35  }
 0x143   : > { %3138 = vmatmul.msk.f32.gmra.mxu0 %vm869_vm12, %v836_v48 }
 0x145   : > { %3145 = vmatmul.msk.f32.gmra.mxu1 %vm869_vm12, %v836_v48  ;;  %3152 = vmatmul.msk.f32.gmra.mxu2 %vm869_vm12, %v836_v48 }
 0x146   : > { %3159 = vmatmul.msk.f32.gmra.mxu3 %vm869_vm12, %v836_v48 }
 0x148   : > { %1348 = vperm.xlu1 %3317, %v3384_v59  }
 0x149   : > { %1388 = vperm.xlu0 %3321, %v4140_v61  }
 0x14a   : > { %1408 = vperm.xlu2 %3318, %v3385_v3  }
 0x14b   : > { %3139 = vmatmul.msk.f32.gmra.mxu0 %vm869_vm12, %v837_v47 }
 0x14d   : > { %3146 = vmatmul.msk.f32.gmra.mxu1 %vm869_vm12, %v837_v47  ;;  %3153 = vmatmul.msk.f32.gmra.mxu2 %vm869_vm12, %v837_v47 }
 0x14e   : > { %3160 = vmatmul.msk.f32.gmra.mxu3 %vm869_vm12, %v837_v47 }
 0x150   : > { %3319 = vset.pattern.permute.xlu1 %v3509_v38 }
 0x151   : > { %1404 = vperm.xlu1 %3319, %v3384_v59  }
 0x152   : > { %3320 = vset.pattern.permute.xlu2 %v3508_v26 }
 0x153   : > { %3140 = vmatmul.msk.f32.gmra.mxu0 %vm869_vm12, %v838_v50  ;;  %1340 = vperm.xlu2 %3320, %v4146_v6  }
 0x155   : > { %3147 = vmatmul.msk.f32.gmra.mxu1 %vm869_vm12, %v838_v50  ;;  %3154 = vmatmul.msk.f32.gmra.mxu2 %vm869_vm12, %v838_v50 }
 0x156   : > { %3161 = vmatmul.msk.f32.gmra.mxu3 %vm869_vm12, %v838_v50 }
 0x159   : > { %3322 = vset.pattern.permute.xlu1 %v3508_v26 }
 0x15a   : > { %1336 = vperm.xlu1 %3322, %v4152_v54  }
 0x15b   : > { %3141 = vmatmul.msk.f32.gmra.mxu0 %vm869_vm12, %v839_v8  ;;  %3323 = vset.pattern.permute.xlu2 %v3509_v38 }
 0x15c   : > { %1396 = vperm.xlu2 %3323, %v4146_v6  }
 0x15d   : > { %3148 = vmatmul.msk.f32.gmra.mxu1 %vm869_vm12, %v839_v8  ;;  %3155 = vmatmul.msk.f32.gmra.mxu2 %vm869_vm12, %v839_v8 }
 0x15e   : > { %3162 = vmatmul.msk.f32.gmra.mxu3 %vm869_vm12, %v839_v8 }
 0x162   : > { %1332 = vperm.xlu1 %3322, %v4140_v61  }
 0x163   : > { %3142 = vmatmul.msk.f32.gmra.mxu0 %vm869_vm12, %v840_v9 }
 0x164   : > { %1392 = vperm.xlu2 %3323, %v4152_v54  }
 0x165   : > { %3149 = vmatmul.msk.f32.gmra.mxu1 %vm869_vm12, %v840_v9  ;;  %3156 = vmatmul.msk.f32.gmra.mxu2 %vm869_vm12, %v840_v9 }
 0x166   : > { %3163 = vmatmul.msk.f32.gmra.mxu3 %vm869_vm12, %v840_v9 }
 0x183   : > { %v847_v11 = vpop.permute.xlu2 %846 }
 0x18b   : > { %v859_v12 = vpop.permute.xlu2 %858 }
 0x199   : > { %v843_v6 = vpop.permute.xlu1 %842  ;;  %v851_v53 = vpop.permute.xlu0 %850 }
 0x1a1   : > { %v855_v21 = vpop.permute.xlu1 %854 }
 0x1a9   : > { %v863_v62 = vpop.permute.xlu1 %862 }
 0x1b0   : > { %v908_v17 = vpop.f32.mrf.mxu0 }
 0x1b1   : > { %v4205_v33 = vadd.f32 %v908_v17, %v843_v6 }
 0x1b2   : > { %v946_v10 = vpop.f32.mrf.mxu1 }
 0x1b3   : > { %v4209_v31 = vadd.f32 %v946_v10, %v843_v6  ;;  %v1043_v51 = vmax.f32 %v4205_v33, 0.0 }
 0x1b5   : > { %v1044_v63 = vmax.f32 %v4209_v31, 0.0 }
 0x1b8   : > { %v984_v16 = vpop.f32.mrf.mxu2  ;;  %v911_v27 = vpop.f32.mrf.mxu0 }
 0x1b9   : > { %v1022_v22 = vpop.f32.mrf.mxu3  ;;  %v4207_v61 = vadd.f32 %v911_v27, %v847_v11  ;;  %v4232_v14 = vadd.f32 %v984_v16, %v843_v6  ;;  %v867_v27 = vpop.permute.xlu2 %866 }
 0x1ba   : > { %v949_v40 = vpop.f32.mrf.mxu1  ;;  %v4248_v35 = vadd.f32 %v1022_v22, %v843_v6 }
 0x1bb   : > { %v4211_v54 = vadd.f32 %v949_v40, %v847_v11  ;;  %v1047_v49 = vmax.f32 %v4207_v61, 0.0  ;;  %v6022_v50 = vmax.f32 %v4232_v14, 0.0 }
 0x1bc   : > { %v6020_v40 = vmax.f32 %v4248_v35, 0.0 }
 0x1bd   : > { %v1048_v0 = vmax.f32 %v4211_v54, 0.0  ;;  %v1071_v45 = vadd.f32 %v1047_v49, %v1043_v51 }
 0x1bf   : > { %v1083_v5 = vadd.f32 %v1048_v0, %v1044_v63 }
 0x1c0   : > { %v987_v30 = vpop.f32.mrf.mxu2  ;;  %v914_v7 = vpop.f32.mrf.mxu0 }
 0x1c1   : > { %v1025_v19 = vpop.f32.mrf.mxu3  ;;  %v4215_v23 = vadd.f32 %v914_v7, %v851_v53  ;;  %v4234_v58 = vadd.f32 %v987_v30, %v847_v11 }
 0x1c2   : > { %v952_v55 = vpop.f32.mrf.mxu1  ;;  %v4250_v48 = vadd.f32 %v1025_v19, %v847_v11 }
 0x1c3   : > { %v4219_v56 = vadd.f32 %v952_v55, %v851_v53  ;;  %v1051_v18 = vmax.f32 %v4215_v23, 0.0  ;;  %v6018_v8 = vmax.f32 %v4234_v58, 0.0 }
 0x1c4   : > { %v6019_v30 = vmax.f32 %v4250_v48, 0.0 }
 0x1c5   : > { %v1052_v42 = vmax.f32 %v4219_v56, 0.0  ;;  %v1072_v29 = vadd.f32 %v1071_v45, %v1051_v18 }
 0x1c7   : > { %v1084_v10 = vadd.f32 %v1083_v5, %v1052_v42 }
 0x1c8   : > { %v990_v39 = vpop.f32.mrf.mxu2  ;;  %v917_v60 = vpop.f32.mrf.mxu0 }
 0x1c9   : > { %v1028_v28 = vpop.f32.mrf.mxu3  ;;  %v4222_v57 = vadd.f32 %v917_v60, %v855_v21  ;;  %v4258_v9 = vadd.f32 %v990_v39, %v851_v53 }
 0x1ca   : > { %v955_v36 = vpop.f32.mrf.mxu1  ;;  %v4268_v7 = vadd.f32 %v1028_v28, %v851_v53  ;;  %v1095_v28 = vadd.f32 %v6018_v8, %v6022_v50 }
 0x1cb   : > { %v4228_v2 = vadd.f32 %v955_v36, %v855_v21  ;;  %v1055_v34 = vmax.f32 %v4222_v57, 0.0 }
 0x1cd   : > { %v6031_v26 = vmax.f32 %v4228_v2, 0.0  ;;  %v1073_v17 = vadd.f32 %v1072_v29, %v1055_v34 }
 0x1cf   : > { %v1085_v60 = vadd.f32 %v1084_v10, %v6031_v26 }
 0x1d0   : > { %v993_v32 = vpop.f32.mrf.mxu2  ;;  %v920_v25 = vpop.f32.mrf.mxu0 }
 0x1d1   : > { %v1031_v20 = vpop.f32.mrf.mxu3  ;;  %v4230_v15 = vadd.f32 %v920_v25, %v859_v12  ;;  %v4270_v19 = vadd.f32 %v993_v32, %v855_v21  ;;  %v6021_v32 = vmax.f32 %v4258_v9, 0.0 }
 0x1d2   : > { %v958_v46 = vpop.f32.mrf.mxu1  ;;  %v4284_v53 = vadd.f32 %v1031_v20, %v855_v21  ;;  %v1107_v21 = vadd.f32 %v6019_v30, %v6020_v40 }
 0x1d3   : > { %v4244_v3 = vadd.f32 %v958_v46, %v859_v12  ;;  %v1059_v47 = vmax.f32 %v4230_v15, 0.0  ;;  %v6026_v10 = vmax.f32 %v4270_v19, 0.0 }
 0x1d5   : > { %v6024_v16 = vmax.f32 %v4244_v3, 0.0  ;;  %v1074_v6 = vadd.f32 %v1073_v17, %v1059_v47  ;;  %v6025_v17 = vmax.f32 %v4268_v7, 0.0 }
 0x1d8   : > { %v996_v37 = vpop.f32.mrf.mxu2  ;;  %v923_v13 = vpop.f32.mrf.mxu0 }
 0x1d9   : > { %v1034_v44 = vpop.f32.mrf.mxu3  ;;  %v4246_v41 = vadd.f32 %v923_v13, %v863_v62  ;;  %v4286_v46 = vadd.f32 %v996_v37, %v859_v12  ;;  %v1086_v13 = vadd.f32 %v1085_v60, %v6024_v16 }
 0x1da   : > { %v961_v59 = vpop.f32.mrf.mxu1 }
 0x1db   : > { %v4254_v38 = vadd.f32 %v961_v59, %v863_v62  ;;  %v1063_v22 = vmax.f32 %v4246_v41, 0.0 }
 0x1dd   : > { %v6023_v36 = vmax.f32 %v4254_v38, 0.0  ;;  %v1075_v5 = vadd.f32 %v1074_v6, %v1063_v22 }
 0x1df   : > { %v1087_v37 = vadd.f32 %v1086_v13, %v6023_v36  ;;  %v1108_v13 = vadd.f32 %v1107_v21, %v6025_v17 }
 0x1e0   : > { %v999_v55 = vpop.f32.mrf.mxu2  ;;  %v926_v39 = vpop.f32.mrf.mxu0 }
 0x1e1   : > { %v1037_v11 = vpop.f32.mrf.mxu3  ;;  %v4277_v25 = vadd.f32 %v926_v39, %v867_v27  ;;  %v4297_v39 = vadd.f32 %v1034_v44, %v859_v12  ;;  %v4299_v20 = vadd.f32 %v999_v55, %v863_v62  ;;  %v6028_v12 = vmax.f32 %v4284_v53, 0.0 }
 0x1e2   : > { %v964_v45 = vpop.f32.mrf.mxu1  ;;  %v6029_v44 = vmax.f32 %v4286_v46, 0.0  ;;  %v4314_v55 = vadd.f32 %v1037_v11, %v863_v62 }
 0x1e3   : > { %v1067_v59 = vmax.f32 %v4277_v25, 0.0  ;;  %v4293_v29 = vadd.f32 %v964_v45, %v867_v27  ;;  %v1096_v45 = vadd.f32 %v1095_v28, %v6021_v32  ;;  %v6030_v40 = vmax.f32 %v4297_v39, 0.0 }
 0x1e4   : > { %v6032_v28 = vmax.f32 %v4299_v20, 0.0  ;;  %v1109_v11 = vadd.f32 %v1108_v13, %v6028_v12  ;;  %v1066_v21 = vmax.f32 %v4314_v55, 0.0 }
 0x1e5   : > { %v1076_v60 = vadd.f32 %v1075_v5, %v1067_v59  ;;  %v6027_v6 = vmax.f32 %v4293_v29, 0.0  ;;  %v1097_v5 = vadd.f32 %v1096_v45, %v6026_v10 }
 0x1e7   : > { %v1077_v8 = vrot.slane %v1076_v60, 4  ;;  %v1088_v30 = vadd.f32 %v1087_v37, %v6027_v6  ;;  %v1098_v37 = vadd.f32 %v1097_v5, %v6029_v44 }
 0x1e8   : > { %v1002_v32 = vpop.f32.mrf.mxu2 }
 0x1e9   : > { %v1078_v50 = vadd.f32 %v1077_v8, %v1076_v60  ;;  %v1089_v36 = vrot.slane %v1088_v30, 4  ;;  %v4324_v16 = vadd.f32 %v1002_v32, %v867_v27  ;;  %v1040_v62 = vpop.f32.mrf.mxu3  ;;  %v1110_v8 = vadd.f32 %v1109_v11, %v6030_v40 }
 0x1ea   : > { %v4331_v17 = vadd.f32 %v1040_v62, %v867_v27  ;;  %v1099_v32 = vadd.f32 %v1098_v37, %v6032_v28 }
 0x1eb   : > { %v1079_v45 = vrot.slane %v1078_v50, 2  ;;  %v1090_v10 = vadd.f32 %v1089_v36, %v1088_v30  ;;  %v1069_v6 = vmax.f32 %v4324_v16, 0.0  ;;  %v1111_v5 = vadd.f32 %v1110_v8, %v1066_v21 }
 0x1ec   : > { %v1070_v60 = vmax.f32 %v4331_v17, 0.0  ;;  %v6144_v16 = vmax.f32 %v4268_v7, 0.0 }
 0x1ed   : > { %v1080_v13 = vadd.f32 %v1079_v45, %v1078_v50  ;;  %v1091_v12 = vrot.slane %v1090_v10, 2  ;;  %v1100_v27 = vadd.f32 %v1099_v32, %v1069_v6 }
 0x1ee   : > { %v1112_v36 = vadd.f32 %v1111_v5, %v1070_v60 }
 0x1ef   : > { %v1081_v62 = vrot.slane %v1080_v13, 1  ;;  %v1092_v30 = vadd.f32 %v1091_v12, %v1090_v10  ;;  %v1101_v40 = vrot.slane %v1100_v27, 4 }
 0x1f0   : > { %v1113_v28 = vrot.slane %v1112_v36, 4 }
 0x1f1   : > { %v1082_v44 = vadd.f32 %v1081_v62, %v1080_v13  ;;  %v1093_v11 = vrot.slane %v1092_v30, 1  ;;  %v1102_v33 = vadd.f32 %v1101_v40, %v1100_v27  ;;  %v6131_v40 = vld [vmem:[#allocation14_spill] sm:$0xff]  ;;  %v6132_v27 = vmax.f32 %v4228_v2, 0.0 }
 0x1f3   : > { %v1119_v26 = vmul.f32 0.02, %v1082_v44  ;;  %v1094_v37 = vadd.f32 %v1093_v11, %v1092_v30  ;;  %v1103_v41 = vrot.slane %v1102_v33, 2 }
 0x1f5   : > { %v4347_v50 = vsub.f32 %v1043_v51, %v1119_v26  ;;  %v4351_v45 = vsub.f32 %v1047_v49, %v1119_v26  ;;  %v4355_v10 = vsub.f32 %v1051_v18, %v1119_v26  ;;  %v4359_v12 = vsub.f32 %v1055_v34, %v1119_v26  ;;  %v6130_v34 = vld [vmem:[#allocation8_spill] sm:$0xff] }
 0x1f6   : > { %v4363_v44 = vsub.f32 %v1059_v47, %v1119_v26  ;;  %v1120_v8 = vmul.f32 0.02, %v1094_v37  ;;  %v1114_v18 = vadd.f32 %v1113_v28, %v1112_v36  ;;  %v4377_v57 = vsub.f32 %v1063_v22, %v1119_v26 }
 0x1f7   : > { %v1151_v51 = vmul.f32 %v4347_v50, %v4347_v50  ;;  %v1155_v61 = vmul.f32 %v4351_v45, %v4351_v45  ;;  %v1159_v49 = vmul.f32 %v4355_v10, %v4355_v10  ;;  %v1163_v15 = vmul.f32 %v4359_v12, %v4359_v12 }
 0x1f8   : > { %v4373_v23 = vsub.f32 %v1044_v63, %v1120_v8  ;;  %v4385_v13 = vsub.f32 %v1067_v59, %v1119_v26  ;;  %v1167_v31 = vmul.f32 %v4363_v44, %v4363_v44  ;;  %v4391_v63 = vsub.f32 %v1048_v0, %v1120_v8 }
 0x1f9   : > { %v1179_v47 = vmul.f32 %v1151_v51, %v6130_v34  ;;  %v1183_v32 = vmul.f32 %v1155_v61, %v6131_v40  ;;  %v1187_v22 = vmul.f32 %v1159_v49, %v3965_v24  ;;  %v4396_v5 = vsub.f32 %v1052_v42, %v1120_v8 }
 0x1fa   : > { %v4400_v25 = vsub.f32 %v6132_v27, %v1120_v8  ;;  %v6133_v26 = vmax.f32 %v4244_v3, 0.0  ;;  %v1152_v54 = vmul.f32 %v4373_v23, %v4373_v23  ;;  %v1156_v0 = vmul.f32 %v4391_v63, %v4391_v63 }
 0x1fb   : > { %v1207_v28 = vadd.f32 %v1183_v32, %v1179_v47  ;;  %v1115_v62 = vrot.slane %v1114_v18, 2  ;;  %v1171_v56 = vmul.f32 %v4377_v57, %v4377_v57  ;;  %v1191_v42 = vmul.f32 %v1163_v15, %v3933_v43 }
 0x1fc   : > { %v4404_v59 = vsub.f32 %v6133_v26, %v1120_v8  ;;  %v1160_v2 = vmul.f32 %v4396_v5, %v4396_v5  ;;  %v6134_v3 = vmax.f32 %v4254_v38, 0.0  ;;  %v1164_v11 = vmul.f32 %v4400_v25, %v4400_v25 }
 0x1fd   : > { %v1208_v30 = vadd.f32 %v1207_v28, %v1187_v22  ;;  %v1180_v37 = vmul.f32 %v1152_v54, %v6130_v34  ;;  %v1184_v51 = vmul.f32 %v1156_v0, %v6131_v40  ;;  %v1175_v61 = vmul.f32 %v4385_v13, %v4385_v13 }
 0x1fe   : > { %v4417_v36 = vsub.f32 %v6134_v3, %v1120_v8  ;;  %v1195_v49 = vmul.f32 %v1167_v31, %v3963_v52  ;;  %v6135_v47 = vmax.f32 %v4293_v29, 0.0  ;;  %v1168_v38 = vmul.f32 %v4404_v59, %v4404_v59 }
 0x1ff   : > { %v1209_v15 = vadd.f32 %v1208_v30, %v1191_v42  ;;  %v1188_v22 = vmul.f32 %v1160_v2, %v3965_v24  ;;  %v1219_v28 = vadd.f32 %v1184_v51, %v1180_v37  ;;  %v1104_v27 = vadd.f32 %v1103_v41, %v1102_v33 }
 0x200   : > { %v4428_v32 = vsub.f32 %v6135_v47, %v1120_v8  ;;  %v1199_v26 = vmul.f32 %v1171_v56, %v3995_v1  ;;  %v1116_v0 = vadd.f32 %v1115_v62, %v1114_v18  ;;  %v1172_v3 = vmul.f32 %v4417_v36, %v4417_v36 }
 0x201   : > { %v1210_v54 = vadd.f32 %v1209_v15, %v1195_v49  ;;  %v1192_v31 = vmul.f32 %v1164_v11, %v3933_v43  ;;  %v1220_v42 = vadd.f32 %v1219_v28, %v1188_v22  ;;  %v1105_v29 = vrot.slane %v1104_v27, 1 }
 0x202   : > { %v1203_v8 = vmul.f32 %v1175_v61, %v4005_v4  ;;  %v1176_v47 = vmul.f32 %v4428_v32, %v4428_v32  ;;  %v1117_v2 = vrot.slane %v1116_v0, 1  ;;  %v1196_v33 = vmul.f32 %v1168_v38, %v3963_v52 }
 0x203   : > { %v1211_v30 = vadd.f32 %v1210_v54, %v1199_v26  ;;  %v1221_v41 = vadd.f32 %v1220_v42, %v1192_v31  ;;  %v1106_v56 = vadd.f32 %v1105_v29, %v1104_v27  ;;  %v1200_v18 = vmul.f32 %v1172_v3, %v3995_v1  ;;  %v4455_v3 = vpop.permute.xlu1 %1352 }
 0x204   : > { %v1204_v11 = vmul.f32 %v1176_v47, %v4005_v4  ;;  %v1118_v15 = vadd.f32 %v1117_v2, %v1116_v0  ;;  %v6136_v61 = vmax.f32 %v4232_v14, 0.0  ;;  %v6137_v26 = vmax.f32 %v4234_v58, 0.0 }
 0x205   : > { %v1212_v37 = vadd.f32 %v1211_v30, %v1203_v8  ;;  %v1222_v62 = vadd.f32 %v1221_v41, %v1196_v33  ;;  %v1121_v51 = vmul.f32 0.02, %v1106_v56  ;;  %v6138_v38 = vmax.f32 %v4258_v9, 0.0 }
 0x206   : > { %v6139_v42 = vmax.f32 %v4270_v19, 0.0  ;;  %v6140_v14 = vmax.f32 %v4286_v46, 0.0  ;;  %v1122_v2 = vmul.f32 0.02, %v1118_v15  ;;  %v6141_v56 = vmax.f32 %v4299_v20, 0.0 }
 0x207   : > { %v1213_v49 = vrot.slane %v1212_v37, 4  ;;  %v1223_v22 = vadd.f32 %v1222_v62, %v1200_v18  ;;  %v4445_v28 = vsub.f32 %v6136_v61, %v1121_v51  ;;  %v4449_v54 = vsub.f32 %v6137_v26, %v1121_v51 }
 0x208   : > { %v4453_v27 = vsub.f32 %v6138_v38, %v1121_v51  ;;  %v4459_v29 = vsub.f32 %v6139_v42, %v1121_v51  ;;  %v4463_v8 = vsub.f32 %v6140_v14, %v1121_v51  ;;  %v4474_v46 = vsub.f32 %v6141_v56, %v1121_v51 }
 0x209   : > { %v1214_v31 = vadd.f32 %v1213_v49, %v1212_v37  ;;  %v1224_v0 = vadd.f32 %v1223_v22, %v1204_v11  ;;  %v1153_v58 = vmul.f32 %v4445_v28, %v4445_v28  ;;  %v1157_v9 = vmul.f32 %v4449_v54, %v4449_v54 }
 0x20a   : > { %v1161_v47 = vmul.f32 %v4453_v27, %v4453_v27  ;;  %v1165_v37 = vmul.f32 %v4459_v29, %v4459_v29  ;;  %v4481_v49 = vsub.f32 %v1069_v6, %v1121_v51  ;;  %v1169_v11 = vmul.f32 %v4463_v8, %v4463_v8 }
 0x20b   : > { %v1215_v30 = vrot.slane %v1214_v31, 2  ;;  %v1225_v33 = vrot.slane %v1224_v0, 4  ;;  %v1181_v19 = vmul.f32 %v1153_v58, %v6130_v34  ;;  %v1185_v18 = vmul.f32 %v1157_v9, %v6131_v40 }
 0x20c   : > { %v1189_v15 = vmul.f32 %v1161_v47, %v3965_v24  ;;  %v6142_v20 = vmax.f32 %v4248_v35, 0.0  ;;  %v6143_v38 = vmax.f32 %v4250_v48, 0.0  ;;  %v4496_v6 = vsub.f32 %v6144_v16, %v1122_v2  ;;  %v4509_v47 = vpop.permute.xlu1 %1348 }
 0x20d   : > { %v1216_v41 = vadd.f32 %v1215_v30, %v1214_v31  ;;  %v1226_v62 = vadd.f32 %v1225_v33, %v1224_v0  ;;  %v1231_v61 = vadd.f32 %v1185_v18, %v1181_v19  ;;  %v1173_v0 = vmul.f32 %v4474_v46, %v4474_v46 }
 0x20e   : > { %v4488_v26 = vsub.f32 %v6142_v20, %v1122_v2  ;;  %v4492_v31 = vsub.f32 %v6143_v38, %v1122_v2  ;;  %v1193_v14 = vmul.f32 %v1165_v37, %v3933_v43  ;;  %v6145_v35 = vmax.f32 %v4284_v53, 0.0 }
 0x20f   : > { %v1217_v22 = vrot.slane %v1216_v41, 1  ;;  %v1227_v42 = vrot.slane %v1226_v62, 2  ;;  %v1232_v58 = vadd.f32 %v1231_v61, %v1189_v15  ;;  %v1177_v19 = vmul.f32 %v4481_v49, %v4481_v49 }
 0x210   : > { %v4503_v30 = vsub.f32 %v6145_v35, %v1122_v2  ;;  %v1154_v48 = vmul.f32 %v4488_v26, %v4488_v26  ;;  %v1158_v7 = vmul.f32 %v4492_v31, %v4492_v31  ;;  %v6146_v53 = vmax.f32 %v4297_v39, 0.0 }
 0x211   : > { %v1218_v51 = vadd.f32 %v1217_v22, %v1216_v41  ;;  %v1228_v9 = vadd.f32 %v1227_v42, %v1226_v62  ;;  %v1197_v41 = vmul.f32 %v1169_v11, %v3963_v52  ;;  %v1233_v56 = vadd.f32 %v1232_v58, %v1193_v14 }
 0x212   : > { %v4516_v18 = vsub.f32 %v6146_v53, %v1122_v2  ;;  %v1162_v62 = vmul.f32 %v4496_v6, %v4496_v6  ;;  %v1182_v15 = vmul.f32 %v1154_v48, %v6130_v34  ;;  %v1201_v61 = vmul.f32 %v1173_v0, %v3995_v1  ;;  %v4534_v0 = vpop.permute.xlu2 %1412 }
 0x213   : > { %v1255_v33 = vmul.f32 0.02, %v1218_v51  ;;  %v1229_v37 = vrot.slane %v1228_v9, 1  ;;  %v1234_v20 = vadd.f32 %v1233_v56, %v1197_v41  ;;  %v1186_v38 = vmul.f32 %v1158_v7, %v6131_v40 }
 0x214   : > { %v4525_v11 = vsub.f32 %v1066_v21, %v1122_v2  ;;  %v1166_v39 = vmul.f32 %v4503_v30, %v4503_v30  ;;  %v1205_v16 = vmul.f32 %v1177_v19, %v4005_v4  ;;  %v4532_v14 = vsub.f32 %v1070_v60, %v1122_v2  ;;  %v4545_v56 = vpop.permute.xlu1 %1404 }
 0x215   : > { %v1259_v22 = vadd.f32 1e-05, %v1255_v33  ;;  %v1230_v42 = vadd.f32 %v1229_v37, %v1228_v9  ;;  %v1235_v51 = vadd.f32 %v1234_v20, %v1201_v61  ;;  %v1170_v9 = vmul.f32 %v4516_v18, %v4516_v18 }
 0x216   : > { %v1190_v55 = vmul.f32 %v1162_v62, %v3965_v24  ;;  %v1243_v21 = vadd.f32 %v1186_v38, %v1182_v15  ;;  %v1174_v7 = vmul.f32 %v4525_v11, %v4525_v11  ;;  %v1194_v33 = vmul.f32 %v1166_v39, %v3933_v43 }
 0x217   : > { %3356 = vrsqrt.f32 %v1259_v22  ;;  %v1256_v58 = vmul.f32 0.02, %v1230_v42  ;;  %v1236_v35 = vadd.f32 %v1235_v51, %v1205_v16  ;;  %v1178_v60 = vmul.f32 %v4532_v14, %v4532_v14 }
 0x218   : > { %v1244_v19 = vadd.f32 %v1243_v21, %v1190_v55  ;;  %v1198_v2 = vmul.f32 %v1170_v9, %v3963_v52  ;;  %v1202_v15 = vmul.f32 %v1174_v7, %v3995_v1  ;;  %vm1269_vm14 = vweird.f32 %v1259_v22 }
 0x219   : > { %v1260_v48 = vadd.f32 1e-05, %v1256_v58  ;;  %v1237_v17 = vrot.slane %v1236_v35, 4  ;;  %v1206_v42 = vmul.f32 %v1178_v60, %v4005_v4  ;;  %v4551_v58 = vpop.permute.xlu0 %1356 }
 0x21a   : > { %v1245_v41 = vadd.f32 %v1244_v19, %v1194_v33  ;;  %v4549_v51 = vpop.permute.xlu2 %1408 }
 0x21b   : > { %3358 = vrsqrt.f32 %v1260_v48  ;;  %v1238_v53 = vadd.f32 %v1237_v17, %v1236_v35  ;;  %vm1279_vm1 = vweird.f32 %v1260_v48 }
 0x21c   : > { %v1246_v61 = vadd.f32 %v1245_v41, %v1198_v2  ;;  %v4553_v60 = vpop.permute.xlu1 %1336 }
 0x21d   : > { %v3357_v37 = vpop.eup %3356  ;;  %v1239_v20 = vrot.slane %v1238_v53, 2 }
 0x21e   : > { %v1264_v62 = vmul.f32 %v3357_v37, %v1259_v22  ;;  %v1247_v39 = vadd.f32 %v1246_v61, %v1202_v15  ;;  %vm1270_vm13 = vweird.f32 %v3357_v37 }
 0x21f   : > { %v1240_v16 = vadd.f32 %v1239_v20, %v1238_v53  ;;  %vm1271_vm15 = vmor %vm1269_vm14, %vm1270_vm13 }
 0x220   : > { %v1265_v38 = vmul.f32 %v3357_v37, %v1264_v62  ;;  %v1248_v21 = vadd.f32 %v1247_v39, %v1206_v42 }
 0x221   : > { %v3359_v9 = vpop.eup %3358  ;;  %v1241_v19 = vrot.slane %v1240_v16, 1 }
 0x222   : > { %v1266_v55 = vmul.f32 0.5, %v1265_v38  ;;  %v1274_v33 = vmul.f32 %v3359_v9, %v1260_v48  ;;  %v1249_v17 = vrot.slane %v1248_v21, 4  ;;  %vm1280_vm0 = vweird.f32 %v3359_v9 }
 0x223   : > { %v1242_v2 = vadd.f32 %v1241_v19, %v1240_v16  ;;  %vm1281_vm2 = vmor %vm1279_vm1, %vm1280_vm0 }
 0x224   : > { %v1267_v35 = vsub.f32 1.5, %v1266_v55  ;;  %v1275_v7 = vmul.f32 %v3359_v9, %v1274_v33  ;;  %v1250_v62 = vadd.f32 %v1249_v17, %v1248_v21 }
 0x225   : > { %v1257_v15 = vmul.f32 0.02, %v1242_v2 }
 0x226   : > { %v1268_v41 = vmul.f32 %v3357_v37, %v1267_v35  ;;  %v1276_v53 = vmul.f32 0.5, %v1275_v7  ;;  %v1251_v20 = vrot.slane %v1250_v62, 2  ;;  %v4565_v35 = vpop.permute.xlu0 %1344 }
 0x227   : > { %v4556_v39 = vadd.f32 1e-05, %v1257_v15 }
 0x228   : > { %v1272_v61 = vsel %vm1271_vm15, %v3357_v37, %v1268_v41  ;;  %v1277_v42 = vsub.f32 1.5, %v1276_v53  ;;  %v1252_v33 = vadd.f32 %v1251_v20, %v1250_v62  ;;  %v4563_v37 = vpop.permute.xlu2 %1340 }
 0x229   : > { %v1327_v38 = vmul.f32 %v1272_v61, %v4385_v13  ;;  %v1323_v55 = vmul.f32 %v1272_v61, %v4377_v57  ;;  %v1319_v16 = vmul.f32 %v1272_v61, %v4363_v44  ;;  %v1311_v22 = vmul.f32 %v1272_v61, %v4355_v10 }
 0x22a   : > { %v1315_v21 = vmul.f32 %v1272_v61, %v4359_v12  ;;  %v1278_v19 = vmul.f32 %v3359_v9, %v1277_v42  ;;  %3360 = vrsqrt.f32 %v4556_v39  ;;  %v1253_v13 = vrot.slane %v1252_v33, 1 }
 0x22b   : > { %v1379_v57 = vmul.f32 %v4455_v3, %v1323_v55  ;;  %v1375_v17 = vmul.f32 %v4509_v47, %v1319_v16  ;;  %v1383_v44 = vmul.f32 %v4551_v58, %v1327_v38  ;;  %v4572_v12 = vmul.f32 %v4563_v37, %v1311_v22 }
 0x22c   : > { %v1282_v10 = vsel %vm1281_vm2, %v3359_v9, %v1278_v19  ;;  %v1371_v48 = vmul.f32 %v4565_v35, %v1315_v21  ;;  %v1307_v7 = vmul.f32 %v1272_v61, %v4351_v45  ;;  %v1254_v41 = vadd.f32 %v1253_v13, %v1252_v33  ;;  %v4588_v33 = vpop.permute.xlu1 %1332 }
 0x22d   : > { %v1328_v2 = vmul.f32 %v1282_v10, %v4428_v32  ;;  %v1324_v62 = vmul.f32 %v1282_v10, %v4417_v36  ;;  %v1320_v53 = vmul.f32 %v1282_v10, %v4404_v59  ;;  %v1312_v15 = vmul.f32 %v1282_v10, %v4396_v5 }
 0x22e   : > { %v1316_v20 = vmul.f32 %v1282_v10, %v4400_v25  ;;  %v1308_v9 = vmul.f32 %v1282_v10, %v4391_v63  ;;  %v1303_v38 = vmul.f32 %v1272_v61, %v4347_v50  ;;  %v1258_v42 = vmul.f32 0.02, %v1254_v41  ;;  %v4616_v41 = vpop.permute.xlu0 %1400 }
 0x22f   : > { %v1380_v55 = vmul.f32 %v4455_v3, %v1324_v62  ;;  %v1384_v45 = vmul.f32 %v4551_v58, %v1328_v2  ;;  %v4586_v32 = vmul.f32 %v4553_v60, %v1307_v7  ;;  %v1376_v59 = vmul.f32 %v4509_v47, %v1320_v53 }
 0x230   : > { %v3361_v36 = vpop.eup %3360  ;;  %v4592_v5 = vmul.f32 %v4563_v37, %v1312_v15  ;;  %v1372_v63 = vmul.f32 %v4565_v35, %v1316_v20  ;;  %v1304_v50 = vmul.f32 %v1282_v10, %v4373_v23  ;;  %vm1289_vm3 = vweird.f32 %v4556_v39  ;;  %v4614_v2 = vpop.permute.xlu2 %1396 }
 0x231   : > { %v1284_v25 = vmul.f32 %v3361_v36, %v4556_v39  ;;  %vm1290_vm4 = vweird.f32 %v3361_v36  ;;  %v4598_v61 = vadd.f32 1e-05, %v1258_v42  ;;  %v4601_v16 = vmul.f32 %v4553_v60, %v1308_v9 }
 0x232   : > { %v4604_v22 = vmul.f32 %v4588_v33, %v1303_v38  ;;  %v1439_v21 = vadd.f32 %v4534_v0, %v1383_v44  ;;  %v1440_v19 = vadd.f32 %v4534_v0, %v1384_v45  ;;  %v1435_v13 = vadd.f32 %v4549_v51, %v1379_v57  ;;  %vm1291_vm5 = vmor %vm1289_vm3, %vm1290_vm4 }
 0x233   : > { %v1285_v23 = vmul.f32 %v3361_v36, %v1284_v25  ;;  %3362 = vrsqrt.f32 %v4598_v61  ;;  %v4611_v10 = vmul.f32 %v4588_v33, %v1304_v50  ;;  %v1436_v7 = vadd.f32 %v4549_v51, %v1380_v55 }
 0x234   : > { %v1467_v62 = vmax.f32 %v1439_v21, 0.0  ;;  %v1468_v53 = vmax.f32 %v1440_v19, 0.0  ;;  %v1463_v15 = vmax.f32 %v1435_v13, 0.0  ;;  %v1431_v44 = vadd.f32 %v4545_v56, %v1375_v17 }
 0x235   : > { %v1286_v20 = vmul.f32 0.5, %v1285_v23  ;;  %v1464_v9 = vmax.f32 %v1436_v7, 0.0  ;;  %v1432_v57 = vadd.f32 %v4545_v56, %v1376_v59  ;;  %v1427_v38 = vadd.f32 %v4616_v41, %v1371_v48 }
 0x236   : > { %v1495_v42 = vmul.f32 %v1467_v62, %v1467_v62  ;;  %v1496_v45 = vmul.f32 %v1468_v53, %v1468_v53  ;;  %v1491_v50 = vmul.f32 %v1463_v15, %v1463_v15  ;;  %v1459_v25 = vmax.f32 %v1431_v44, 0.0 }
 0x237   : > { %v1287_v55 = vsub.f32 1.5, %v1286_v20  ;;  %v1492_v4 = vmul.f32 %v1464_v9, %v1464_v9  ;;  %v1460_v1 = vmax.f32 %v1432_v57, 0.0  ;;  %v1455_v52 = vmax.f32 %v1427_v38, 0.0 }
 0x238   : > { %v1523_v43 = vmul.f32 %v1495_v42, %v1467_v62  ;;  %v1524_v21 = vmul.f32 %v1496_v45, %v1468_v53  ;;  %v1519_v19 = vmul.f32 %v1491_v50, %v1463_v15  ;;  %v1487_v13 = vmul.f32 %v1459_v25, %v1459_v25 }
 0x239   : > { %v3363_v24 = vpop.eup %3362  ;;  %v1288_v17 = vmul.f32 %v3361_v36, %v1287_v55  ;;  %v1520_v23 = vmul.f32 %v1492_v4, %v1464_v9  ;;  %v1488_v7 = vmul.f32 %v1460_v1, %v1460_v1  ;;  %v1483_v40 = vmul.f32 %v1455_v52, %v1455_v52 }
 0x23a   : > { %v1294_v48 = vmul.f32 %v3363_v24, %v4598_v61  ;;  %vm1299_vm6 = vweird.f32 %v4598_v61  ;;  %vm1300_vm7 = vweird.f32 %v3363_v24  ;;  %1593 = vmatpush.msrb.mxu0 %v1523_v43  ;;  %1631 = vmatpush.msrb.mxu1 %v1524_v21  ;;  %v1515_v59 = vmul.f32 %v1487_v13, %v1459_v25 }
 0x23b   : > { %v1428_v62 = vadd.f32 %v4616_v41, %v1372_v63  ;;  %v1292_v53 = vsel %vm1291_vm5, %v3361_v36, %v1288_v17  ;;  %v1516_v15 = vmul.f32 %v1488_v7, %v1460_v1  ;;  %v1511_v44 = vmul.f32 %v1483_v40, %v1455_v52  ;;  %vm1301_vm8 = vmor %vm1299_vm6, %vm1300_vm7 }
 0x23c   : > { %v1423_v4 = vadd.f32 %v4614_v2, %v4572_v12  ;;  %v1329_v20 = vmul.f32 %v1292_v53, %v4481_v49  ;;  %v1295_v39 = vmul.f32 %v3363_v24, %v1294_v48  ;;  %v1325_v9 = vmul.f32 %v1292_v53, %v4474_v46  ;;  %1594 = vmatpush.msrb.mxu0 %v1519_v19  ;;  %v4639_v46 = vpop.permute.xlu2 %1392 }
 0x23d   : > { %v1321_v57 = vmul.f32 %v1292_v53, %v4463_v8  ;;  %v1313_v43 = vmul.f32 %v1292_v53, %v4453_v27  ;;  %v1317_v38 = vmul.f32 %v1292_v53, %v4459_v29  ;;  %v1309_v63 = vmul.f32 %v1292_v53, %v4449_v54  ;;  %1632 = vmatpush.msrb.mxu1 %v1520_v23 }
 0x23e   : > { %v1305_v1 = vmul.f32 %v1292_v53, %v4445_v28  ;;  %v1296_v52 = vmul.f32 0.5, %v1295_v39  ;;  %v1381_v40 = vmul.f32 %v4455_v3, %v1325_v9  ;;  %v1385_v12 = vmul.f32 %v4551_v58, %v1329_v20  ;;  %1595 = vmatpush.msrb.mxu0 %v1515_v59 }
 0x23f   : > { %v1377_v49 = vmul.f32 %v4509_v47, %v1321_v57  ;;  %v4642_v8 = vmul.f32 %v4563_v37, %v1313_v43  ;;  %v4645_v27 = vmul.f32 %v4565_v35, %v1317_v38  ;;  %v4648_v54 = vmul.f32 %v4553_v60, %v1309_v63  ;;  %1633 = vmatpush.msrb.mxu1 %v1516_v15 }
 0x240   : > { %v4651_v28 = vmul.f32 %v4588_v33, %v1305_v1  ;;  %v1297_v29 = vsub.f32 1.5, %v1296_v52  ;;  %1596 = vmatpush.msrb.mxu0 %v1511_v44  ;;  %v1456_v36 = vmax.f32 %v1428_v62, 0.0  ;;  %v1441_v42 = vadd.f32 %v4534_v0, %v1385_v12 }
 0x241   : > { %v1451_v45 = vmax.f32 %v1423_v4, 0.0  ;;  %v1424_v50 = vadd.f32 %v4614_v2, %v4592_v5  ;;  %v1437_v25 = vadd.f32 %v4549_v51, %v1381_v40  ;;  %v1419_v55 = vadd.f32 %v4639_v46, %v4586_v32 }
 0x242   : > { %v1420_v21 = vadd.f32 %v4639_v46, %v4601_v16  ;;  %v1298_v19 = vmul.f32 %v3363_v24, %v1297_v29  ;;  %v1484_v13 = vmul.f32 %v1456_v36, %v1456_v36  ;;  %v1469_v17 = vmax.f32 %v1441_v42, 0.0 }
 0x243   : > { %v1479_v23 = vmul.f32 %v1451_v45, %v1451_v45  ;;  %v1452_v7 = vmax.f32 %v1424_v50, 0.0  ;;  %v1465_v48 = vmax.f32 %v1437_v25, 0.0  ;;  %v1447_v59 = vmax.f32 %v1419_v55, 0.0 }
 0x244   : > { %v1448_v5 = vmax.f32 %v1420_v21, 0.0  ;;  %v1302_v62 = vsel %vm1301_vm8, %v3363_v24, %v1298_v19  ;;  %v1512_v53 = vmul.f32 %v1484_v13, %v1456_v36  ;;  %v1497_v15 = vmul.f32 %v1469_v17, %v1469_v17 }
 0x245   : > { %v1507_v44 = vmul.f32 %v1479_v23, %v1451_v45  ;;  %v1330_v32 = vmul.f32 %v1302_v62, %v4532_v14  ;;  %v1326_v16 = vmul.f32 %v1302_v62, %v4525_v11  ;;  %v1322_v4 = vmul.f32 %v1302_v62, %v4516_v18 }
 0x246   : > { %v1314_v20 = vmul.f32 %v1302_v62, %v4496_v6  ;;  %v1318_v39 = vmul.f32 %v1302_v62, %v4503_v30  ;;  %v1310_v61 = vmul.f32 %v1302_v62, %v4492_v31  ;;  %v1306_v9 = vmul.f32 %v1302_v62, %v4488_v26  ;;  %1634 = vmatpush.msrb.mxu1 %v1512_v53  ;;  %v4680_v31 = vpop.permute.xlu0 %1388  ;;  %v4711_v53 = vld [vmem:[%s5983_s2 + $0x8] sm:$0xff] }
 0x247   : > { %v1525_v57 = vmul.f32 %v1497_v15, %v1469_v17  ;;  %v1382_v24 = vmul.f32 %v4455_v3, %v1326_v16  ;;  %v1378_v43 = vmul.f32 %v4509_v47, %v1322_v4  ;;  %v1386_v14 = vmul.f32 %v4551_v58, %v1330_v32  ;;  %1597 = vmatpush.msrb.mxu0 %v1507_v44  ;;  %v4696_v17 = vld [vmem:[%s5983_s2] sm:$0xff] }
 0x248   : > { %v1370_v11 = vmul.f32 %v4563_v37, %v1314_v20  ;;  %v1374_v18 = vmul.f32 %v4565_v35, %v1318_v39  ;;  %v1366_v6 = vmul.f32 %v4553_v60, %v1310_v61  ;;  %v4678_v30 = vmul.f32 %v4588_v33, %v1306_v9  ;;  %v1528_v20 = vld [vmem:[#allocation2 + $0x38] sm:$0xff] }
 0x249   : > { %1669 = vmatpush.msrb.mxu2 %v1525_v57  ;;  %v1480_v26 = vmul.f32 %v1452_v7, %v1452_v7  ;;  %v1442_v3 = vadd.f32 %v4534_v0, %v1386_v14  ;;  %v1493_v38 = vmul.f32 %v1465_v48, %v1465_v48  ;;  %v1438_v47 = vadd.f32 %v4549_v51, %v1382_v24 }
 0x24a   : > { %v1475_v58 = vmul.f32 %v1447_v59, %v1447_v59  ;;  %v1476_v37 = vmul.f32 %v1448_v5, %v1448_v5  ;;  %v1433_v1 = vadd.f32 %v4545_v56, %v1377_v49  ;;  %v1434_v35 = vadd.f32 %v4545_v56, %v1378_v43 }
 0x24b   : > { %v1508_v63 = vmul.f32 %v1480_v26, %v1452_v7  ;;  %v1470_v60 = vmax.f32 %v1442_v3, 0.0  ;;  %v1521_v52 = vmul.f32 %v1493_v38, %v1465_v48  ;;  %v1466_v33 = vmax.f32 %v1438_v47, 0.0  ;;  %v3390_v47 = vld [vmem:[%s5983_s2 + $0x18] sm:$0xff] }
 0x24c   : > { %v1503_v40 = vmul.f32 %v1475_v58, %v1447_v59  ;;  %v1504_v12 = vmul.f32 %v1476_v37, %v1448_v5  ;;  %v1461_v29 = vmax.f32 %v1433_v1, 0.0  ;;  %v1462_v36 = vmax.f32 %v1434_v35, 0.0  ;;  %v1529_v35 = vld [vmem:[#allocation2 + $0x40] sm:$0xff] }
 0x24d   : > { %1635 = vmatpush.msrb.mxu1 %v1508_v63  ;;  %v1415_v0 = vadd.f32 %v4680_v31, %v4604_v22  ;;  %v1498_v42 = vmul.f32 %v1470_v60, %v1470_v60  ;;  %1670 = vmatpush.msrb.mxu2 %v1521_v52  ;;  %v1494_v51 = vmul.f32 %v1466_v33, %v1466_v33  ;;  %v3510_v55 = vmov 3   ;;  %v3393_v52 = vld [vmem:[%s5983_s2 + $0x30] sm:$0xff] }
 0x24e   : > { %1598 = vmatpush.msrb.mxu0 %v1503_v40  ;;  %v1416_v49 = vadd.f32 %v4680_v31, %v4611_v10  ;;  %v1489_v56 = vmul.f32 %v1461_v29, %v1461_v29  ;;  %v1490_v45 = vmul.f32 %v1462_v36, %v1462_v36  ;;  %v1429_v25 = vadd.f32 %v4616_v41, %v4645_v27  ;;  %v4702_v27 = vld [vmem:[%s5983_s2 + $0x10] sm:$0xff] }
 0x24f   : > { %1636 = vmatpush.msrb.mxu1 %v1504_v12  ;;  %v1443_v50 = vmax.f32 %v1415_v0, 0.0  ;;  %3324 = vset.pattern.permute.xlu1 %v3510_v55  ;;  %v1526_v21 = vmul.f32 %v1498_v42, %v1470_v60  ;;  %v1522_v19 = vmul.f32 %v1494_v51, %v1466_v33  ;;  %v1430_v22 = vadd.f32 %v4616_v41, %v1374_v18  ;;  %v3392_v60 = vld [vmem:[%s5983_s2 + $0x28] sm:$0xff]  ;;  %v1531_v40 = vld [vmem:[#allocation2 + $0x50] sm:$0xff]  ;;  %v1533_v0 = vld [vmem:[#allocation2 + $0x60] sm:$0xff] }
 0x250   : > { %v1444_v13 = vmax.f32 %v1416_v49, 0.0  ;;  %1536 = vperm.xlu1 %3324, %v4696_v17   ;;  %3326 = vset.pattern.permute.xlu0 %v3510_v55  ;;  %v1517_v10 = vmul.f32 %v1489_v56, %v1461_v29  ;;  %v1518_v23 = vmul.f32 %v1490_v45, %v1462_v36  ;;  %v1457_v48 = vmax.f32 %v1429_v25, 0.0  ;;  %v1530_v33 = vld [vmem:[#allocation2 + $0x48] sm:$0xff]  ;;  %v1532_v36 = vld [vmem:[#allocation2 + $0x58] sm:$0xff] }
 0x251   : > { %v1471_v7 = vmul.f32 %v1443_v50, %v1443_v50  ;;  %1544 = vperm.xlu0 %3326, %v4702_v27   ;;  %3325 = vset.pattern.permute.xlu2 %v3510_v55  ;;  %v1458_v59 = vmax.f32 %v1430_v22, 0.0  ;;  %v1425_v5 = vadd.f32 %v4614_v2, %v4642_v8  ;;  %v1426_v62 = vadd.f32 %v4614_v2, %v1370_v11  ;;  %v1534_v42 = vld [vmem:[#allocation2 + $0x68] sm:$0xff] }
 0x252   : > { %1707 = vmatpush.msrb.mxu3 %v1526_v21  ;;  %v1472_v41 = vmul.f32 %v1444_v13, %v1444_v13  ;;  %1540 = vperm.xlu2 %3325, %v4711_v53   ;;  %v1485_v44 = vmul.f32 %v1457_v48, %v1457_v48  ;;  %v1421_v32 = vadd.f32 %v4639_v46, %v4648_v54  ;;  %v3511_v12 = vmov 7  }
 0x253   : > { %1671 = vmatpush.msrb.mxu2 %v1517_v10  ;;  %v1499_v15 = vmul.f32 %v1471_v7, %v1443_v50  ;;  %v1422_v16 = vadd.f32 %v4639_v46, %v1366_v6  ;;  %v1486_v8 = vmul.f32 %v1458_v59, %v1458_v59  ;;  %v1453_v2 = vmax.f32 %v1425_v5, 0.0 }
 0x254   : > { %1708 = vmatpush.msrb.mxu3 %v1522_v19  ;;  %v1500_v4 = vmul.f32 %v1472_v41, %v1444_v13  ;;  %v1454_v39 = vmax.f32 %v1426_v62, 0.0  ;;  %v1513_v61 = vmul.f32 %v1485_v44, %v1457_v48  ;;  %v1449_v9 = vmax.f32 %v1421_v32, 0.0 }
 0x255   : > { %1599 = vmatpush.msrb.mxu0 %v1499_v15  ;;  %v1450_v57 = vmax.f32 %v1422_v16, 0.0  ;;  %v1417_v24 = vadd.f32 %v4680_v31, %v4651_v28  ;;  %v1514_v43 = vmul.f32 %v1486_v8, %v1458_v59  ;;  %v1481_v14 = vmul.f32 %v1453_v2, %v1453_v2 }
 0x256   : > { %1709 = vmatpush.msrb.mxu3 %v1518_v23  ;;  %1637 = vmatpush.msrb.mxu1 %v1500_v4  ;;  %v1482_v54 = vmul.f32 %v1454_v39, %v1454_v39  ;;  %v1477_v46 = vmul.f32 %v1449_v9, %v1449_v9  ;;  %v1418_v6 = vadd.f32 %v4680_v31, %v4678_v30  ;;  %v3391_v30 = vld [vmem:[%s5983_s2 + $0x20] sm:$0xff]  ;;  %v3512_v29 = vmov 11  }
 0x257   : > { %1672 = vmatpush.msrb.mxu2 %v1513_v61  ;;  %3164 = vmatmul.msk.f32.vlgmr.msrb.gmra.mxu0 %vm869_vm12, %v1528_v20  ;;  %v1478_v11 = vmul.f32 %v1450_v57, %v1450_v57  ;;  %v1445_v18 = vmax.f32 %v1417_v24, 0.0  ;;  %v1509_v26 = vmul.f32 %v1481_v14, %v1453_v2 }
 0x258   : > { %1710 = vmatpush.msrb.mxu3 %v1514_v43  ;;  %3171 = vmatmul.msk.f32.vlgmr.msrb.gmra.mxu1 %vm869_vm12, %v1528_v20  ;;  %v1510_v3 = vmul.f32 %v1482_v54, %v1454_v39  ;;  %v1446_v38 = vmax.f32 %v1418_v6, 0.0  ;;  %v1505_v58 = vmul.f32 %v1477_v46, %v1449_v9 }
 0x259   : > { %v1473_v28 = vmul.f32 %v1445_v18, %v1445_v18  ;;  %1548 = vperm.xlu1 %3324, %v3390_v47   ;;  %1673 = vmatpush.msrb.mxu2 %v1509_v26  ;;  %v1506_v63 = vmul.f32 %v1478_v11, %v1450_v57 }
 0x25a   : > { %1711 = vmatpush.msrb.mxu3 %v1510_v3  ;;  %v1474_v37 = vmul.f32 %v1446_v38, %v1446_v38  ;;  %1552 = vperm.xlu2 %3325, %v3391_v30  }
 0x25b   : > { %1674 = vmatpush.msrb.mxu2 %v1505_v58  ;;  %v1501_v31 = vmul.f32 %v1473_v28, %v1445_v18  ;;  %3327 = vset.pattern.permute.xlu0 %v3511_v12 }
 0x25c   : > { %1712 = vmatpush.msrb.mxu3 %v1506_v63  ;;  %v1502_v1 = vmul.f32 %v1474_v37, %v1446_v38  ;;  %2049 = vperm.xlu0 %3327, %v3393_v52  }
 0x25d   : > { %1675 = vmatpush.msrb.mxu2 %v1501_v31 }
 0x25e   : > { %1713 = vmatpush.msrb.mxu3 %v1502_v1  ;;  %3178 = vmatmul.msk.f32.vlgmr.msrb.gmra.mxu2 %vm869_vm12, %v1528_v20 }
 0x25f   : > { %3185 = vmatmul.msk.f32.vlgmr.msrb.gmra.mxu3 %vm869_vm12, %v1528_v20  ;;  %3165 = vmatmul.msk.f32.gmra.mxu0 %vm869_vm12, %v1529_v35 }
 0x260   : > { %3172 = vmatmul.msk.f32.gmra.mxu1 %vm869_vm12, %v1529_v35 }
 0x261   : > { %1556 = vperm.xlu1 %3324, %v3392_v60  }
 0x262   : > { %1560 = vperm.xlu2 %3325, %v3393_v52  }
 0x264   : > { %2037 = vperm.xlu0 %3327, %v3390_v47  }
 0x266   : > { %3179 = vmatmul.msk.f32.gmra.mxu2 %vm869_vm12, %v1529_v35 }
 0x267   : > { %3186 = vmatmul.msk.f32.gmra.mxu3 %vm869_vm12, %v1529_v35  ;;  %3166 = vmatmul.msk.f32.gmra.mxu0 %vm869_vm12, %v1530_v33 }
 0x268   : > { %3173 = vmatmul.msk.f32.gmra.mxu1 %vm869_vm12, %v1530_v33 }
 0x269   : > { %3328 = vset.pattern.permute.xlu1 %v3511_v12 }
 0x26a   : > { %2045 = vperm.xlu1 %3328, %v3392_v60   ;;  %3329 = vset.pattern.permute.xlu2 %v3512_v29 }
 0x26b   : > { %2105 = vperm.xlu2 %3329, %v3393_v52  }
 0x26c   : > { %3332 = vset.pattern.permute.xlu0 %v3512_v29 }
 0x26d   : > { %2093 = vperm.xlu0 %3332, %v3390_v47  }
 0x26e   : > { %3180 = vmatmul.msk.f32.gmra.mxu2 %vm869_vm12, %v1530_v33 }
 0x26f   : > { %3187 = vmatmul.msk.f32.gmra.mxu3 %vm869_vm12, %v1530_v33  ;;  %3167 = vmatmul.msk.f32.gmra.mxu0 %vm869_vm12, %v1531_v40 }
 0x270   : > { %3174 = vmatmul.msk.f32.gmra.mxu1 %vm869_vm12, %v1531_v40 }
 0x272   : > { %2041 = vperm.xlu1 %3328, %v3391_v30  }
 0x273   : > { %2101 = vperm.xlu2 %3329, %v3392_v60  }
 0x275   : > { %2081 = vperm.xlu0 %3332, %v4696_v17  }
 0x276   : > { %3181 = vmatmul.msk.f32.gmra.mxu2 %vm869_vm12, %v1531_v40 }
 0x277   : > { %3188 = vmatmul.msk.f32.gmra.mxu3 %vm869_vm12, %v1531_v40  ;;  %3168 = vmatmul.msk.f32.gmra.mxu0 %vm869_vm12, %v1532_v36 }
 0x278   : > { %3175 = vmatmul.msk.f32.gmra.mxu1 %vm869_vm12, %v1532_v36 }
 0x27a   : > { %3330 = vset.pattern.permute.xlu1 %v3512_v29 }
 0x27b   : > { %2097 = vperm.xlu1 %3330, %v3391_v30   ;;  %3331 = vset.pattern.permute.xlu2 %v3511_v12 }
 0x27c   : > { %2033 = vperm.xlu2 %3331, %v4702_v27  }
 0x27e   : > { %3182 = vmatmul.msk.f32.gmra.mxu2 %vm869_vm12, %v1532_v36 }
 0x27f   : > { %3189 = vmatmul.msk.f32.gmra.mxu3 %vm869_vm12, %v1532_v36  ;;  %3169 = vmatmul.msk.f32.gmra.mxu0 %vm869_vm12, %v1533_v0 }
 0x280   : > { %3176 = vmatmul.msk.f32.gmra.mxu1 %vm869_vm12, %v1533_v0 }
 0x283   : > { %3333 = vset.pattern.permute.xlu1 %v3511_v12 }
 0x284   : > { %2029 = vperm.xlu1 %3333, %v4711_v53   ;;  %3334 = vset.pattern.permute.xlu2 %v3512_v29 }
 0x285   : > { %2089 = vperm.xlu2 %3334, %v4702_v27  }
 0x286   : > { %3183 = vmatmul.msk.f32.gmra.mxu2 %vm869_vm12, %v1533_v0 }
 0x287   : > { %3190 = vmatmul.msk.f32.gmra.mxu3 %vm869_vm12, %v1533_v0  ;;  %3170 = vmatmul.msk.f32.gmra.mxu0 %vm869_vm12, %v1534_v42 }
 0x288   : > { %3177 = vmatmul.msk.f32.gmra.mxu1 %vm869_vm12, %v1534_v42 }
 0x28c   : > { %2025 = vperm.xlu1 %3333, %v4696_v17  }
 0x28d   : > { %2085 = vperm.xlu2 %3334, %v4711_v53  }
 0x28e   : > { %3184 = vmatmul.msk.f32.gmra.mxu2 %vm869_vm12, %v1534_v42 }
 0x28f   : > { %3191 = vmatmul.msk.f32.gmra.mxu3 %vm869_vm12, %v1534_v42 }
 0x2ac   : > { %v1541_v7 = vpop.permute.xlu2 %1540 }
 0x2b4   : > { %v4799_v61 = vpop.permute.xlu2 %1552 }
 0x2bc   : > { %v1561_v12 = vpop.permute.xlu2 %1560 }
 0x2c2   : > { %v4773_v22 = vpop.permute.xlu1 %1536 }
 0x2c3   : > { %v1545_v44 = vpop.permute.xlu0 %1544 }
 0x2cb   : > { %v4784_v59 = vpop.permute.xlu1 %1548 }
 0x2d3   : > { %v4812_v54 = vpop.permute.xlu1 %1556 }
 0x2d4   : > { %v1601_v51 = vpop.f32.mrf.mxu0 }
 0x2d5   : > { %v1639_v49 = vpop.f32.mrf.mxu1  ;;  %v4780_v27 = vadd.f32 %v1601_v51, %v4773_v22 }
 0x2d6   : > { %v4787_v53 = vadd.f32 %v1639_v49, %v4773_v22 }
 0x2d7   : > { %v1736_v32 = vmax.f32 %v4780_v27, 0.0 }
 0x2d8   : > { %v1737_v20 = vmax.f32 %v4787_v53, 0.0 }
 0x2dc   : > { %v1604_v56 = vpop.f32.mrf.mxu0 }
 0x2dd   : > { %v1642_v45 = vpop.f32.mrf.mxu1  ;;  %v4782_v41 = vadd.f32 %v1604_v56, %v1541_v7 }
 0x2de   : > { %v4789_v15 = vadd.f32 %v1642_v45, %v1541_v7 }
 0x2df   : > { %v1740_v16 = vmax.f32 %v4782_v41, 0.0 }
 0x2e0   : > { %v1741_v2 = vmax.f32 %v4789_v15, 0.0 }
 0x2e1   : > { %v4767_v50 = vpop.f32.mrf.mxu2  ;;  %v1764_v43 = vadd.f32 %v1740_v16, %v1736_v32 }
 0x2e2   : > { %v4769_v25 = vpop.f32.mrf.mxu3  ;;  %v1776_v26 = vadd.f32 %v1741_v2, %v1737_v20 }
 0x2e4   : > { %v1607_v55 = vpop.f32.mrf.mxu0 }
 0x2e5   : > { %v1645_v21 = vpop.f32.mrf.mxu1  ;;  %v4793_v4 = vadd.f32 %v1607_v55, %v1545_v44 }
 0x2e6   : > { %v4797_v39 = vadd.f32 %v1645_v21, %v1545_v44 }
 0x2e7   : > { %v1744_v57 = vmax.f32 %v4793_v4, 0.0 }
 0x2e8   : > { %v1745_v6 = vmax.f32 %v4797_v39, 0.0 }
 0x2e9   : > { %v1680_v19 = vpop.f32.mrf.mxu2  ;;  %v1765_v38 = vadd.f32 %v1764_v43, %v1744_v57 }
 0x2ea   : > { %v4771_v13 = vpop.f32.mrf.mxu3  ;;  %v1777_v31 = vadd.f32 %v1776_v26, %v1745_v6 }
 0x2ec   : > { %v1610_v10 = vpop.f32.mrf.mxu0 }
 0x2ed   : > { %v1648_v23 = vpop.f32.mrf.mxu1  ;;  %v4803_v24 = vadd.f32 %v1610_v10, %v4784_v59  ;;  %v4859_v10 = vadd.f32 %v1680_v19, %v1541_v7 }
 0x2ee   : > { %v4810_v14 = vadd.f32 %v1648_v23, %v4784_v59 }
 0x2ef   : > { %v1748_v28 = vmax.f32 %v4803_v24, 0.0 }
 0x2f0   : > { %v1749_v58 = vmax.f32 %v4810_v14, 0.0  ;;  %v6149_v14 = vld [vmem:[#allocation15_spill] sm:$0xff] }
 0x2f1   : > { %v4775_v17 = vpop.f32.mrf.mxu2  ;;  %v1766_v60 = vadd.f32 %v1765_v38, %v1748_v28  ;;  %v4877_v38 = vadd.f32 %v4769_v25, %v4773_v22 }
 0x2f2   : > { %v4777_v48 = vpop.f32.mrf.mxu3  ;;  %v1778_v33 = vadd.f32 %v1777_v31, %v1749_v58  ;;  %v4873_v26 = vadd.f32 %v4775_v17, %v1545_v44 }
 0x2f4   : > { %v1613_v5 = vpop.f32.mrf.mxu0 }
 0x2f5   : > { %v1651_v62 = vpop.f32.mrf.mxu1  ;;  %v4815_v11 = vadd.f32 %v1613_v5, %v4799_v61 }
 0x2f6   : > { %v4823_v3 = vadd.f32 %v1651_v62, %v4799_v61  ;;  %v4865_v62 = vadd.f32 %v4767_v50, %v4773_v22  ;;  %v4881_v50 = vadd.f32 %v4777_v48, %v1545_v44 }
 0x2f7   : > { %v1752_v37 = vmax.f32 %v4815_v11, 0.0 }
 0x2f8   : > { %v1753_v1 = vmax.f32 %v4823_v3, 0.0 }
 0x2f9   : > { %v1686_v8 = vpop.f32.mrf.mxu2  ;;  %v1767_v36 = vadd.f32 %v1766_v60, %v1752_v37  ;;  %v6044_v60 = vmax.f32 %v4859_v10, 0.0 }
 0x2fa   : > { %v1724_v9 = vpop.f32.mrf.mxu3  ;;  %v1779_v51 = vadd.f32 %v1778_v33, %v1753_v1  ;;  %v4884_v33 = vadd.f32 %v1686_v8, %v4784_v59 }
 0x2fb   : > { %v4890_v25 = vadd.f32 %v1724_v9, %v4784_v59 }
 0x2fc   : > { %v1616_v46 = vpop.f32.mrf.mxu0 }
 0x2fd   : > { %v1654_v18 = vpop.f32.mrf.mxu1  ;;  %v4829_v47 = vadd.f32 %v1616_v46, %v4812_v54 }
 0x2fe   : > { %v4833_v63 = vadd.f32 %v1654_v18, %v4812_v54  ;;  %v4870_v18 = vadd.f32 %v4771_v13, %v1541_v7  ;;  %v6048_v13 = vmax.f32 %v4865_v62, 0.0 }
 0x2ff   : > { %v1756_v52 = vmax.f32 %v4829_v47, 0.0 }
 0x300   : > { %v1757_v40 = vmax.f32 %v4833_v63, 0.0  ;;  %v6045_v17 = vmax.f32 %v4870_v18, 0.0  ;;  %v1788_v8 = vadd.f32 %v6044_v60, %v6048_v13 }
 0x301   : > { %v1689_v30 = vpop.f32.mrf.mxu2  ;;  %v1768_v56 = vadd.f32 %v1767_v36, %v1756_v52  ;;  %v6047_v36 = vmax.f32 %v4873_v26, 0.0 }
 0x302   : > { %v1727_v35 = vpop.f32.mrf.mxu3  ;;  %v1780_v55 = vadd.f32 %v1779_v51, %v1757_v40  ;;  %v4894_v48 = vadd.f32 %v1689_v30, %v4799_v61  ;;  %v6054_v51 = vmax.f32 %v4881_v50, 0.0 }
 0x303   : > { %v4903_v59 = vadd.f32 %v1727_v35, %v4799_v61 }
 0x304   : > { %v1619_v29 = vpop.f32.mrf.mxu0 }
 0x305   : > { %v4847_v0 = vadd.f32 %v1619_v29, %v1561_v12  ;;  %v1657_v42 = vpop.f32.mrf.mxu1 }
 0x306   : > { %v4851_v49 = vadd.f32 %v1657_v42, %v1561_v12  ;;  %v6046_v42 = vmax.f32 %v4877_v38, 0.0 }
 0x307   : > { %v1760_v45 = vmax.f32 %v4847_v0, 0.0 }
 0x308   : > { %v6049_v21 = vmax.f32 %v4851_v49, 0.0  ;;  %v1800_v30 = vadd.f32 %v6045_v17, %v6046_v42 }
 0x309   : > { %v1769_v23 = vadd.f32 %v1768_v56, %v1760_v45  ;;  %v1692_v5 = vpop.f32.mrf.mxu2  ;;  %v1750_v56 = vmax.f32 %v4884_v33, 0.0 }
 0x30a   : > { %v1781_v43 = vadd.f32 %v1780_v55, %v6049_v21  ;;  %v1730_v46 = vpop.f32.mrf.mxu3 }
 0x30b   : > { %v1770_v19 = vrot.slane %v1769_v23, 4  ;;  %v4917_v35 = vadd.f32 %v1730_v46, %v4812_v54 }
 0x30c   : > { %v1782_v31 = vrot.slane %v1781_v43, 4 }
 0x30d   : > { %v1771_v29 = vadd.f32 %v1770_v19, %v1769_v23  ;;  %v1789_v19 = vadd.f32 %v1788_v8, %v6047_v36  ;;  %v6052_v8 = vmax.f32 %v4903_v59, 0.0 }
 0x30e   : > { %v1783_v7 = vadd.f32 %v1782_v31, %v1781_v43  ;;  %v4906_v43 = vadd.f32 %v1692_v5, %v4812_v54  ;;  %v6053_v31 = vmax.f32 %v4890_v25, 0.0 }
 0x30f   : > { %v1772_v22 = vrot.slane %v1771_v29, 2 }
 0x310   : > { %v1784_v44 = vrot.slane %v1783_v7, 2  ;;  %v6056_v36 = vmax.f32 %v4906_v43, 0.0 }
 0x311   : > { %v1773_v55 = vadd.f32 %v1772_v22, %v1771_v29  ;;  %v1695_v23 = vpop.f32.mrf.mxu2  ;;  %v6057_v22 = vmax.f32 %v4894_v48, 0.0 }
 0x312   : > { %v1785_v9 = vadd.f32 %v1784_v44, %v1783_v7  ;;  %v1733_v29 = vpop.f32.mrf.mxu3  ;;  %v4919_v5 = vadd.f32 %v1695_v23, %v1561_v12  ;;  %v1801_v7 = vadd.f32 %v1800_v30, %v6054_v51  ;;  %v1790_v44 = vadd.f32 %v1789_v19, %v1750_v56 }
 0x313   : > { %v1774_v60 = vrot.slane %v1773_v55, 1  ;;  %v4927_v13 = vadd.f32 %v1733_v29, %v1561_v12  ;;  %v6051_v30 = vmax.f32 %v4917_v35, 0.0 }
 0x314   : > { %v1786_v61 = vrot.slane %v1785_v9, 1  ;;  %v1802_v54 = vadd.f32 %v1801_v7, %v6053_v31  ;;  %v1791_v23 = vadd.f32 %v1790_v44, %v6057_v22  ;;  %v6055_v19 = vmax.f32 %v4919_v5, 0.0 }
 0x315   : > { %v1775_v17 = vadd.f32 %v1774_v60, %v1773_v55 }
 0x316   : > { %v1787_v42 = vadd.f32 %v1786_v61, %v1785_v9  ;;  %v1792_v41 = vadd.f32 %v1791_v23, %v6056_v36 }
 0x317   : > { %v1812_v46 = vmul.f32 0.02, %v1775_v17 }
 0x318   : > { %v1813_v21 = vmul.f32 0.02, %v1787_v42  ;;  %v1803_v42 = vadd.f32 %v1802_v54, %v6052_v8  ;;  %v6152_v8 = vld [vmem:[#allocation22_spill] sm:$0xff] }
 0x319   : > { %v4937_v60 = vsub.f32 %v1736_v32, %v1812_v46  ;;  %v4941_v12 = vsub.f32 %v1740_v16, %v1812_v46  ;;  %v4945_v55 = vsub.f32 %v1744_v57, %v1812_v46  ;;  %v4949_v17 = vsub.f32 %v1748_v28, %v1812_v46 }
 0x31a   : > { %v4955_v27 = vsub.f32 %v1752_v37, %v1812_v46  ;;  %v6050_v32 = vmax.f32 %v4927_v13, 0.0  ;;  %v4968_v24 = vsub.f32 %v1737_v20, %v1813_v21  ;;  %v4972_v11 = vsub.f32 %v1741_v2, %v1813_v21  ;;  %v6147_v20 = vld [vmem:[#allocation14_spill] sm:$0xff] }
 0x31b   : > { %v1844_v16 = vmul.f32 %v4937_v60, %v4937_v60  ;;  %v1848_v4 = vmul.f32 %v4941_v12, %v4941_v12  ;;  %v1852_v57 = vmul.f32 %v4945_v55, %v4945_v55  ;;  %v1804_v28 = vadd.f32 %v1803_v42, %v6051_v30 }
 0x31c   : > { %v1793_v37 = vadd.f32 %v1792_v41, %v6055_v19  ;;  %v4980_v9 = vsub.f32 %v1756_v52, %v1812_v46  ;;  %v1856_v29 = vmul.f32 %v4949_v17, %v4949_v17  ;;  %v4988_v15 = vsub.f32 %v1760_v45, %v1812_v46  ;;  %v6148_v52 = vld [vmem:[#allocation21_spill] sm:$0xff] }
 0x31d   : > { %v1872_v53 = vmul.f32 %v1844_v16, %v6130_v34  ;;  %v1876_v61 = vmul.f32 %v1848_v4, %v6147_v20  ;;  %v1860_v2 = vmul.f32 %v4955_v27, %v4955_v27  ;;  %v4994_v7 = vsub.f32 %v1745_v6, %v1813_v21 }
 0x31e   : > { %v1805_v47 = vadd.f32 %v1804_v28, %v6050_v32  ;;  %v1880_v44 = vmul.f32 %v1852_v57, %v6148_v52  ;;  %v5001_v23 = vsub.f32 %v1749_v58, %v1813_v21  ;;  %v5005_v0 = vsub.f32 %v1753_v1, %v1813_v21  ;;  %v6150_v28 = vld [vmem:[#allocation20_spill] sm:$0xff] }
 0x31f   : > { %v1900_v54 = vadd.f32 %v1876_v61, %v1872_v53  ;;  %v1845_v45 = vmul.f32 %v4968_v24, %v4968_v24  ;;  %v1849_v39 = vmul.f32 %v4972_v11, %v4972_v11  ;;  %v1853_v6 = vmul.f32 %v4994_v7, %v4994_v7 }
 0x320   : > { %v1794_v46 = vrot.slane %v1793_v37, 4  ;;  %v1864_v42 = vmul.f32 %v4980_v9, %v4980_v9  ;;  %v1884_v58 = vmul.f32 %v1856_v29, %v6149_v14  ;;  %v5018_v3 = vsub.f32 %v1757_v40, %v1813_v21 }
 0x321   : > { %v1901_v41 = vadd.f32 %v1900_v54, %v1880_v44  ;;  %v1868_v1 = vmul.f32 %v4988_v15, %v4988_v15  ;;  %v1857_v16 = vmul.f32 %v5001_v23, %v5001_v23  ;;  %v1873_v4 = vmul.f32 %v1845_v45, %v6130_v34 }
 0x322   : > { %v1877_v57 = vmul.f32 %v1849_v39, %v6147_v20  ;;  %v1888_v53 = vmul.f32 %v1860_v2, %v6150_v28  ;;  %v6151_v29 = vmax.f32 %v4851_v49, 0.0  ;;  %v1861_v63 = vmul.f32 %v5005_v0, %v5005_v0 }
 0x323   : > { %v1902_v61 = vadd.f32 %v1901_v41, %v1884_v58  ;;  %v1881_v40 = vmul.f32 %v1853_v6, %v6148_v52  ;;  %v1795_v32 = vadd.f32 %v1794_v46, %v1793_v37  ;;  %v1806_v30 = vrot.slane %v1805_v47, 4  ;;  %v6153_v41 = vld [vmem:[#allocation23_spill] sm:$0xff] }
 0x324   : > { %v5029_v44 = vsub.f32 %v6151_v29, %v1813_v21  ;;  %v1912_v54 = vadd.f32 %v1877_v57, %v1873_v4  ;;  %v1892_v31 = vmul.f32 %v1864_v42, %v6152_v8  ;;  %v1865_v39 = vmul.f32 %v5018_v3, %v5018_v3 }
 0x325   : > { %v1903_v45 = vadd.f32 %v1902_v61, %v1888_v53  ;;  %v1885_v2 = vmul.f32 %v1857_v16, %v6149_v14  ;;  %v1796_v49 = vrot.slane %v1795_v32, 2  ;;  %v1807_v21 = vadd.f32 %v1806_v30, %v1805_v47 }
 0x326   : > { %v1913_v58 = vadd.f32 %v1912_v54, %v1881_v40  ;;  %v1896_v29 = vmul.f32 %v1868_v1, %v6153_v41  ;;  %v1869_v6 = vmul.f32 %v5029_v44, %v5029_v44  ;;  %v1889_v37 = vmul.f32 %v1861_v63, %v6150_v28 }
 0x327   : > { %v1904_v51 = vadd.f32 %v1903_v45, %v1892_v31  ;;  %v1797_v4 = vadd.f32 %v1796_v49, %v1795_v32  ;;  %v1808_v42 = vrot.slane %v1807_v21, 2  ;;  %v1893_v53 = vmul.f32 %v1865_v39, %v6152_v8 }
 0x328   : > { %v1914_v46 = vadd.f32 %v1913_v58, %v1885_v2  ;;  %v1897_v30 = vmul.f32 %v1869_v6, %v6153_v41  ;;  %v6154_v32 = vmax.f32 %v4865_v62, 0.0  ;;  %v6156_v58 = vmax.f32 %v4873_v26, 0.0  ;;  %v5062_v6 = vpop.permute.xlu2 %2105 }
 0x329   : > { %v1905_v57 = vadd.f32 %v1904_v51, %v1896_v29  ;;  %v1798_v19 = vrot.slane %v1797_v4, 1  ;;  %v1809_v40 = vadd.f32 %v1808_v42, %v1807_v21  ;;  %v6155_v51 = vmax.f32 %v4859_v10, 0.0  ;;  %v5056_v21 = vpop.permute.xlu1 %2045 }
 0x32a   : > { %v1915_v61 = vadd.f32 %v1914_v46, %v1889_v37  ;;  %v6157_v37 = vmax.f32 %v4894_v48, 0.0  ;;  %v6158_v42 = vmax.f32 %v4906_v43, 0.0 }
 0x32b   : > { %v1906_v16 = vrot.slane %v1905_v57, 4  ;;  %v1799_v1 = vadd.f32 %v1798_v19, %v1797_v4  ;;  %v1810_v22 = vrot.slane %v1809_v40, 1 }
 0x32c   : > { %v1916_v47 = vadd.f32 %v1915_v61, %v1893_v53 }
 0x32d   : > { %v1907_v31 = vadd.f32 %v1906_v16, %v1905_v57  ;;  %v1814_v45 = vmul.f32 0.02, %v1799_v1  ;;  %v1811_v33 = vadd.f32 %v1810_v22, %v1809_v40 }
 0x32e   : > { %v1917_v54 = vadd.f32 %v1916_v47, %v1897_v30  ;;  %v6159_v47 = vmax.f32 %v4919_v5, 0.0  ;;  %v6160_v5 = vmax.f32 %v4877_v38, 0.0 }
 0x32f   : > { %v1908_v36 = vrot.slane %v1907_v31, 2  ;;  %v5046_v2 = vsub.f32 %v6154_v32, %v1814_v45  ;;  %v5050_v39 = vsub.f32 %v6155_v51, %v1814_v45  ;;  %v5054_v49 = vsub.f32 %v6156_v58, %v1814_v45 }
 0x330   : > { %v1918_v63 = vrot.slane %v1917_v54, 4  ;;  %v5060_v29 = vsub.f32 %v1750_v56, %v1814_v45  ;;  %v5066_v46 = vsub.f32 %v6157_v37, %v1814_v45  ;;  %v5076_v57 = vsub.f32 %v6158_v42, %v1814_v45 }
 0x331   : > { %v1909_v19 = vadd.f32 %v1908_v36, %v1907_v31  ;;  %v1846_v10 = vmul.f32 %v5046_v2, %v5046_v2  ;;  %v1850_v26 = vmul.f32 %v5050_v39, %v5050_v39  ;;  %v1854_v36 = vmul.f32 %v5054_v49, %v5054_v49 }
 0x332   : > { %v1919_v62 = vadd.f32 %v1918_v63, %v1917_v54  ;;  %v1858_v48 = vmul.f32 %v5060_v29, %v5060_v29  ;;  %v5084_v1 = vsub.f32 %v6159_v47, %v1814_v45  ;;  %v1862_v22 = vmul.f32 %v5066_v46, %v5066_v46 }
 0x333   : > { %v1910_v4 = vrot.slane %v1909_v19, 1  ;;  %v1874_v53 = vmul.f32 %v1846_v10, %v6130_v34  ;;  %v1878_v16 = vmul.f32 %v1850_v26, %v6147_v20  ;;  %v1882_v43 = vmul.f32 %v1854_v36, %v6148_v52 }
 0x334   : > { %v1920_v56 = vrot.slane %v1919_v62, 2  ;;  %v1815_v54 = vmul.f32 0.02, %v1811_v33  ;;  %v1866_v32 = vmul.f32 %v5076_v57, %v5076_v57  ;;  %v1886_v51 = vmul.f32 %v1858_v48, %v6149_v14  ;;  %v5106_v33 = vpop.permute.xlu1 %2041 }
 0x335   : > { %v1911_v61 = vadd.f32 %v1910_v4, %v1909_v19  ;;  %v1924_v31 = vadd.f32 %v1878_v16, %v1874_v53  ;;  %v1870_v26 = vmul.f32 %v5084_v1, %v5084_v1  ;;  %v6162_v4 = vmax.f32 %v4881_v50, 0.0 }
 0x336   : > { %v1921_v30 = vadd.f32 %v1920_v56, %v1919_v62  ;;  %v5094_v45 = vsub.f32 %v6160_v5, %v1815_v54  ;;  %v6161_v62 = vmax.f32 %v4870_v18, 0.0  ;;  %v1890_v56 = vmul.f32 %v1862_v22, %v6150_v28  ;;  %v5113_v18 = vpop.permute.xlu2 %2101 }
 0x337   : > { %v1948_v40 = vmul.f32 0.02, %v1911_v61  ;;  %v1925_v19 = vadd.f32 %v1924_v31, %v1882_v43  ;;  %v5104_v36 = vsub.f32 %v6162_v4, %v1815_v54  ;;  %v6163_v42 = vmax.f32 %v4890_v25, 0.0 }
 0x338   : > { %v1922_v63 = vrot.slane %v1921_v30, 1  ;;  %v5098_v37 = vsub.f32 %v6161_v62, %v1815_v54  ;;  %v1847_v61 = vmul.f32 %v5094_v45, %v5094_v45  ;;  %v1894_v16 = vmul.f32 %v1866_v32, %v6152_v8 }
 0x339   : > { %v1952_v58 = vadd.f32 1e-05, %v1948_v40  ;;  %v1926_v38 = vadd.f32 %v1925_v19, %v1886_v51  ;;  %v5111_v48 = vsub.f32 %v6163_v42, %v1815_v54  ;;  %v6164_v47 = vmax.f32 %v4903_v59, 0.0  ;;  %v5126_v40 = vpop.permute.xlu0 %2049 }
 0x33a   : > { %v1923_v10 = vadd.f32 %v1922_v63, %v1921_v30  ;;  %v1851_v50 = vmul.f32 %v5098_v37, %v5098_v37  ;;  %v1855_v25 = vmul.f32 %v5104_v36, %v5104_v36  ;;  %v1898_v31 = vmul.f32 %v1870_v26, %v6153_v41 }
 0x33b   : > { %3364 = vrsqrt.f32 %v1952_v58  ;;  %v1927_v30 = vadd.f32 %v1926_v38, %v1890_v56  ;;  %v5122_v22 = vsub.f32 %v6164_v47, %v1815_v54  ;;  %v1875_v63 = vmul.f32 %v1847_v61, %v6130_v34 }
 0x33c   : > { %v1949_v53 = vmul.f32 0.02, %v1923_v10  ;;  %v6165_v19 = vmax.f32 %v4917_v35, 0.0  ;;  %v1859_v59 = vmul.f32 %v5111_v48, %v5111_v48  ;;  %v1879_v32 = vmul.f32 %v1851_v50, %v6147_v20 }
 0x33d   : > { %v1928_v51 = vadd.f32 %v1927_v30, %v1894_v16  ;;  %v6166_v62 = vmax.f32 %v4927_v13, 0.0  ;;  %v1863_v26 = vmul.f32 %v5122_v22, %v5122_v22  ;;  %v1883_v38 = vmul.f32 %v1855_v25, %v6148_v52  ;;  %v5147_v13 = vpop.permute.xlu1 %2097 }
 0x33e   : > { %v1953_v43 = vadd.f32 1e-05, %v1949_v53  ;;  %v5132_v5 = vsub.f32 %v6165_v19, %v1815_v54  ;;  %v1936_v35 = vadd.f32 %v1879_v32, %v1875_v63  ;;  %v1887_v50 = vmul.f32 %v1859_v59, %v6149_v14  ;;  %v5152_v25 = vpop.permute.xlu2 %2033 }
 0x33f   : > { %v5139_v10 = vsub.f32 %v6166_v62, %v1815_v54  ;;  %v1929_v56 = vadd.f32 %v1928_v51, %v1898_v31  ;;  %v1891_v31 = vmul.f32 %v1863_v26, %v6150_v28  ;;  %vm1962_vm10 = vweird.f32 %v1952_v58 }
 0x340   : > { %3366 = vrsqrt.f32 %v1953_v43  ;;  %v1867_v61 = vmul.f32 %v5132_v5, %v5132_v5  ;;  %v1937_v16 = vadd.f32 %v1936_v35, %v1883_v38  ;;  %vm1972_vm13 = vweird.f32 %v1953_v43 }
 0x341   : > { %v3365_v4 = vpop.eup %3364  ;;  %v1930_v53 = vrot.slane %v1929_v56, 4  ;;  %v1871_v47 = vmul.f32 %v5139_v10, %v5139_v10  ;;  %v5155_v38 = vpop.permute.xlu0 %2037 }
 0x342   : > { %v1957_v42 = vmul.f32 %v3365_v4, %v1952_v58  ;;  %v1938_v51 = vadd.f32 %v1937_v16, %v1887_v50  ;;  %v1895_v52 = vmul.f32 %v1867_v61, %v6152_v8  ;;  %vm1963_vm9 = vweird.f32 %v3365_v4 }
 0x343   : > { %v1931_v54 = vadd.f32 %v1930_v53, %v1929_v56  ;;  %v1899_v53 = vmul.f32 %v1871_v47, %v6153_v41  ;;  %vm1964_vm11 = vmor %vm1962_vm10, %vm1963_vm9 }
 0x344   : > { %v1958_v30 = vmul.f32 %v3365_v4, %v1957_v42  ;;  %v1939_v59 = vadd.f32 %v1938_v51, %v1891_v31 }
 0x345   : > { %v1932_v62 = vrot.slane %v1931_v54, 2  ;;  %v5163_v47 = vpop.permute.xlu1 %2029 }
 0x346   : > { %v3367_v63 = vpop.eup %3366  ;;  %v1959_v19 = vmul.f32 0.5, %v1958_v30  ;;  %v1940_v14 = vadd.f32 %v1939_v59, %v1895_v52 }
 0x347   : > { %v1967_v32 = vmul.f32 %v3367_v63, %v1953_v43  ;;  %v1933_v42 = vadd.f32 %v1932_v62, %v1931_v54  ;;  %vm1973_vm14 = vweird.f32 %v3367_v63 }
 0x348   : > { %v1960_v35 = vsub.f32 1.5, %v1959_v19  ;;  %v1941_v30 = vadd.f32 %v1940_v14, %v1899_v53  ;;  %vm1974_vm15 = vmor %vm1972_vm13, %vm1973_vm14 }
 0x349   : > { %v1968_v56 = vmul.f32 %v3367_v63, %v1967_v32  ;;  %v1934_v16 = vrot.slane %v1933_v42, 1 }
 0x34a   : > { %v1961_v26 = vmul.f32 %v3365_v4, %v1960_v35  ;;  %v1942_v19 = vrot.slane %v1941_v30, 4  ;;  %v5166_v35 = vpop.permute.xlu2 %2089 }
 0x34b   : > { %v1969_v50 = vmul.f32 0.5, %v1968_v56  ;;  %v1935_v51 = vadd.f32 %v1934_v16, %v1933_v42  ;;  %v5174_v56 = vpop.permute.xlu0 %2093 }
 0x34c   : > { %v1965_v28 = vsel %vm1964_vm11, %v3365_v4, %v1961_v26  ;;  %v1943_v4 = vadd.f32 %v1942_v19, %v1941_v30 }
 0x34d   : > { %v2020_v61 = vmul.f32 %v1965_v28, %v4988_v15  ;;  %v1970_v31 = vsub.f32 1.5, %v1969_v50  ;;  %v2016_v32 = vmul.f32 %v1965_v28, %v4980_v9  ;;  %v2012_v54 = vmul.f32 %v1965_v28, %v4955_v27 }
 0x34e   : > { %v2004_v52 = vmul.f32 %v1965_v28, %v4945_v55  ;;  %v2008_v58 = vmul.f32 %v1965_v28, %v4949_v17  ;;  %v1950_v14 = vmul.f32 0.02, %v1935_v51  ;;  %v1944_v55 = vrot.slane %v1943_v4, 2 }
 0x34f   : > { %v1971_v62 = vmul.f32 %v3367_v63, %v1970_v31  ;;  %v2076_v59 = vmul.f32 %v5126_v40, %v2020_v61  ;;  %v2072_v9 = vmul.f32 %v5056_v21, %v2016_v32  ;;  %v2068_v17 = vmul.f32 %v5106_v33, %v2012_v54 }
 0x350   : > { %v5171_v27 = vadd.f32 1e-05, %v1950_v14  ;;  %v1945_v43 = vadd.f32 %v1944_v55, %v1943_v4  ;;  %v2064_v16 = vmul.f32 %v5155_v38, %v2008_v58  ;;  %v2000_v19 = vmul.f32 %v1965_v28, %v4941_v12  ;;  %v5199_v55 = vpop.permute.xlu1 %2025 }
 0x351   : > { %v1975_v15 = vsel %vm1974_vm15, %v3367_v63, %v1971_v62  ;;  %v2132_v50 = vadd.f32 %v5062_v6, %v2076_v59  ;;  %v2060_v63 = vmul.f32 %v5152_v25, %v2004_v52  ;;  %v2128_v31 = vadd.f32 %v5113_v18, %v2072_v9 }
 0x352   : > { %v2021_v42 = vmul.f32 %v1975_v15, %v5029_v44  ;;  %v2017_v53 = vmul.f32 %v1975_v15, %v5018_v3  ;;  %v2013_v26 = vmul.f32 %v1975_v15, %v5005_v0  ;;  %3368 = vrsqrt.f32 %v5171_v27 }
 0x353   : > { %v1946_v3 = vrot.slane %v1945_v43, 1  ;;  %v2005_v0 = vmul.f32 %v1975_v15, %v4994_v7  ;;  %v2009_v51 = vmul.f32 %v1975_v15, %v5001_v23  ;;  %v2160_v54 = vmax.f32 %v2132_v50, 0.0  ;;  %v5204_v50 = vpop.permute.xlu2 %2085 }
 0x354   : > { %v2073_v30 = vmul.f32 %v5056_v21, %v2017_v53  ;;  %v2069_v61 = vmul.f32 %v5106_v33, %v2013_v26  ;;  %v2077_v44 = vmul.f32 %v5126_v40, %v2021_v42  ;;  %v2124_v52 = vadd.f32 %v5147_v13, %v2068_v17 }
 0x355   : > { %v2001_v58 = vmul.f32 %v1975_v15, %v4972_v11  ;;  %v1947_v62 = vadd.f32 %v1946_v3, %v1945_v43  ;;  %v2061_v4 = vmul.f32 %v5152_v25, %v2005_v0  ;;  %v2065_v59 = vmul.f32 %v5155_v38, %v2009_v51 }
 0x356   : > { %v2133_v32 = vadd.f32 %v5062_v6, %v2077_v44  ;;  %v2129_v14 = vadd.f32 %v5113_v18, %v2073_v30  ;;  %v2125_v7 = vadd.f32 %v5147_v13, %v2069_v61  ;;  %v2056_v23 = vmul.f32 %v5163_v47, %v2000_v19 }
 0x357   : > { %v2057_v12 = vmul.f32 %v5163_v47, %v2001_v58  ;;  %v1951_v17 = vmul.f32 0.02, %v1947_v62  ;;  %v2116_v11 = vadd.f32 %v5166_v35, %v2060_v63  ;;  %v2120_v53 = vadd.f32 %v5174_v56, %v2064_v16  ;;  %v5214_v16 = vpop.permute.xlu0 %2081 }
 0x358   : > { %v2161_v9 = vmax.f32 %v2133_v32, 0.0  ;;  %v3369_v42 = vpop.eup %3368  ;;  %v1996_v26 = vmul.f32 %v1965_v28, %v4937_v60  ;;  %vm1982_vm0 = vweird.f32 %v5171_v27  ;;  %v2117_v30 = vadd.f32 %v5166_v35, %v2061_v4 }
 0x359   : > { %v1977_v43 = vmul.f32 %v3369_v42, %v5171_v27  ;;  %v2121_v61 = vadd.f32 %v5174_v56, %v2065_v59  ;;  %v1997_v44 = vmul.f32 %v1975_v15, %v4968_v24  ;;  %vm1983_vm1 = vweird.f32 %v3369_v42 }
 0x35a   : > { %v5211_v3 = vadd.f32 1e-05, %v1951_v17  ;;  %v2052_v63 = vmul.f32 %v5199_v55, %v1996_v26  ;;  %v2188_v60 = vmul.f32 %v2160_v54, %v2160_v54  ;;  %v5217_v0 = vadd.f32 %v5204_v50, %v2056_v23  ;;  %vm1984_vm2 = vmor %vm1982_vm0, %vm1983_vm1 }
 0x35b   : > { %v1978_v28 = vmul.f32 %v3369_v42, %v1977_v43  ;;  %v2189_v51 = vmul.f32 %v2161_v9, %v2161_v9  ;;  %v2156_v19 = vmax.f32 %v2128_v31, 0.0  ;;  %v2053_v32 = vmul.f32 %v5199_v55, %v1997_v44 }
 0x35c   : > { %3370 = vrsqrt.f32 %v5211_v3  ;;  %v5222_v24 = vadd.f32 %v5204_v50, %v2057_v12  ;;  %v2216_v15 = vmul.f32 %v2188_v60, %v2160_v54  ;;  %v5225_v62 = vadd.f32 %v5214_v16, %v2052_v63 }
 0x35d   : > { %v1979_v58 = vmul.f32 0.5, %v1978_v28  ;;  %v2217_v4 = vmul.f32 %v2189_v51, %v2161_v9  ;;  %v2184_v59 = vmul.f32 %v2156_v19, %v2156_v19  ;;  %v2157_v17 = vmax.f32 %v2129_v14, 0.0 }
 0x35e   : > { %2286 = vmatpush.msra.mxu0 %v2216_v15  ;;  %v2152_v23 = vmax.f32 %v2124_v52, 0.0  ;;  %v2153_v26 = vmax.f32 %v2125_v7, 0.0  ;;  %v2148_v43 = vmax.f32 %v2120_v53, 0.0  ;;  %v2149_v8 = vmax.f32 %v2121_v61, 0.0 }
 0x35f   : > { %v1980_v31 = vsub.f32 1.5, %v1979_v58  ;;  %2324 = vmatpush.msra.mxu1 %v2217_v4  ;;  %v2212_v41 = vmul.f32 %v2184_v59, %v2156_v19  ;;  %v2144_v44 = vmax.f32 %v2116_v11, 0.0  ;;  %v2185_v20 = vmul.f32 %v2157_v17, %v2157_v17 }
 0x360   : > { %v2180_v12 = vmul.f32 %v2152_v23, %v2152_v23  ;;  %v2181_v34 = vmul.f32 %v2153_v26, %v2153_v26  ;;  %v2176_v54 = vmul.f32 %v2148_v43, %v2148_v43  ;;  %v2109_v63 = vadd.f32 %v5214_v16, %v2053_v32 }
 0x361   : > { %v1981_v60 = vmul.f32 %v3369_v42, %v1980_v31  ;;  %2287 = vmatpush.msra.mxu0 %v2212_v41  ;;  %v2177_v9 = vmul.f32 %v2149_v8, %v2149_v8  ;;  %v2172_v28 = vmul.f32 %v2144_v44, %v2144_v44  ;;  %v2213_v52 = vmul.f32 %v2185_v20, %v2157_v17 }
 0x362   : > { %v3371_v51 = vpop.eup %3370  ;;  %v2208_v14 = vmul.f32 %v2180_v12, %v2152_v23  ;;  %v2209_v7 = vmul.f32 %v2181_v34, %v2153_v26  ;;  %v2145_v53 = vmax.f32 %v2117_v30, 0.0  ;;  %vm1992_vm3 = vweird.f32 %v5211_v3 }
 0x363   : > { %v1985_v11 = vsel %vm1984_vm2, %v3369_v42, %v1981_v60  ;;  %v1987_v61 = vmul.f32 %v3371_v51, %v5211_v3  ;;  %v2204_v19 = vmul.f32 %v2176_v54, %v2148_v43  ;;  %v2205_v15 = vmul.f32 %v2177_v9, %v2149_v8  ;;  %2325 = vmatpush.msra.mxu1 %v2213_v52 }
 0x364   : > { %v2022_v41 = vmul.f32 %v1985_v11, %v5084_v1  ;;  %v2018_v32 = vmul.f32 %v1985_v11, %v5076_v57  ;;  %v2014_v58 = vmul.f32 %v1985_v11, %v5066_v46  ;;  %v2006_v27 = vmul.f32 %v1985_v11, %v5054_v49  ;;  %2288 = vmatpush.msra.mxu0 %v2208_v14 }
 0x365   : > { %v1988_v20 = vmul.f32 %v3371_v51, %v1987_v61  ;;  %v2010_v34 = vmul.f32 %v1985_v11, %v5060_v29  ;;  %v2002_v42 = vmul.f32 %v1985_v11, %v5050_v39  ;;  %v1998_v30 = vmul.f32 %v1985_v11, %v5046_v2  ;;  %2326 = vmatpush.msra.mxu1 %v2209_v7 }
 0x366   : > { %v2074_v4 = vmul.f32 %v5056_v21, %v2018_v32  ;;  %v2070_v8 = vmul.f32 %v5106_v33, %v2014_v58  ;;  %v2078_v1 = vmul.f32 %v5126_v40, %v2022_v41  ;;  %v2062_v57 = vmul.f32 %v5152_v25, %v2006_v27  ;;  %2289 = vmatpush.msra.mxu0 %v2204_v19 }
 0x367   : > { %v1989_v46 = vmul.f32 0.5, %v1988_v20  ;;  %vm1993_vm4 = vweird.f32 %v3371_v51  ;;  %v2066_v49 = vmul.f32 %v5155_v38, %v2010_v34  ;;  %v2058_v29 = vmul.f32 %v5163_v47, %v2002_v42  ;;  %2327 = vmatpush.msra.mxu1 %v2205_v15 }
 0x368   : > { %v2130_v39 = vadd.f32 %v5113_v18, %v2074_v4  ;;  %v2134_v2 = vadd.f32 %v5062_v6, %v2078_v1  ;;  %v2126_v59 = vadd.f32 %v5147_v13, %v2070_v8  ;;  %v2054_v17 = vmul.f32 %v5199_v55, %v1998_v30  ;;  %vm1994_vm5 = vmor %vm1992_vm3, %vm1993_vm4  ;;  %v5282_v1 = vld [vmem:[#allocation2 + $0x70] sm:$0xff] }
 0x369   : > { %v1990_v23 = vsub.f32 1.5, %v1989_v46  ;;  %v2118_v26 = vadd.f32 %v5166_v35, %v2062_v57  ;;  %v2122_v43 = vadd.f32 %v5174_v56, %v2066_v49  ;;  %v5253_v31 = vadd.f32 %v5204_v50, %v2058_v29 }
 0x36a   : > { %v2162_v12 = vmax.f32 %v2134_v2, 0.0  ;;  %v2200_v54 = vmul.f32 %v2172_v28, %v2144_v44  ;;  %v2173_v60 = vmul.f32 %v2145_v53, %v2145_v53  ;;  %v2140_v9 = vmax.f32 %v5217_v0, 0.0 }
 0x36b   : > { %v1991_v52 = vmul.f32 %v3371_v51, %v1990_v23  ;;  %v2141_v14 = vmax.f32 %v5222_v24, 0.0  ;;  %v2136_v7 = vmax.f32 %v5225_v62, 0.0  ;;  %v2137_v11 = vmax.f32 %v2109_v63, 0.0 }
 0x36c   : > { %2290 = vmatpush.msra.mxu0 %v2200_v54  ;;  %v2201_v61 = vmul.f32 %v2173_v60, %v2145_v53  ;;  %v2168_v19 = vmul.f32 %v2140_v9, %v2140_v9  ;;  %v2190_v15 = vmul.f32 %v2162_v12, %v2162_v12  ;;  %v2158_v41 = vmax.f32 %v2130_v39, 0.0 }
 0x36d   : > { %v1995_v32 = vsel %vm1994_vm5, %v3371_v51, %v1991_v52  ;;  %v2169_v44 = vmul.f32 %v2141_v14, %v2141_v14  ;;  %v2164_v28 = vmul.f32 %v2136_v7, %v2136_v7  ;;  %v2165_v58 = vmul.f32 %v2137_v11, %v2137_v11 }
 0x36e   : > { %v2023_v0 = vmul.f32 %v1995_v32, %v5139_v10  ;;  %v2019_v24 = vmul.f32 %v1995_v32, %v5132_v5  ;;  %v2015_v62 = vmul.f32 %v1995_v32, %v5122_v22  ;;  %v2007_v63 = vmul.f32 %v1995_v32, %v5104_v36  ;;  %2328 = vmatpush.msra.mxu1 %v2201_v61  ;;  %v2222_v61 = vld [vmem:[#allocation2 + $0x78] sm:$0xff] }
 0x36f   : > { %v2011_v3 = vmul.f32 %v1995_v32, %v5111_v48  ;;  %v2003_v53 = vmul.f32 %v1995_v32, %v5098_v37  ;;  %v1999_v27 = vmul.f32 %v1995_v32, %v5094_v45  ;;  %v2196_v20 = vmul.f32 %v2168_v19, %v2140_v9 }
 0x370   : > { %v2075_v51 = vmul.f32 %v5056_v21, %v2019_v24  ;;  %v2071_v34 = vmul.f32 %v5106_v33, %v2015_v62  ;;  %v2079_v10 = vmul.f32 %v5126_v40, %v2023_v0  ;;  %v2063_v5 = vmul.f32 %v5152_v25, %v2007_v63 }
 0x371   : > { %v2067_v22 = vmul.f32 %v5155_v38, %v2011_v3  ;;  %v2059_v36 = vmul.f32 %v5163_v47, %v2003_v53  ;;  %v2110_v42 = vadd.f32 %v5214_v16, %v2054_v17  ;;  %2291 = vmatpush.msra.mxu0 %v2196_v20  ;;  %v2197_v48 = vmul.f32 %v2169_v44, %v2141_v14  ;;  %v5301_v3 = vld [vmem:[%s5983_s2 + $0x10] sm:$0xff]  ;;  %v3396_v20 = vld [vmem:[%s5983_s2 + $0x8] sm:$0xff] }
 0x372   : > { %v2131_v37 = vadd.f32 %v5113_v18, %v2075_v51  ;;  %v2135_v45 = vadd.f32 %v5062_v6, %v2079_v10  ;;  %v2127_v21 = vadd.f32 %v5147_v13, %v2071_v34  ;;  %v2055_v33 = vmul.f32 %v5199_v55, %v1999_v27  ;;  %v2223_v27 = vld [vmem:[#allocation2 + $0x80] sm:$0xff]  ;;  %v3397_v51 = vld [vmem:[%s5983_s2 + $0x18] sm:$0xff]  ;;  %v2224_v34 = vld [vmem:[#allocation2 + $0x88] sm:$0xff] }
 0x373   : > { %v2119_v40 = vadd.f32 %v5166_v35, %v2063_v5  ;;  %v2123_v25 = vadd.f32 %v5174_v56, %v2067_v22  ;;  %v2115_v38 = vadd.f32 %v5204_v50, %v2059_v36  ;;  %2329 = vmatpush.msra.mxu1 %v2197_v48  ;;  %v2192_v47 = vmul.f32 %v2164_v28, %v2136_v7  ;;  %v3398_v10 = vld [vmem:[%s5983_s2 + $0x20] sm:$0xff]  ;;  %v3399_v5 = vld [vmem:[%s5983_s2 + $0x28] sm:$0xff]  ;;  %v2225_v22 = vld [vmem:[#allocation2 + $0x90] sm:$0xff] }
 0x374   : > { %v2163_v30 = vmax.f32 %v2135_v45, 0.0  ;;  %v2193_v4 = vmul.f32 %v2165_v58, %v2137_v11  ;;  %v2218_v8 = vmul.f32 %v2190_v15, %v2162_v12  ;;  %v2186_v18 = vmul.f32 %v2158_v41, %v2158_v41  ;;  %v3400_v36 = vld [vmem:[%s5983_s2 + $0x30] sm:$0xff]  ;;  %v2226_v48 = vld [vmem:[#allocation2 + $0x98] sm:$0xff] }
 0x375   : > { %2292 = vmatpush.msra.mxu0 %v2192_v47  ;;  %v2159_v6 = vmax.f32 %v2131_v37, 0.0  ;;  %v2154_v57 = vmax.f32 %v2126_v59, 0.0  ;;  %v2155_v13 = vmax.f32 %v2127_v21, 0.0  ;;  %v2150_v46 = vmax.f32 %v2122_v43, 0.0  ;;  %v2227_v37 = vld [vmem:[#allocation2 + $0xa0] sm:$0xff] }
 0x376   : > { %2330 = vmatpush.msra.mxu1 %v2193_v4  ;;  %2362 = vmatpush.msra.mxu2 %v2218_v8  ;;  %v2191_v35 = vmul.f32 %v2163_v30, %v2163_v30  ;;  %v2214_v55 = vmul.f32 %v2186_v18, %v2158_v41  ;;  %v2151_v56 = vmax.f32 %v2123_v25, 0.0  ;;  %v2146_v49 = vmax.f32 %v2118_v26, 0.0 }
 0x377   : > { %3192 = vmatmul.msk.f32.vlgmr.msra.gmra.mxu0 %vm869_vm12, %v5282_v1  ;;  %3199 = vmatmul.msk.f32.vlgmr.msra.gmra.mxu1 %vm869_vm12, %v5282_v1  ;;  %v2187_v50 = vmul.f32 %v2159_v6, %v2159_v6  ;;  %v2182_v29 = vmul.f32 %v2154_v57, %v2154_v57  ;;  %v2183_v39 = vmul.f32 %v2155_v13, %v2155_v13  ;;  %v2147_v23 = vmax.f32 %v2119_v40, 0.0 }
 0x378   : > { %v2111_v2 = vadd.f32 %v5214_v16, %v2055_v33  ;;  %v2219_v59 = vmul.f32 %v2191_v35, %v2163_v30  ;;  %2363 = vmatpush.msra.mxu2 %v2214_v55  ;;  %v2178_v17 = vmul.f32 %v2150_v46, %v2150_v46  ;;  %v2174_v12 = vmul.f32 %v2146_v49, %v2146_v49 }
 0x379   : > { %v2210_v43 = vmul.f32 %v2182_v29, %v2154_v57  ;;  %v2215_v54 = vmul.f32 %v2187_v50, %v2159_v6  ;;  %v2179_v26 = vmul.f32 %v2151_v56, %v2151_v56  ;;  %v2142_v60 = vmax.f32 %v5253_v31, 0.0  ;;  %v5293_v31 = vld [vmem:[%s5983_s2] sm:$0xff] }
 0x37a   : > { %2400 = vmatpush.msra.mxu3 %v2219_v59  ;;  %v2211_v9 = vmul.f32 %v2183_v39, %v2155_v13  ;;  %v2206_v52 = vmul.f32 %v2178_v17, %v2150_v46  ;;  %v2143_v14 = vmax.f32 %v2115_v38, 0.0  ;;  %v2138_v7 = vmax.f32 %v2110_v42, 0.0 }
 0x37b   : > { %2364 = vmatpush.msra.mxu2 %v2210_v43  ;;  %v2175_v11 = vmul.f32 %v2147_v23, %v2147_v23  ;;  %v2170_v16 = vmul.f32 %v2142_v60, %v2142_v60  ;;  %v2139_v19 = vmax.f32 %v2111_v2, 0.0  ;;  %v2202_v15 = vmul.f32 %v2174_v12, %v2146_v49 }
 0x37c   : > { %2401 = vmatpush.msra.mxu3 %v2215_v54  ;;  %v2166_v41 = vmul.f32 %v2138_v7, %v2138_v7  ;;  %v3513_v32 = vmov 4   ;;  %v2207_v44 = vmul.f32 %v2179_v26, %v2151_v56  ;;  %v2171_v28 = vmul.f32 %v2143_v14, %v2143_v14 }
 0x37d   : > { %2365 = vmatpush.msra.mxu2 %v2206_v52  ;;  %3335 = vset.pattern.permute.xlu1 %v3513_v32  ;;  %v2198_v58 = vmul.f32 %v2170_v16, %v2142_v60  ;;  %v2203_v0 = vmul.f32 %v2175_v11, %v2147_v23  ;;  %v2167_v24 = vmul.f32 %v2139_v19, %v2139_v19  ;;  %v3514_v42 = vmov 8  }
 0x37e   : > { %2402 = vmatpush.msra.mxu3 %v2211_v9  ;;  %2229 = vperm.xlu1 %3335, %v5293_v31   ;;  %v2194_v62 = vmul.f32 %v2166_v41, %v2138_v7  ;;  %v2199_v63 = vmul.f32 %v2171_v28, %v2143_v14  ;;  %v3515_v45 = vmov 12   ;;  %v3516_v21 = vmov 13  }
 0x37f   : > { %2366 = vmatpush.msra.mxu2 %v2202_v15  ;;  %3193 = vmatmul.msk.f32.gmra.mxu0 %vm869_vm12, %v2222_v61  ;;  %v2195_v53 = vmul.f32 %v2167_v24, %v2139_v19  ;;  %v3517_v8 = vmov 14   ;;  %vm3032_vm2 = vcmask 1040384   ;;  %vm3034_vm3 = vcmask 1042434  }
 0x380   : > { %2403 = vmatpush.msra.mxu3 %v2207_v44  ;;  %3200 = vmatmul.msk.f32.gmra.mxu1 %vm869_vm12, %v2222_v61  ;;  %vm3036_vm4 = vcmask 1041408  }
 0x381   : > { %2367 = vmatpush.msra.mxu2 %v2198_v58  ;;  %3337 = vset.pattern.permute.xlu0 %v3513_v32 }
 0x382   : > { %2404 = vmatpush.msra.mxu3 %v2203_v0  ;;  %2237 = vperm.xlu0 %3337, %v5301_v3  }
 0x383   : > { %2368 = vmatpush.msra.mxu2 %v2194_v62  ;;  %3336 = vset.pattern.permute.xlu2 %v3513_v32 }
 0x384   : > { %2405 = vmatpush.msra.mxu3 %v2199_v63  ;;  %3206 = vmatmul.msk.f32.vlgmr.msra.gmra.mxu2 %vm869_vm12, %v5282_v1 }
 0x385   : > { %2233 = vperm.xlu2 %3336, %v3396_v20  }
 0x386   : > { %2406 = vmatpush.msra.mxu3 %v2195_v53  ;;  %2241 = vperm.xlu1 %3335, %v3397_v51  }
 0x387   : > { %3213 = vmatmul.msk.f32.vlgmr.msra.gmra.mxu3 %vm869_vm12, %v5282_v1  ;;  %3194 = vmatmul.msk.f32.gmra.mxu0 %vm869_vm12, %v2223_v27 }
 0x388   : > { %3201 = vmatmul.msk.f32.gmra.mxu1 %vm869_vm12, %v2223_v27 }
 0x38a   : > { %3338 = vset.pattern.permute.xlu0 %v3514_v42 }
 0x38b   : > { %2718 = vperm.xlu0 %3338, %v5293_v31  }
 0x38c   : > { %3207 = vmatmul.msk.f32.gmra.mxu2 %vm869_vm12, %v2222_v61 }
 0x38d   : > { %2245 = vperm.xlu2 %3336, %v3398_v10  }
 0x38e   : > { %2249 = vperm.xlu1 %3335, %v3399_v5  }
 0x38f   : > { %3214 = vmatmul.msk.f32.gmra.mxu3 %vm869_vm12, %v2222_v61  ;;  %3195 = vmatmul.msk.f32.gmra.mxu0 %vm869_vm12, %v2224_v34 }
 0x390   : > { %3202 = vmatmul.msk.f32.gmra.mxu1 %vm869_vm12, %v2224_v34 }
 0x393   : > { %2738 = vperm.xlu0 %3338, %v3399_v5  }
 0x394   : > { %3208 = vmatmul.msk.f32.gmra.mxu2 %vm869_vm12, %v2223_v27 }
 0x395   : > { %2253 = vperm.xlu2 %3336, %v3400_v36  }
 0x396   : > { %3339 = vset.pattern.permute.xlu1 %v3514_v42 }
 0x397   : > { %3215 = vmatmul.msk.f32.gmra.mxu3 %vm869_vm12, %v2223_v27  ;;  %3196 = vmatmul.msk.f32.gmra.mxu0 %vm869_vm12, %v2225_v22 }
 0x398   : > { %3203 = vmatmul.msk.f32.gmra.mxu1 %vm869_vm12, %v2225_v22  ;;  %2722 = vperm.xlu1 %3339, %v3396_v20  }
 0x39b   : > { %3342 = vset.pattern.permute.xlu0 %v3515_v45 }
 0x39c   : > { %3209 = vmatmul.msk.f32.gmra.mxu2 %vm869_vm12, %v2224_v34  ;;  %2778 = vperm.xlu0 %3342, %v3396_v20  }
 0x39d   : > { %3340 = vset.pattern.permute.xlu2 %v3514_v42 }
 0x39e   : > { %2726 = vperm.xlu2 %3340, %v5301_v3  }
 0x39f   : > { %3216 = vmatmul.msk.f32.gmra.mxu3 %vm869_vm12, %v2224_v34  ;;  %3197 = vmatmul.msk.f32.gmra.mxu0 %vm869_vm12, %v2226_v48 }
 0x3a0   : > { %3204 = vmatmul.msk.f32.gmra.mxu1 %vm869_vm12, %v2226_v48  ;;  %2730 = vperm.xlu1 %3339, %v3397_v51  }
 0x3a4   : > { %3210 = vmatmul.msk.f32.gmra.mxu2 %vm869_vm12, %v2225_v22  ;;  %3344 = vset.pattern.permute.xlu0 %v3516_v21 }
 0x3a5   : > { %2914 = vperm.xlu0 %3344, %v5293_v31  }
 0x3a6   : > { %2734 = vperm.xlu2 %3340, %v3398_v10  }
 0x3a7   : > { %3217 = vmatmul.msk.f32.gmra.mxu3 %vm869_vm12, %v2225_v22  ;;  %3198 = vmatmul.msk.f32.gmra.mxu0 %vm869_vm12, %v2227_v37 }
 0x3a8   : > { %3205 = vmatmul.msk.f32.gmra.mxu1 %vm869_vm12, %v2227_v37  ;;  %2742 = vperm.xlu1 %3339, %v3400_v36  }
 0x3ac   : > { %3211 = vmatmul.msk.f32.gmra.mxu2 %vm869_vm12, %v2226_v48 }
 0x3ad   : > { %2930 = vperm.xlu0 %3344, %v3398_v10  }
 0x3ae   : > { %3341 = vset.pattern.permute.xlu2 %v3515_v45 }
 0x3af   : > { %3218 = vmatmul.msk.f32.gmra.mxu3 %vm869_vm12, %v2226_v48  ;;  %2774 = vperm.xlu2 %3341, %v5293_v31  }
 0x3b0   : > { %3343 = vset.pattern.permute.xlu1 %v3515_v45 }
 0x3b1   : > { %2782 = vperm.xlu1 %3343, %v5301_v3  }
 0x3b4   : > { %3212 = vmatmul.msk.f32.gmra.mxu2 %vm869_vm12, %v2227_v37 }
 0x3b5   : > { %3347 = vset.pattern.permute.xlu0 %v3517_v8 }
 0x3b6   : > { %3018 = vperm.xlu0 %3347, %v5293_v31  }
 0x3b7   : > { %3219 = vmatmul.msk.f32.gmra.mxu3 %vm869_vm12, %v2227_v37  ;;  %2786 = vperm.xlu2 %3341, %v3397_v51  }
 0x3b9   : > { %2790 = vperm.xlu1 %3343, %v3398_v10  }
 0x3bf   : > { %2794 = vperm.xlu2 %3341, %v3399_v5  }
 0x3c1   : > { %3345 = vset.pattern.permute.xlu1 %v3516_v21 }
 0x3c2   : > { %2918 = vperm.xlu1 %3345, %v3396_v20  }
 0x3c7   : > { %2798 = vperm.xlu2 %3341, %v3400_v36  }
 0x3ca   : > { %2922 = vperm.xlu1 %3345, %v5301_v3  }
 0x3cf   : > { %3346 = vset.pattern.permute.xlu2 %v3516_v21 }
 0x3d0   : > { %2926 = vperm.xlu2 %3346, %v3397_v51  }
 0x3d2   : > { %2934 = vperm.xlu1 %3345, %v3399_v5  }
 0x3d8   : > { %2938 = vperm.xlu2 %3346, %v3400_v36  }
 0x3df   : > { %v2234_v35 = vpop.permute.xlu2 %2233 }
 0x3e7   : > { %v5376_v9 = vpop.permute.xlu2 %2245 }
 0x3ef   : > { %v5418_v20 = vpop.permute.xlu2 %2253 }
 0x3f0   : > { %v5356_v18 = vpop.permute.xlu1 %2229 }
 0x3f4   : > { %v2294_v33 = vpop.f32.mrf.mxu0  ;;  %v2332_v40 = vpop.f32.mrf.mxu1 }
 0x3f5   : > { %v5359_v55 = vadd.f32 %v2294_v33, %v5356_v18  ;;  %v5366_v39 = vadd.f32 %v2332_v40, %v5356_v18  ;;  %v2238_v59 = vpop.permute.xlu0 %2237 }
 0x3f7   : > { %v2429_v17 = vmax.f32 %v5359_v55, 0.0  ;;  %v2430_v54 = vmax.f32 %v5366_v39, 0.0  ;;  %v6167_v39 = vld [vmem:[#allocation8_spill] sm:$0xff] }
 0x3f8   : > { %v5363_v50 = vpop.permute.xlu1 %2241 }
 0x3fc   : > { %v2297_v25 = vpop.f32.mrf.mxu0 }
 0x3fd   : > { %v2335_v38 = vpop.f32.mrf.mxu1  ;;  %v5361_v56 = vadd.f32 %v2297_v25, %v2234_v35 }
 0x3fe   : > { %v5368_v2 = vadd.f32 %v2335_v38, %v2234_v35 }
 0x3ff   : > { %v2433_v23 = vmax.f32 %v5361_v56, 0.0 }
 0x400   : > { %v2434_v26 = vmax.f32 %v5368_v2, 0.0  ;;  %v5391_v19 = vpop.permute.xlu1 %2249 }
 0x401   : > { %v2457_v14 = vadd.f32 %v2433_v23, %v2429_v17 }
 0x402   : > { %v2469_v32 = vadd.f32 %v2434_v26, %v2430_v54 }
 0x404   : > { %v2300_v47 = vpop.f32.mrf.mxu0 }
 0x405   : > { %v2338_v30 = vpop.f32.mrf.mxu1  ;;  %v5372_v12 = vadd.f32 %v2300_v47, %v2238_v59 }
 0x406   : > { %v5378_v52 = vadd.f32 %v2338_v30, %v2238_v59 }
 0x407   : > { %v5351_v4 = vpop.f32.mrf.mxu2  ;;  %v2437_v11 = vmax.f32 %v5372_v12, 0.0 }
 0x408   : > { %v2438_v28 = vmax.f32 %v5378_v52, 0.0 }
 0x409   : > { %v2458_v58 = vadd.f32 %v2457_v14, %v2437_v11 }
 0x40a   : > { %v5354_v1 = vpop.f32.mrf.mxu3  ;;  %v2470_v27 = vadd.f32 %v2469_v32, %v2438_v28 }
 0x40c   : > { %v2303_v6 = vpop.f32.mrf.mxu0 }
 0x40d   : > { %v2341_v57 = vpop.f32.mrf.mxu1  ;;  %v5385_v7 = vadd.f32 %v2303_v6, %v5363_v50 }
 0x40e   : > { %v5389_v61 = vadd.f32 %v2341_v57, %v5363_v50 }
 0x40f   : > { %v2373_v13 = vpop.f32.mrf.mxu2  ;;  %v2441_v31 = vmax.f32 %v5385_v7, 0.0 }
 0x410   : > { %v2442_v62 = vmax.f32 %v5389_v61, 0.0  ;;  %v5446_v6 = vadd.f32 %v2373_v13, %v2234_v35 }
 0x411   : > { %v2459_v10 = vadd.f32 %v2458_v58, %v2441_v31 }
 0x412   : > { %v2411_v46 = vpop.f32.mrf.mxu3  ;;  %v2471_v36 = vadd.f32 %v2470_v27, %v2442_v62  ;;  %v5458_v27 = vadd.f32 %v5354_v1, %v5356_v18  ;;  %v6077_v13 = vmax.f32 %v5446_v6, 0.0 }
 0x413   : > { %v5452_v14 = vadd.f32 %v2411_v46, %v2234_v35 }
 0x414   : > { %v2306_v49 = vpop.f32.mrf.mxu0 }
 0x415   : > { %v2344_v29 = vpop.f32.mrf.mxu1  ;;  %v5394_v15 = vadd.f32 %v2306_v49, %v5376_v9  ;;  %v6065_v35 = vmax.f32 %v5452_v14, 0.0 }
 0x416   : > { %v5401_v44 = vadd.f32 %v2344_v29, %v5376_v9  ;;  %v5450_v29 = vadd.f32 %v5351_v4, %v5356_v18 }
 0x417   : > { %v2376_v43 = vpop.f32.mrf.mxu2  ;;  %v2445_v3 = vmax.f32 %v5394_v15, 0.0 }
 0x418   : > { %v2446_v53 = vmax.f32 %v5401_v44, 0.0  ;;  %v5454_v32 = vadd.f32 %v2376_v43, %v2238_v59  ;;  %v6078_v46 = vmax.f32 %v5450_v29, 0.0 }
 0x419   : > { %v2460_v48 = vadd.f32 %v2459_v10, %v2445_v3 }
 0x41a   : > { %v2414_v60 = vpop.f32.mrf.mxu3  ;;  %v2472_v21 = vadd.f32 %v2471_v36, %v2446_v53 }
 0x41b   : > { %v5461_v10 = vadd.f32 %v2414_v60, %v2238_v59  ;;  %v6069_v60 = vmax.f32 %v5458_v27, 0.0 }
 0x41c   : > { %v2309_v16 = vpop.f32.mrf.mxu0 }
 0x41d   : > { %v2347_v41 = vpop.f32.mrf.mxu1  ;;  %v5408_v24 = vadd.f32 %v2309_v16, %v5391_v19 }
 0x41e   : > { %v5412_v63 = vadd.f32 %v2347_v41, %v5391_v19 }
 0x41f   : > { %v2379_v0 = vpop.f32.mrf.mxu2  ;;  %v2449_v34 = vmax.f32 %v5408_v24, 0.0 }
 0x420   : > { %v2450_v5 = vmax.f32 %v5412_v63, 0.0  ;;  %v5464_v36 = vadd.f32 %v2379_v0, %v5363_v50  ;;  %v6068_v0 = vmax.f32 %v5461_v10, 0.0 }
 0x421   : > { %v2461_v40 = vadd.f32 %v2460_v48, %v2449_v34 }
 0x422   : > { %v2417_v51 = vpop.f32.mrf.mxu3  ;;  %v2473_v47 = vadd.f32 %v2472_v21, %v2450_v5  ;;  %v2481_v21 = vadd.f32 %v6077_v13, %v6078_v46 }
 0x423   : > { %v5470_v1 = vadd.f32 %v2417_v51, %v5363_v50 }
 0x424   : > { %v2312_v22 = vpop.f32.mrf.mxu0 }
 0x425   : > { %v5427_v42 = vadd.f32 %v2312_v22, %v5418_v20  ;;  %v2350_v37 = vpop.f32.mrf.mxu1 }
 0x426   : > { %v5432_v45 = vadd.f32 %v2350_v37, %v5418_v20  ;;  %v6076_v37 = vmax.f32 %v5454_v32, 0.0 }
 0x427   : > { %v2453_v33 = vmax.f32 %v5427_v42, 0.0  ;;  %v2382_v25 = vpop.f32.mrf.mxu2 }
 0x428   : > { %v2454_v38 = vmax.f32 %v5432_v45, 0.0  ;;  %v5473_v59 = vadd.f32 %v2382_v25, %v5376_v9  ;;  %v2493_v25 = vadd.f32 %v6065_v35, %v6069_v60 }
 0x429   : > { %v2462_v30 = vadd.f32 %v2461_v40, %v2453_v33 }
 0x42a   : > { %v2474_v8 = vadd.f32 %v2473_v47, %v2454_v38  ;;  %v2420_v41 = vpop.f32.mrf.mxu3  ;;  %v6074_v47 = vmax.f32 %v5464_v36, 0.0 }
 0x42b   : > { %v2463_v57 = vrot.slane %v2462_v30, 4  ;;  %v5483_v50 = vadd.f32 %v2420_v41, %v5376_v9  ;;  %v2494_v9 = vadd.f32 %v2493_v25, %v6068_v0 }
 0x42c   : > { %v2475_v49 = vrot.slane %v2474_v8, 4 }
 0x42d   : > { %v2464_v16 = vadd.f32 %v2463_v57, %v2462_v30  ;;  %v2482_v57 = vadd.f32 %v2481_v21, %v6076_v37  ;;  %v6066_v35 = vmax.f32 %v5483_v50, 0.0 }
 0x42e   : > { %v2476_v58 = vadd.f32 %v2475_v49, %v2474_v8  ;;  %v6067_v49 = vmax.f32 %v5470_v1, 0.0 }
 0x42f   : > { %v2465_v22 = vrot.slane %v2464_v16, 2  ;;  %v2385_v48 = vpop.f32.mrf.mxu2 }
 0x430   : > { %v2477_v4 = vrot.slane %v2476_v58, 2  ;;  %v5486_v51 = vadd.f32 %v2385_v48, %v5391_v19  ;;  %v2495_v25 = vadd.f32 %v2494_v9, %v6067_v49 }
 0x431   : > { %v2466_v43 = vadd.f32 %v2465_v22, %v2464_v16 }
 0x432   : > { %v2478_v18 = vadd.f32 %v2477_v4, %v2476_v58  ;;  %v6073_v58 = vmax.f32 %v5473_v59, 0.0  ;;  %v2423_v22 = vpop.f32.mrf.mxu3  ;;  %v2483_v4 = vadd.f32 %v2482_v57, %v6074_v47  ;;  %v6168_v57 = vld [vmem:[#allocation14_spill] sm:$0xff] }
 0x433   : > { %v2467_v40 = vrot.slane %v2466_v43, 1 }
 0x434   : > { %v2479_v30 = vrot.slane %v2478_v18, 1  ;;  %v2484_v56 = vadd.f32 %v2483_v4, %v6073_v58 }
 0x435   : > { %v2468_v8 = vadd.f32 %v2467_v40, %v2466_v43  ;;  %v6070_v43 = vmax.f32 %v5486_v51, 0.0 }
 0x436   : > { %v2480_v16 = vadd.f32 %v2479_v30, %v2478_v18 }
 0x437   : > { %v2505_v41 = vmul.f32 0.02, %v2468_v8  ;;  %v2388_v2 = vpop.f32.mrf.mxu2 }
 0x438   : > { %v2506_v48 = vmul.f32 0.02, %v2480_v16 }
 0x439   : > { %v5504_v21 = vsub.f32 %v2429_v17, %v2505_v41  ;;  %v5508_v18 = vsub.f32 %v2433_v23, %v2505_v41  ;;  %v5512_v40 = vsub.f32 %v2437_v11, %v2505_v41  ;;  %v5516_v30 = vsub.f32 %v2441_v31, %v2505_v41 }
 0x43a   : > { %v5522_v55 = vsub.f32 %v2445_v3, %v2505_v41  ;;  %v5527_v17 = vadd.f32 %v2423_v22, %v5391_v19  ;;  %v5537_v11 = vsub.f32 %v2430_v54, %v2506_v48  ;;  %v5541_v15 = vsub.f32 %v2434_v26, %v2506_v48  ;;  %v6169_v22 = vld [vmem:[#allocation21_spill] sm:$0xff] }
 0x43b   : > { %v2537_v23 = vmul.f32 %v5504_v21, %v5504_v21  ;;  %v2541_v12 = vmul.f32 %v5508_v18, %v5508_v18  ;;  %v2545_v7 = vmul.f32 %v5512_v40, %v5512_v40  ;;  %v2496_v19 = vadd.f32 %v2495_v25, %v6066_v35  ;;  %v6171_v35 = vld [vmem:[#allocation20_spill] sm:$0xff] }
 0x43c   : > { %v2485_v31 = vadd.f32 %v2484_v56, %v6070_v43  ;;  %v5549_v3 = vsub.f32 %v2449_v34, %v2505_v41  ;;  %v2549_v8 = vmul.f32 %v5516_v30, %v5516_v30  ;;  %v5557_v26 = vsub.f32 %v2453_v33, %v2505_v41 }
 0x43d   : > { %v2565_v54 = vmul.f32 %v2537_v23, %v6167_v39  ;;  %v2569_v16 = vmul.f32 %v2541_v12, %v6168_v57  ;;  %v2553_v9 = vmul.f32 %v5522_v55, %v5522_v55  ;;  %v5563_v24 = vsub.f32 %v2438_v28, %v2506_v48  ;;  %v2426_v12 = vpop.f32.mrf.mxu3 }
 0x43e   : > { %v6071_v34 = vmax.f32 %v5527_v17, 0.0  ;;  %v2573_v4 = vmul.f32 %v2545_v7, %v6169_v22  ;;  %v5569_v56 = vsub.f32 %v2442_v62, %v2506_v48  ;;  %v5573_v42 = vsub.f32 %v2446_v53, %v2506_v48  ;;  %v6170_v62 = vld [vmem:[#allocation15_spill] sm:$0xff] }
 0x43f   : > { %v2593_v25 = vadd.f32 %v2569_v16, %v2565_v54  ;;  %v2538_v33 = vmul.f32 %v5537_v11, %v5537_v11  ;;  %v2542_v52 = vmul.f32 %v5541_v15, %v5541_v15  ;;  %v2546_v28 = vmul.f32 %v5563_v24, %v5563_v24 }
 0x440   : > { %v5582_v41 = vadd.f32 %v2388_v2, %v5418_v20  ;;  %v2557_v61 = vmul.f32 %v5549_v3, %v5549_v3  ;;  %v2577_v23 = vmul.f32 %v2549_v8, %v6170_v62  ;;  %v5589_v53 = vsub.f32 %v2450_v5, %v2506_v48 }
 0x441   : > { %v2594_v44 = vadd.f32 %v2593_v25, %v2573_v4  ;;  %v2561_v7 = vmul.f32 %v5557_v26, %v5557_v26  ;;  %v2550_v54 = vmul.f32 %v5569_v56, %v5569_v56  ;;  %v2566_v16 = vmul.f32 %v2538_v33, %v6167_v39  ;;  %v6172_v33 = vld [vmem:[#allocation22_spill] sm:$0xff] }
 0x442   : > { %v2570_v2 = vmul.f32 %v2542_v52, %v6168_v57  ;;  %v2581_v49 = vmul.f32 %v2553_v9, %v6171_v35  ;;  %v5600_v8 = vsub.f32 %v2454_v38, %v2506_v48  ;;  %v2554_v63 = vmul.f32 %v5573_v42, %v5573_v42 }
 0x443   : > { %v2595_v0 = vadd.f32 %v2594_v44, %v2577_v23  ;;  %v2574_v5 = vmul.f32 %v2546_v28, %v6169_v22  ;;  %v6072_v25 = vmax.f32 %v5582_v41, 0.0  ;;  %v5607_v60 = vadd.f32 %v2426_v12, %v5418_v20  ;;  %v6173_v44 = vld [vmem:[#allocation23_spill] sm:$0xff] }
 0x444   : > { %v2605_v4 = vadd.f32 %v2570_v2, %v2566_v16  ;;  %v2585_v52 = vmul.f32 %v2557_v61, %v6172_v33  ;;  %v2558_v9 = vmul.f32 %v5589_v53, %v5589_v53  ;;  %v2497_v45 = vadd.f32 %v2496_v19, %v6071_v34  ;;  %v5625_v34 = vpop.permute.xlu2 %2726 }
 0x445   : > { %v2596_v43 = vadd.f32 %v2595_v0, %v2581_v49  ;;  %v2578_v38 = vmul.f32 %v2550_v54, %v6170_v62  ;;  %v2486_v28 = vadd.f32 %v2485_v31, %v6072_v25  ;;  %v6075_v23 = vmax.f32 %v5607_v60, 0.0 }
 0x446   : > { %v2606_v48 = vadd.f32 %v2605_v4, %v2574_v5  ;;  %v2589_v20 = vmul.f32 %v2561_v7, %v6173_v44  ;;  %v2562_v0 = vmul.f32 %v5600_v8, %v5600_v8  ;;  %v2582_v49 = vmul.f32 %v2554_v63, %v6171_v35 }
 0x447   : > { %v2597_v12 = vadd.f32 %v2596_v43, %v2585_v52  ;;  %v2487_v16 = vrot.slane %v2486_v28, 4  ;;  %v2498_v19 = vadd.f32 %v2497_v45, %v6075_v23  ;;  %v2586_v2 = vmul.f32 %v2558_v9, %v6172_v33  ;;  %v5627_v43 = vpop.permute.xlu1 %2722 }
 0x448   : > { %v2607_v61 = vadd.f32 %v2606_v48, %v2578_v38  ;;  %v2590_v52 = vmul.f32 %v2562_v0, %v6173_v44 }
 0x449   : > { %v2598_v54 = vadd.f32 %v2597_v12, %v2589_v20  ;;  %v2488_v31 = vadd.f32 %v2487_v16, %v2486_v28  ;;  %v2499_v4 = vrot.slane %v2498_v19, 4 }
 0x44a   : > { %v2608_v5 = vadd.f32 %v2607_v61, %v2582_v49 }
 0x44b   : > { %v2599_v7 = vrot.slane %v2598_v54, 4  ;;  %v2489_v63 = vrot.slane %v2488_v31, 2  ;;  %v2500_v38 = vadd.f32 %v2499_v4, %v2498_v19 }
 0x44c   : > { %v2609_v25 = vadd.f32 %v2608_v5, %v2586_v2  ;;  %v5630_v46 = vpop.permute.xlu2 %2734 }
 0x44d   : > { %v2600_v48 = vadd.f32 %v2599_v7, %v2598_v54  ;;  %v2490_v47 = vadd.f32 %v2489_v63, %v2488_v31  ;;  %v2501_v45 = vrot.slane %v2500_v38, 2  ;;  %v6175_v31 = vmax.f32 %v5446_v6, 0.0 }
 0x44e   : > { %v2610_v58 = vadd.f32 %v2609_v25, %v2590_v52  ;;  %v6174_v25 = vmax.f32 %v5450_v29, 0.0  ;;  %v6177_v52 = vmax.f32 %v5464_v36, 0.0  ;;  %v6178_v6 = vmax.f32 %v5473_v59, 0.0 }
 0x44f   : > { %v2601_v20 = vrot.slane %v2600_v48, 2  ;;  %v2491_v9 = vrot.slane %v2490_v47, 1  ;;  %v2502_v28 = vadd.f32 %v2501_v45, %v2500_v38  ;;  %v5632_v5 = vpop.permute.xlu1 %2730 }
 0x450   : > { %v2611_v12 = vrot.slane %v2610_v58, 4 }
 0x451   : > { %v2602_v49 = vadd.f32 %v2601_v20, %v2600_v48  ;;  %v2492_v16 = vadd.f32 %v2491_v9, %v2490_v47  ;;  %v2503_v2 = vrot.slane %v2502_v28, 1  ;;  %v6176_v47 = vmax.f32 %v5454_v32, 0.0 }
 0x452   : > { %v2612_v61 = vadd.f32 %v2611_v12, %v2610_v58  ;;  %v6179_v20 = vmax.f32 %v5486_v51, 0.0 }
 0x453   : > { %v2603_v23 = vrot.slane %v2602_v49, 1  ;;  %v2507_v13 = vmul.f32 0.02, %v2492_v16  ;;  %v2504_v45 = vadd.f32 %v2503_v2, %v2502_v28  ;;  %v6180_v16 = vmax.f32 %v5582_v41, 0.0 }
 0x454   : > { %v2613_v37 = vrot.slane %v2612_v61, 2 }
 0x455   : > { %v2604_v0 = vadd.f32 %v2603_v23, %v2602_v49  ;;  %v5636_v54 = vsub.f32 %v6174_v25, %v2507_v13  ;;  %v5640_v4 = vsub.f32 %v6175_v31, %v2507_v13  ;;  %v5644_v58 = vsub.f32 %v6176_v47, %v2507_v13 }
 0x456   : > { %v2614_v19 = vadd.f32 %v2613_v37, %v2612_v61  ;;  %v5648_v23 = vsub.f32 %v6177_v52, %v2507_v13  ;;  %v5658_v48 = vsub.f32 %v6178_v6, %v2507_v13  ;;  %v5664_v12 = vsub.f32 %v6179_v20, %v2507_v13 }
 0x457   : > { %v2641_v7 = vmul.f32 0.02, %v2604_v0  ;;  %v2539_v37 = vmul.f32 %v5636_v54, %v5636_v54  ;;  %v2543_v29 = vmul.f32 %v5640_v4, %v5640_v4  ;;  %v2547_v32 = vmul.f32 %v5644_v58, %v5644_v58 }
 0x458   : > { %v2615_v63 = vrot.slane %v2614_v19, 1  ;;  %v2551_v9 = vmul.f32 %v5648_v23, %v5648_v23  ;;  %v5673_v0 = vsub.f32 %v6180_v16, %v2507_v13  ;;  %v2555_v28 = vmul.f32 %v5658_v48, %v5658_v48 }
 0x459   : > { %v5654_v38 = vadd.f32 1e-05, %v2641_v7  ;;  %v2567_v49 = vmul.f32 %v2539_v37, %v6167_v39  ;;  %v2571_v59 = vmul.f32 %v2543_v29, %v6168_v57  ;;  %v2575_v51 = vmul.f32 %v2547_v32, %v6169_v22  ;;  %v5683_v7 = vpop.permute.xlu2 %2774  ;;  %v5697_v32 = vpop.permute.xlu1 %2742 }
 0x45a   : > { %v2616_v36 = vadd.f32 %v2615_v63, %v2614_v19  ;;  %v2508_v19 = vmul.f32 0.02, %v2504_v45  ;;  %v2559_v31 = vmul.f32 %v5664_v12, %v5664_v12  ;;  %v2579_v47 = vmul.f32 %v2551_v9, %v6170_v62 }
 0x45b   : > { %3372 = vrsqrt.f32 %v5654_v38  ;;  %v2617_v2 = vadd.f32 %v2571_v59, %v2567_v49  ;;  %v6181_v13 = vmax.f32 %v5458_v27, 0.0  ;;  %v6183_v63 = vmax.f32 %v5452_v14, 0.0 }
 0x45c   : > { %v2642_v61 = vmul.f32 0.02, %v2616_v36  ;;  %v6184_v29 = vmax.f32 %v5461_v10, 0.0  ;;  %v6185_v45 = vmax.f32 %v5470_v1, 0.0  ;;  %v2563_v27 = vmul.f32 %v5673_v0, %v5673_v0 }
 0x45d   : > { %v2618_v52 = vadd.f32 %v2617_v2, %v2575_v51  ;;  %v5687_v41 = vsub.f32 %v6181_v13, %v2508_v19  ;;  %v5691_v37 = vsub.f32 %v6183_v63, %v2508_v19  ;;  %v2583_v14 = vmul.f32 %v2555_v28, %v6171_v35 }
 0x45e   : > { %v5678_v25 = vadd.f32 1e-05, %v2642_v61  ;;  %v5695_v6 = vsub.f32 %v6184_v29, %v2508_v19  ;;  %v5702_v36 = vsub.f32 %v6185_v45, %v2508_v19  ;;  %v6187_v59 = vmax.f32 %v5483_v50, 0.0 }
 0x45f   : > { %6182 = vst [vmem:[#allocation13_spill] sm:$0xff] %v5687_v41  ;;  %v2619_v9 = vadd.f32 %v2618_v52, %v2579_v47  ;;  %v2540_v10 = vmul.f32 %v5687_v41, %v5687_v41  ;;  %v2544_v1 = vmul.f32 %v5691_v37, %v5691_v37  ;;  %v2587_v51 = vmul.f32 %v2559_v31, %v6172_v33 }
 0x460   : > { %3374 = vrsqrt.f32 %v5678_v25  ;;  %6186 = vst [vmem:[#allocation9_spill] sm:$0xff] %v5702_v36  ;;  %v5712_v61 = vsub.f32 %v6187_v59, %v2508_v19  ;;  %v2548_v16 = vmul.f32 %v5695_v6, %v5695_v6  ;;  %v6188_v28 = vmax.f32 %v5527_v17, 0.0 }
 0x461   : > { %v3373_v20 = vpop.eup %3372  ;;  %v2620_v2 = vadd.f32 %v2619_v9, %v2583_v14  ;;  %v2552_v13 = vmul.f32 %v5702_v36, %v5702_v36  ;;  %v2568_v50 = vmul.f32 %v2540_v10, %v6167_v39  ;;  %v2572_v63 = vmul.f32 %v2544_v1, %v6168_v57  ;;  %v5739_v1 = vpop.permute.xlu2 %2786 }
 0x462   : > { %v2650_v49 = vmul.f32 %v3373_v20, %v5654_v38  ;;  %v5721_v47 = vsub.f32 %v6188_v28, %v2508_v19  ;;  %v2591_v29 = vmul.f32 %v2563_v27, %v6173_v44  ;;  %v6190_v59 = vmax.f32 %v5607_v60, 0.0  ;;  %v5742_v28 = vpop.permute.xlu1 %2782 }
 0x463   : > { %v2621_v45 = vadd.f32 %v2620_v2, %v2587_v51  ;;  %v2556_v17 = vmul.f32 %v5712_v61, %v5712_v61  ;;  %v2576_v9 = vmul.f32 %v2548_v16, %v6169_v22  ;;  %vm2656_vm12 = vweird.f32 %v3373_v20  ;;  %v5744_v22 = vpop.permute.xlu0 %2718 }
 0x464   : > { %6189 = vst [vmem:[#allocation10_spill] sm:$0xff] %v5721_v47  ;;  %v2651_v52 = vmul.f32 %v3373_v20, %v2650_v49  ;;  %v5730_v41 = vsub.f32 %v6190_v59, %v2508_v19  ;;  %v2629_v49 = vadd.f32 %v2572_v63, %v2568_v50  ;;  %v2560_v27 = vmul.f32 %v5721_v47, %v5721_v47 }
 0x465   : > { %v2622_v10 = vadd.f32 %v2621_v45, %v2591_v29  ;;  %v2580_v60 = vmul.f32 %v2552_v13, %v6170_v62  ;;  %vm2655_vm6 = vweird.f32 %v5654_v38  ;;  %v2584_v50 = vmul.f32 %v2556_v17, %v6171_v35 }
 0x466   : > { %v3375_v31 = vpop.eup %3374  ;;  %v2652_v14 = vmul.f32 0.5, %v2651_v52  ;;  %v2630_v19 = vadd.f32 %v2629_v49, %v2576_v9  ;;  %v2564_v52 = vmul.f32 %v5730_v41, %v5730_v41  ;;  %vm2657_vm7 = vmor %vm2655_vm6, %vm2656_vm12  ;;  %v2588_v38 = vmul.f32 %v2560_v27, %v6172_v33 }
 0x467   : > { %v2660_v39 = vmul.f32 %v3375_v31, %v5678_v25  ;;  %v2623_v2 = vrot.slane %v2622_v10, 4  ;;  %vm2666_vm8 = vweird.f32 %v3375_v31  ;;  %vm2665_vm9 = vweird.f32 %v5678_v25 }
 0x468   : > { %v2653_v57 = vsub.f32 1.5, %v2652_v14  ;;  %v2631_v63 = vadd.f32 %v2630_v19, %v2580_v60  ;;  %v2592_v49 = vmul.f32 %v2564_v52, %v6173_v44  ;;  %vm2667_vm10 = vmor %vm2665_vm9, %vm2666_vm8 }
 0x469   : > { %v2661_v51 = vmul.f32 %v3375_v31, %v2660_v39  ;;  %v2624_v13 = vadd.f32 %v2623_v2, %v2622_v10 }
 0x46a   : > { %v2654_v16 = vmul.f32 %v3373_v20, %v2653_v57  ;;  %v2632_v45 = vadd.f32 %v2631_v63, %v2584_v50 }
 0x46b   : > { %v2662_v62 = vmul.f32 0.5, %v2661_v51  ;;  %v2625_v14 = vrot.slane %v2624_v13, 2  ;;  %v5764_v51 = vpop.permute.xlu2 %2794 }
 0x46c   : > { %v5750_v29 = vsel %vm2657_vm7, %v3373_v20, %v2654_v16  ;;  %v2633_v39 = vadd.f32 %v2632_v45, %v2588_v38  ;;  %v5771_v16 = vpop.permute.xlu0 %2738 }
 0x46d   : > { %v2663_v59 = vsub.f32 1.5, %v2662_v62  ;;  %v2697_v9 = vmul.f32 %v5750_v29, %v5512_v40  ;;  %v2701_v35 = vmul.f32 %v5750_v29, %v5516_v30  ;;  %v2626_v20 = vadd.f32 %v2625_v14, %v2624_v13 }
 0x46e   : > { %v2634_v10 = vadd.f32 %v2633_v39, %v2592_v49  ;;  %v2705_v44 = vmul.f32 %v5750_v29, %v5522_v55  ;;  %v2689_v2 = vmul.f32 %v5750_v29, %v5504_v21  ;;  %v2713_v52 = vmul.f32 %v5750_v29, %v5557_v26 }
 0x46f   : > { %v2664_v17 = vmul.f32 %v3375_v31, %v2663_v59  ;;  %v2627_v57 = vrot.slane %v2626_v20, 1  ;;  %v2753_v27 = vmul.f32 %v5625_v34, %v2697_v9  ;;  %v2757_v60 = vmul.f32 %v5632_v5, %v2701_v35 }
 0x470   : > { %v2635_v19 = vrot.slane %v2634_v10, 4  ;;  %v2693_v38 = vmul.f32 %v5750_v29, %v5508_v18  ;;  %v2761_v45 = vmul.f32 %v5630_v46, %v2705_v44  ;;  %v2745_v9 = vmul.f32 %v5744_v22, %v2689_v2 }
 0x471   : > { %v2668_v33 = vsel %vm2667_vm10, %v3375_v31, %v2664_v17  ;;  %v2628_v30 = vadd.f32 %v2627_v57, %v2626_v20  ;;  %v5769_v31 = vpop.permute.xlu1 %2790  ;;  %v2809_v13 = vadd.f32 %v5742_v28, %v2753_v27 }
 0x472   : > { %v2698_v40 = vmul.f32 %v2668_v33, %v5563_v24  ;;  %v2702_v25 = vmul.f32 %v2668_v33, %v5569_v56  ;;  %v2636_v50 = vadd.f32 %v2635_v19, %v2634_v10  ;;  %v2706_v55 = vmul.f32 %v2668_v33, %v5573_v42 }
 0x473   : > { %v2643_v63 = vmul.f32 0.02, %v2628_v30  ;;  %v2813_v56 = vadd.f32 %v5739_v1, %v2757_v60  ;;  %v2690_v26 = vmul.f32 %v2668_v33, %v5537_v11  ;;  %v2694_v39 = vmul.f32 %v2668_v33, %v5541_v15  ;;  %v5801_v2 = vpop.permute.xlu2 %2798 }
 0x474   : > { %v2754_v24 = vmul.f32 %v5625_v34, %v2698_v40  ;;  %v2758_v62 = vmul.f32 %v5632_v5, %v2702_v25  ;;  %v2637_v21 = vrot.slane %v2636_v50, 2  ;;  %v2762_v35 = vmul.f32 %v5630_v46, %v2706_v55 }
 0x475   : > { %v5784_v59 = vadd.f32 1e-05, %v2643_v63  ;;  %v2746_v17 = vmul.f32 %v5744_v22, %v2690_v26  ;;  %v2714_v18 = vmul.f32 %v2668_v33, %v5600_v8  ;;  %v2841_v11 = vmax.f32 %v2813_v56, 0.0 }
 0x476   : > { %v2814_v14 = vadd.f32 %v5739_v1, %v2758_v62  ;;  %v2810_v42 = vadd.f32 %v5742_v28, %v2754_v24  ;;  %v2638_v49 = vadd.f32 %v2637_v21, %v2636_v50  ;;  %v2837_v20 = vmax.f32 %v2809_v13, 0.0  ;;  %v5808_v62 = vpop.permute.xlu0 %2778 }
 0x477   : > { %3376 = vrsqrt.f32 %v5784_v59  ;;  %v2749_v57 = vmul.f32 %v5627_v43, %v2693_v38  ;;  %v2817_v27 = vadd.f32 %v5769_v31, %v2761_v45  ;;  %v2769_v60 = vmul.f32 %v5697_v32, %v2713_v52 }
 0x478   : > { %v2639_v10 = vrot.slane %v2638_v49, 1  ;;  %v2842_v19 = vmax.f32 %v2814_v14, 0.0  ;;  %v2838_v40 = vmax.f32 %v2810_v42, 0.0  ;;  %v2801_v15 = vadd.f32 %v5683_v7, %v2745_v9 }
 0x479   : > { %v2750_v30 = vmul.f32 %v5627_v43, %v2694_v39  ;;  %v2802_v8 = vadd.f32 %v5683_v7, %v2746_v17  ;;  %v2818_v25 = vadd.f32 %v5769_v31, %v2762_v35  ;;  %v2770_v50 = vmul.f32 %v5697_v32, %v2714_v18  ;;  %v5806_v63 = vpop.permute.xlu1 %2918 }
 0x47a   : > { %v2640_v44 = vadd.f32 %v2639_v10, %v2638_v49  ;;  %v2869_v24 = vmul.f32 %v2841_v11, %v2841_v11  ;;  %v2865_v55 = vmul.f32 %v2837_v20, %v2837_v20  ;;  %v2709_v52 = vmul.f32 %v5750_v29, %v5549_v3 }
 0x47b   : > { %v5810_v13 = vmax.f32 %v2817_v27, 0.0  ;;  %v2710_v21 = vmul.f32 %v2668_v33, %v5589_v53  ;;  %v2805_v38 = vadd.f32 %v5808_v62, %v2749_v57  ;;  %v2870_v26 = vmul.f32 %v2842_v19, %v2842_v19  ;;  %v5830_v36 = vpop.permute.xlu2 %2926 }
 0x47c   : > { %v2644_v56 = vmul.f32 0.02, %v2640_v44  ;;  %v2866_v14 = vmul.f32 %v2838_v40, %v2838_v40  ;;  %v2829_v42 = vmax.f32 %v2801_v15, 0.0  ;;  %v2825_v9 = vadd.f32 %v5801_v2, %v2769_v60 }
 0x47d   : > { %6191 = vst [vmem:[#allocation11_spill] sm:$0xff] %v5810_v13  ;;  %v3377_v45 = vpop.eup %3376  ;;  %vm2675_vm11 = vweird.f32 %v5784_v59  ;;  %v2830_v29 = vmax.f32 %v2802_v8, 0.0  ;;  %v5819_v39 = vmax.f32 %v2818_v25, 0.0  ;;  %v2765_v35 = vmul.f32 %v5771_v16, %v2709_v52 }
 0x47e   : > { %v2670_v49 = vmul.f32 %v3377_v45, %v5784_v59  ;;  %v5817_v3 = vadd.f32 1e-05, %v2644_v56  ;;  %v2826_v53 = vadd.f32 %v5801_v2, %v2770_v50  ;;  %v2806_v33 = vadd.f32 %v5808_v62, %v2750_v30 }
 0x47f   : > { %v2833_v17 = vmax.f32 %v2805_v38, 0.0  ;;  %v5827_v10 = vmul.f32 %v5810_v13, %v5810_v13  ;;  %v2766_v57 = vmul.f32 %v5771_v16, %v2710_v21  ;;  %v2853_v27 = vmax.f32 %v2825_v9, 0.0 }
 0x480   : > { %v2671_v18 = vmul.f32 %v3377_v45, %v2670_v49  ;;  %3378 = vrsqrt.f32 %v5817_v3  ;;  %v2834_v60 = vmax.f32 %v2806_v33, 0.0  ;;  %v2897_v44 = vmul.f32 %v2869_v24, %v2841_v11  ;;  %v5859_v33 = vpop.permute.xlu0 %2914 }
 0x481   : > { %6192 = vst [vmem:[#allocation12_spill] sm:$0xff] %v5827_v10  ;;  %v2861_v15 = vmul.f32 %v2833_v17, %v2833_v17  ;;  %v2898_v25 = vmul.f32 %v2870_v26, %v2842_v19  ;;  %v2893_v52 = vmul.f32 %v2865_v55, %v2837_v20  ;;  %v2857_v50 = vmul.f32 %v2829_v42, %v2829_v42  ;;  %v5843_v24 = vpop.permute.xlu1 %2922 }
 0x482   : > { %v2672_v8 = vmul.f32 0.5, %v2671_v18  ;;  %vm2676_vm13 = vweird.f32 %v3377_v45  ;;  %v2854_v30 = vmax.f32 %v2826_v53, 0.0  ;;  %v2862_v56 = vmul.f32 %v2834_v60, %v2834_v60 }
 0x483   : > { %v2894_v38 = vmul.f32 %v2866_v14, %v2838_v40  ;;  %v2889_v47 = vmul.f32 %v2861_v15, %v2833_v17  ;;  %v2858_v13 = vmul.f32 %v2830_v29, %v2830_v29  ;;  %v2885_v10 = vmul.f32 %v2857_v50, %v2829_v42  ;;  %vm2677_vm14 = vmor %vm2675_vm11, %vm2676_vm13 }
 0x484   : > { %v2673_v49 = vsub.f32 1.5, %v2672_v8  ;;  %v5834_v21 = vmul.f32 %v5819_v39, %v5819_v39  ;;  %v2821_v11 = vadd.f32 %v5764_v51, %v2765_v35  ;;  %v5838_v19 = vadd.f32 %v5764_v51, %v2766_v57 }
 0x485   : > { %v5841_v20 = vmul.f32 %v5830_v36, %v2897_v44  ;;  %v5846_v26 = vmul.f32 %v5830_v36, %v2898_v25  ;;  %v5849_v14 = vmul.f32 %v5843_v24, %v2893_v52  ;;  %v2881_v42 = vmul.f32 %v2853_v27, %v2853_v27 }
 0x486   : > { %v3379_v40 = vpop.eup %3378  ;;  %v2674_v55 = vmul.f32 %v3377_v45, %v2673_v49  ;;  %vm2685_vm15 = vweird.f32 %v5817_v3  ;;  %v2890_v35 = vmul.f32 %v2862_v56, %v2834_v60  ;;  %v5857_v53 = vmul.f32 %v5843_v24, %v2894_v38 }
 0x487   : > { %v2680_v9 = vmul.f32 %v3379_v40, %v5817_v3  ;;  %v2882_v17 = vmul.f32 %v2854_v30, %v2854_v30  ;;  %v2886_v57 = vmul.f32 %v2858_v13, %v2830_v29  ;;  %v2941_v15 = vmul.f32 %v5859_v33, %v2885_v10 }
 0x488   : > { %v2678_v18 = vsel %vm2677_vm14, %v3377_v45, %v2674_v55  ;;  %v2945_v44 = vmul.f32 %v5806_v63, %v2889_v47  ;;  %vm2686_vm0 = vweird.f32 %v3379_v40  ;;  %v5880_v49 = vmul.f32 %v2881_v42, %v2853_v27 }
 0x489   : > { %v2715_v59 = vmul.f32 %v2678_v18, %v5673_v0  ;;  %v2681_v8 = vmul.f32 %v3379_v40, %v2680_v9  ;;  %v2699_v25 = vmul.f32 %v2678_v18, %v5644_v58  ;;  %v2695_v52 = vmul.f32 %v2678_v18, %v5640_v4  ;;  %vm2687_vm1 = vmor %vm2685_vm15, %vm2686_vm0 }
 0x48a   : > { %v2707_v60 = vmul.f32 %v2678_v18, %v5658_v48  ;;  %v2703_v50 = vmul.f32 %v2678_v18, %v5648_v23  ;;  %v2691_v56 = vmul.f32 %v2678_v18, %v5636_v54  ;;  %v2711_v45 = vmul.f32 %v2678_v18, %v5664_v12 }
 0x48b   : > { %v2682_v13 = vmul.f32 0.5, %v2681_v8  ;;  %v2755_v29 = vmul.f32 %v5625_v34, %v2699_v25  ;;  %v2751_v47 = vmul.f32 %v5627_v43, %v2695_v52  ;;  %v2771_v0 = vmul.f32 %v5697_v32, %v2715_v59 }
 0x48c   : > { %v2763_v10 = vmul.f32 %v5630_v46, %v2707_v60  ;;  %v2759_v58 = vmul.f32 %v5632_v5, %v2703_v50  ;;  %v2747_v4 = vmul.f32 %v5744_v22, %v2691_v56  ;;  %v2767_v48 = vmul.f32 %v5771_v16, %v2711_v45 }
 0x48d   : > { %v2683_v23 = vsub.f32 1.5, %v2682_v13  ;;  %v2811_v54 = vadd.f32 %v5742_v28, %v2755_v29  ;;  %v2807_v12 = vadd.f32 %v5808_v62, %v2751_v47  ;;  %v5882_v55 = vmul.f32 %v2882_v17, %v2854_v30  ;;  %v6193_v13 = vld [vmem:[#allocation9_spill] sm:$0xff] }
 0x48e   : > { %v2815_v38 = vadd.f32 %v5739_v1, %v2759_v58  ;;  %v5884_v9 = vmax.f32 %v2821_v11, 0.0  ;;  %v2803_v59 = vadd.f32 %v5683_v7, %v2747_v4  ;;  %v2827_v8 = vadd.f32 %v5801_v2, %v2771_v0  ;;  %v6194_v47 = vld [vmem:[#allocation13_spill] sm:$0xff] }
 0x48f   : > { %v2684_v18 = vmul.f32 %v3379_v40, %v2683_v23  ;;  %v2942_v25 = vmul.f32 %v5859_v33, %v2886_v57  ;;  %v2819_v52 = vadd.f32 %v5769_v31, %v2763_v10  ;;  %v5893_v60 = vadd.f32 %v5764_v51, %v2767_v48 }
 0x490   : > { %v2946_v27 = vmul.f32 %v5806_v63, %v2890_v35  ;;  %v2969_v30 = vadd.f32 %v2945_v44, %v2941_v15  ;;  %v2843_v42 = vmax.f32 %v2815_v38, 0.0  ;;  %v2839_v17 = vmax.f32 %v2811_v54, 0.0 }
 0x491   : > { %v2688_v11 = vsel %vm2687_vm1, %v3379_v40, %v2684_v18  ;;  %v2835_v50 = vmax.f32 %v2807_v12, 0.0  ;;  %v2831_v10 = vmax.f32 %v2803_v59, 0.0  ;;  %v5902_v58 = vmax.f32 %v2827_v8, 0.0 }
 0x492   : > { %v2716_v56 = vmul.f32 %v2688_v11, %v5730_v41  ;;  %v2700_v45 = vmul.f32 %v2688_v11, %v5695_v6  ;;  %v2696_v57 = vmul.f32 %v2688_v11, %v5691_v37  ;;  %v2708_v3 = vmul.f32 %v2688_v11, %v5712_v61  ;;  %v6195_v61 = vld [vmem:[#allocation10_spill] sm:$0xff] }
 0x493   : > { %v2704_v29 = vmul.f32 %v2688_v11, %v6193_v13  ;;  %v2692_v0 = vmul.f32 %v2688_v11, %v6194_v47  ;;  %v2712_v44 = vmul.f32 %v2688_v11, %v6195_v61  ;;  %v2863_v4 = vmul.f32 %v2835_v50, %v2835_v50 }
 0x494   : > { %v2756_v40 = vmul.f32 %v5625_v34, %v2700_v45  ;;  %v2752_v35 = vmul.f32 %v5627_v43, %v2696_v57  ;;  %v2764_v15 = vmul.f32 %v5630_v46, %v2708_v3  ;;  %v2772_v41 = vmul.f32 %v5697_v32, %v2716_v56 }
 0x495   : > { %v2760_v6 = vmul.f32 %v5632_v5, %v2704_v29  ;;  %v2748_v37 = vmul.f32 %v5744_v22, %v2692_v0  ;;  %v2871_v48 = vmul.f32 %v2843_v42, %v2843_v42  ;;  %v2847_v54 = vmax.f32 %v2819_v52, 0.0 }
 0x496   : > { %v2812_v23 = vadd.f32 %v5742_v28, %v2756_v40  ;;  %v2808_v12 = vadd.f32 %v5808_v62, %v2752_v35  ;;  %v2820_v46 = vadd.f32 %v5769_v31, %v2764_v15  ;;  %v2970_v32 = vadd.f32 %v2969_v30, %v5849_v14 }
 0x497   : > { %v2816_v34 = vadd.f32 %v5739_v1, %v2760_v6  ;;  %v2804_v43 = vadd.f32 %v5683_v7, %v2748_v37  ;;  %v2768_v22 = vmul.f32 %v5771_v16, %v2712_v44  ;;  %v2828_v38 = vadd.f32 %v5801_v2, %v2772_v41 }
 0x498   : > { %v2840_v5 = vmax.f32 %v2812_v23, 0.0  ;;  %v2836_v18 = vmax.f32 %v2808_v12, 0.0  ;;  %v2867_v8 = vmul.f32 %v2839_v17, %v2839_v17  ;;  %v2891_v52 = vmul.f32 %v2863_v4, %v2835_v50 }
 0x499   : > { %v2844_v59 = vmax.f32 %v2816_v34, 0.0  ;;  %v2832_v28 = vmax.f32 %v2804_v43, 0.0  ;;  %v2899_v56 = vmul.f32 %v2871_v48, %v2843_v42  ;;  %v2981_v1 = vadd.f32 %v2946_v27, %v2942_v25  ;;  %v6196_v34 = vld [vmem:[#allocation11_spill] sm:$0xff]  ;;  %v6197_v43 = vld [vmem:[#allocation12_spill] sm:$0xff] }
 0x49a   : > { %v2868_v11 = vmul.f32 %v2840_v5, %v2840_v5  ;;  %v2864_v62 = vmul.f32 %v2836_v18, %v2836_v18  ;;  %v2848_v7 = vmax.f32 %v2820_v46, 0.0  ;;  %v2859_v57 = vmul.f32 %v2831_v10, %v2831_v10 }
 0x49b   : > { %v2872_v45 = vmul.f32 %v2844_v59, %v2844_v59  ;;  %v2860_v31 = vmul.f32 %v2832_v28, %v2832_v28  ;;  %v2875_v3 = vmul.f32 %v2847_v54, %v2847_v54  ;;  %v2824_v14 = vadd.f32 %v5764_v51, %v2768_v22 }
 0x49c   : > { %v2856_v30 = vmax.f32 %v2828_v38, 0.0  ;;  %v2892_v16 = vmul.f32 %v2864_v62, %v2836_v18  ;;  %v2895_v13 = vmul.f32 %v2867_v8, %v2839_v17  ;;  %v2887_v2 = vmul.f32 %v2859_v57, %v2831_v10  ;;  %v2935_v18 = vpop.permute.xlu1 %2934 }
 0x49d   : > { %v2888_v29 = vmul.f32 %v2860_v31, %v2832_v28  ;;  %v2947_v47 = vmul.f32 %v5806_v63, %v2891_v52  ;;  %v2955_v50 = vmul.f32 %v5830_v36, %v2899_v56  ;;  %v2896_v0 = vmul.f32 %v2868_v11, %v2840_v5  ;;  %v2939_v56 = vpop.permute.xlu2 %2938 }
 0x49e   : > { %v2948_v42 = vmul.f32 %v5806_v63, %v2892_v16  ;;  %v2850_v25 = vmax.f32 %v5838_v19, 0.0  ;;  %v2876_v27 = vmul.f32 %v2848_v7, %v2848_v7  ;;  %v2900_v40 = vmul.f32 %v2872_v45, %v2844_v59 }
 0x49f   : > { %v2943_v35 = vmul.f32 %v5859_v33, %v2887_v2  ;;  %v2944_v51 = vmul.f32 %v5859_v33, %v2888_v29  ;;  %v2883_v17 = vmul.f32 %v5902_v58, %v5902_v58  ;;  %v2851_v10 = vmax.f32 %v5893_v60, 0.0  ;;  %v2931_v60 = vpop.permute.xlu0 %2930 }
 0x4a0   : > { %v2852_v15 = vmax.f32 %v2824_v14, 0.0  ;;  %v2877_v41 = vmul.f32 %v5884_v9, %v5884_v9  ;;  %v2951_v6 = vmul.f32 %v5843_v24, %v2895_v13  ;;  %v2878_v19 = vmul.f32 %v2850_v25, %v2850_v25 }
 0x4a1   : > { %v2993_v63 = vadd.f32 %v2947_v47, %v2943_v35  ;;  %v3005_v37 = vadd.f32 %v2948_v42, %v2944_v51  ;;  %v2952_v61 = vmul.f32 %v5843_v24, %v2896_v0  ;;  %v2884_v44 = vmul.f32 %v2856_v30, %v2856_v30 }
 0x4a2   : > { %v2879_v4 = vmul.f32 %v2851_v10, %v2851_v10  ;;  %v2880_v48 = vmul.f32 %v2852_v15, %v2852_v15  ;;  %v2956_v33 = vmul.f32 %v5830_v36, %v2900_v40  ;;  %v2982_v23 = vadd.f32 %v2981_v1, %v5857_v53 }
 0x4a3   : > { %v2994_v12 = vadd.f32 %v2993_v63, %v2951_v6  ;;  %v2901_v46 = vmul.f32 %v6197_v43, %v6196_v34  ;;  %v3006_v5 = vadd.f32 %v3005_v37, %v2952_v61  ;;  %v2911_v22 = vmul.f32 %v2883_v17, %v5902_v58 }
 0x4a4   : > { %v2905_v38 = vmul.f32 %v2877_v41, %v5884_v9  ;;  %v2902_v24 = vmul.f32 %v5834_v21, %v5819_v39  ;;  %v2906_v59 = vmul.f32 %v2878_v19, %v2850_v25  ;;  %v2907_v8 = vmul.f32 %v2879_v4, %v2851_v10 }
 0x4a5   : > { %v2903_v28 = vmul.f32 %v2875_v3, %v2847_v54  ;;  %v2904_v36 = vmul.f32 %v2876_v27, %v2848_v7  ;;  %v2912_v52 = vmul.f32 %v2884_v44, %v2856_v30  ;;  %v2908_v53 = vmul.f32 %v2880_v48, %v2852_v15 }
 0x4a6   : > { %v2957_v11 = vmul.f32 %v2931_v60, %v2901_v46  ;;  %v2971_v62 = vadd.f32 %v2970_v32, %v5841_v20  ;;  %v2958_v1 = vmul.f32 %v2931_v60, %v2902_v24  ;;  %v2983_v58 = vadd.f32 %v2982_v23, %v5846_v26 }
 0x4a7   : > { %v2959_v45 = vmul.f32 %v2931_v60, %v2903_v28  ;;  %v2995_v57 = vadd.f32 %v2994_v12, %v2955_v50  ;;  %v2961_v9 = vmul.f32 %v2935_v18, %v2905_v38  ;;  %v2960_v31 = vmul.f32 %v2931_v60, %v2904_v36  ;;  %v3019_v12 = vpop.permute.xlu0 %3018 }
 0x4a8   : > { %v2972_v14 = vadd.f32 %v2971_v62, %v2957_v11  ;;  %v3007_v39 = vadd.f32 %v3006_v5, %v2956_v33  ;;  %v2962_v21 = vmul.f32 %v2935_v18, %v2906_v59  ;;  %v2963_v16 = vmul.f32 %v2935_v18, %v2907_v8 }
 0x4a9   : > { %v2984_v13 = vadd.f32 %v2983_v58, %v2958_v1  ;;  %v2996_v54 = vadd.f32 %v2995_v57, %v2959_v45  ;;  %v2965_v7 = vmul.f32 %v2939_v56, %v5880_v49  ;;  %v2964_v3 = vmul.f32 %v2935_v18, %v2908_v53 }
 0x4aa   : > { %v2973_v30 = vadd.f32 %v2972_v14, %v2961_v9  ;;  %v3008_v2 = vadd.f32 %v3007_v39, %v2960_v31  ;;  %v2966_v20 = vmul.f32 %v2939_v56, %v5882_v55  ;;  %v2967_v32 = vmul.f32 %v2939_v56, %v2911_v22 }
 0x4ab   : > { %v2985_v29 = vadd.f32 %v2984_v13, %v2962_v21  ;;  %v2997_v47 = vadd.f32 %v2996_v54, %v2963_v16  ;;  %v2968_v26 = vmul.f32 %v2939_v56, %v2912_v52  ;;  %v3039_v24 = vlaneseq }
 0x4ac   : > { %v3009_v50 = vadd.f32 %v3008_v2, %v2964_v3  ;;  %v2974_v0 = vadd.f32 %v2973_v30, %v2965_v7 }
 0x4ad   : > { %v2986_v42 = vadd.f32 %v2985_v29, %v2966_v20  ;;  %v2998_v25 = vadd.f32 %v2997_v47, %v2967_v32  ;;  %vm3041_vm5 = vcmp.lt.s32.totalorder %v3039_v24, 512 }
 0x4ae   : > { %v2975_v27 = vrot.slane %v2974_v0, 4  ;;  %v3010_v40 = vadd.f32 %v3009_v50, %v2968_v26 }
 0x4af   : > { %v2987_v35 = vrot.slane %v2986_v42, 4  ;;  %v2999_v51 = vrot.slane %v2998_v25, 4 }
 0x4b0   : > { %v2976_v17 = vadd.f32 %v2975_v27, %v2974_v0  ;;  %v3011_v49 = vrot.slane %v3010_v40, 4 }
 0x4b1   : > { %v2988_v10 = vadd.f32 %v2987_v35, %v2986_v42  ;;  %v3000_v15 = vadd.f32 %v2999_v51, %v2998_v25 }
 0x4b2   : > { %v2977_v41 = vrot.slane %v2976_v17, 2  ;;  %v3012_v55 = vadd.f32 %v3011_v49, %v3010_v40 }
 0x4b3   : > { %v2989_v6 = vrot.slane %v2988_v10, 2  ;;  %v3001_v63 = vrot.slane %v3000_v15, 2 }
 0x4b4   : > { %v2978_v37 = vadd.f32 %v2977_v41, %v2976_v17  ;;  %v3013_v19 = vrot.slane %v3012_v55, 2 }
 0x4b5   : > { %v2990_v61 = vadd.f32 %v2989_v6, %v2988_v10  ;;  %v3002_v44 = vadd.f32 %v3001_v63, %v3000_v15 }
 0x4b6   : > { %v2979_v4 = vrot.slane %v2978_v37, 1  ;;  %v3014_v48 = vadd.f32 %v3013_v19, %v3012_v55 }
 0x4b7   : > { %v2991_v33 = vrot.slane %v2990_v61, 1  ;;  %v3003_v23 = vrot.slane %v3002_v44, 1 }
 0x4b8   : > { %v3015_v60 = vrot.slane %v3014_v48, 1  ;;  %v2980_v46 = vadd.f32 %v2979_v4, %v2978_v37 }
 0x4b9   : > { %v2992_v34 = vadd.f32 %v2991_v33, %v2990_v61  ;;  %v3004_v43 = vadd.f32 %v3003_v23, %v3002_v44 }
 0x4ba   : > { %v3016_v5 = vadd.f32 %v3015_v60, %v3014_v48  ;;  %v3021_v28 = vadd.f32 %v3019_v12, %v2980_v46 }
 0x4bb   : > { %v3022_v22 = vadd.f32 %v3019_v12, %v2992_v34  ;;  %v3023_v38 = vadd.f32 %v3019_v12, %v3004_v43 }
 0x4bc   : > { %v3024_v18 = vadd.f32 %v3019_v12, %v3016_v5 }
 0x4bd   : > { %v3029_v59 = vrot.slane %v3022_v22, 7  ;;  %v3030_v8 = vrot.slane %v3023_v38, 6 }
 0x4be   : > { %v3031_v36 = vrot.slane %v3024_v18, 5 }
 0x4bf   : > { %v3033_v52 = vsel %vm3032_vm2, %v3021_v28, %v3029_v59 }
 0x4c0   : > { %v3035_v53 = vsel %vm3034_vm3, %v3030_v8, %v3031_v36 }
 0x4c1   : > { %v3037_v11 = vsel %vm3036_vm4, %v3033_v52, %v3035_v53 }
 0x4c2   : > { %3043 = vst.msk [vmem:[%s179_s24] sm:$0xf] %vm3041_vm5, %v3037_v11 }
 0x4c3   : > { %3458 = shalt.err (!%p3455_p8)
}
 0x4c4   : > { %3228 = dma.vmem_to_hbm [thread:$0]  (%p3576_p5), %s3058_s25, 64, %s3060_s26, %s3045_s27  }
 0x4c5 PF: > { %p3240_p9 = scmp.ge.s32.totalorder %s3497_s15, 2  ;;  %s3071_s7 = sand.u32 1, %s3485_s12  }
 0x4c6   : > { %s3072_s8 = scalar_lea.sflag [#allocation4], %s3071_s7 }
 0x4c7   : > { %p3235_p10 = pnand %p3240_p9, %p3580_p6 }
 0x4c9   : > { %p3236_p11 = pneg %p3235_p10 }
 0x4cb   : > { %3480 = dma.done.wait (%p3236_p11), %s3072_s8, 64  }
 0x4cc   : > { %3482 = vsyncadd (%p3236_p11), %s3072_s8, 4294967232  ;;  %p14_p12 = scmp.ge.s32.totalorder %s3563_s18, 4   ;;  %s6198_s12 = smov %s3489_s13 }
 0x4cd   : > { %s6199_s13 = smov %s3493_s14  ;;  %s6200_s14 = smov %s3574_s21 }
 0x4ce   : > { %s6201_s15 = smov %s3563_s18  ;;  %16 = sbr.rel (!%p14_p12) target bundleno = 4 (0x4), region = 74 }
 0x4d3   :  { %3078 = vsyncpa [#allocation3], 1 }
 0x4d4   :  { %3080 = vsyncpa [#allocation3 + $0x1], 1 }
 0x4d5   :  { %3081 = vsyncpa [#allocation4], 1 }
 0x4d6   :  { %3083 = vsyncpa [#allocation4 + $0x1], 1 }

</bundles_post_ra>
